<compile_context>
chip_gen: v5e
topology: v5e:2x2
jax: 0.10.0
libtpu: 0.0.40
codegen_flags: <defaults>
</compile_context>

<pallas_src>
import numpy as np

import jax
import jax.numpy as jnp
from jax.experimental import pallas as pl
from jax.experimental.pallas import tpu as pltpu

# ----------------------------- configuration --------------------------------
B = 2              # batch
C_IN = 3           # input channels
H = W = 32         # input spatial
C_FEAT = 128       # backbone feature channels  (real model: 256)
H_F = W_F = 16     # feature-map spatial (stride-2 conv stem)
HW_F = H_F * W_F   # 256
R = 8              # number of proposals per image ("feature_map_size")
P = 4              # ROI pooled size             (real model: 7)
PP = P * P         # 16
REP = 256          # box_head representation size (real model: 1024)
DIM = 768          # projection dim (matches nn.Linear(1024, 768))
K_RAW = C_IN * 9   # 27  im2col contraction width
K_PAD = 32         # lane-friendlier contraction width for the conv stem
BR = B * R         # 16 output rows

IMAGENET_MEAN = jnp.array([0.485, 0.456, 0.406], dtype=jnp.float32)
IMAGENET_STD = jnp.array([0.229, 0.224, 0.225], dtype=jnp.float32)

# Deterministic stand-in proposals: (y0, x0, h, w) on the 16x16 feature map,
# all sides multiples of P so adaptive pooling is an exact average.
_PROPOSAL_BOXES = (
    (0, 0, 16, 16), (0, 0, 8, 8), (0, 8, 8, 8), (8, 0, 8, 8),
    (8, 8, 8, 8), (4, 4, 8, 8), (0, 0, 4, 4), (12, 12, 4, 4),
)
assert len(_PROPOSAL_BOXES) == R


def _build_pool_matrix():
    """Static adaptive-average ROI pooling as one block-diagonal matrix.

    Shape (PP*B*R, B*HW_F).  Row index = pp*(B*R) + b*R + r, column index
    = b*HW_F + y*W_F + x, so pooling over the whole batch is a single matmul
      pooled = POOL_MAT @ feat_(B*HW_F, C)
    and the (B*R, PP*C) head input is recovered by concatenating the PP
    contiguous (B*R)-row blocks along the lane axis (sublane-aligned, no
    in-kernel reshape).  Values (1, 1/4, 1/16) are exact in bf16.
    """
    pm = np.zeros((PP * B * R, B * HW_F), np.float32)
    for b in range(B):
        for r, (y0, x0, bh, bw) in enumerate(_PROPOSAL_BOXES):
            sy, sx = bh // P, bw // P
            inv = 1.0 / float(sy * sx)
            for py in range(P):
                for px in range(P):
                    row = (py * P + px) * (B * R) + b * R + r
                    for yy in range(y0 + py * sy, y0 + (py + 1) * sy):
                        for xx in range(x0 + px * sx, x0 + (px + 1) * sx):
                            pm[row, b * HW_F + yy * W_F + xx] = inv
    return jnp.asarray(pm, dtype=jnp.bfloat16)


POOL_MAT = _build_pool_matrix()   # (256, 512) bf16


# ------------------------------ Pallas kernel --------------------------------
def _fused_kernel(patches_ref, cw_ref, cb_ref, pmat_ref, w6_ref, b6_ref,
                  w7_ref, b7_ref, wp_ref, bp_ref, o_ref):
    """conv stem + ROI pooling + fc6 + fc7 + proj, all VMEM-resident.

    bf16 weight operands are promoted to f32 inside the dot (weights were
    only bf16 for HBM bytes); activations stay f32 throughout.
    """
    # --- backbone conv stem: conv-as-matmul + bias + ReLU (f32 accumulate) ---
    feat = jnp.dot(patches_ref[...], cw_ref[...],
                   preferred_element_type=jnp.float32) + cb_ref[...]
    feat = jnp.maximum(feat, 0.0)                                  # (B*HW_F, C)

    # --- ROI adaptive-avg pooling: one block-diagonal matmul over the batch --
    pooled = jnp.dot(pmat_ref[...], feat,
                     preferred_element_type=jnp.float32)           # (PP*B*R, C)
    # (PP*B*R, C) -> (B*R, PP*C): PP aligned (B*R)-row slices, lane concat.
    x = jnp.concatenate(
        [pooled[pp * BR:(pp + 1) * BR, :] for pp in range(PP)], axis=1)

    # --- TwoMLPHead (fc6, fc7) + projection ---------------------------------
    h = jnp.dot(x, w6_ref[...], preferred_element_type=jnp.float32) + b6_ref[...]
    h = jnp.maximum(h, 0.0)
    h = jnp.dot(h, w7_ref[...], preferred_element_type=jnp.float32) + b7_ref[...]
    h = jnp.maximum(h, 0.0)
    out = jnp.dot(h, wp_ref[...], preferred_element_type=jnp.float32) + bp_ref[...]
    o_ref[...] = out.astype(o_ref.dtype)


# ------------------------------ Pallas wrapper -------------------------------
def fused_forward(patches, cw, cb, pmat, w6, b6, w7, b7, wp, bp):
    """Single pallas_call for the whole encoder forward (grid=(1,))."""
    m, k = patches.shape
    flops = 2 * (m * k * C_FEAT                     # conv stem
                 + (PP * BR) * (B * HW_F) * C_FEAT  # pooling (block-diag matmul)
                 + BR * (PP * C_FEAT) * REP         # fc6
                 + BR * REP * REP                   # fc7
                 + BR * REP * DIM)                  # proj
    nbytes = (patches.size * 4
              + (cw.size + pmat.size + w6.size + w7.size + wp.size) * 2  # bf16
              + (cb.size + b6.size + b7.size + bp.size) * 4
              + BR * DIM * 4)
    return pl.pallas_call(
        _fused_kernel,
        out_shape=jax.ShapeDtypeStruct((BR, DIM), jnp.float32),
        grid=(1,),
        in_specs=[
            pl.BlockSpec((m, k), lambda i: (0, 0)),
            pl.BlockSpec((K_PAD, C_FEAT), lambda i: (0, 0)),
            pl.BlockSpec((1, C_FEAT), lambda i: (0, 0)),
            pl.BlockSpec((PP * BR, B * HW_F), lambda i: (0, 0)),
            pl.BlockSpec((PP * C_FEAT, REP), lambda i: (0, 0)),
            pl.BlockSpec((1, REP), lambda i: (0, 0)),
            pl.BlockSpec((REP, REP), lambda i: (0, 0)),
            pl.BlockSpec((1, REP), lambda i: (0, 0)),
            pl.BlockSpec((REP, DIM), lambda i: (0, 0)),
            pl.BlockSpec((1, DIM), lambda i: (0, 0)),
        ],
        out_specs=pl.BlockSpec((BR, DIM), lambda i: (0, 0)),
        compiler_params=pltpu.CompilerParams(
            dimension_semantics=("arbitrary",)),
        cost_estimate=pl.CostEstimate(flops=flops, transcendentals=0,
                                      bytes_accessed=nbytes),
    )(patches, cw, cb.reshape(1, C_FEAT), pmat,
      w6, b6.reshape(1, REP), w7, b7.reshape(1, REP), wp, bp.reshape(1, DIM))


# ------------------------------- JAX glue ------------------------------------
def _im2col_3x3_s2(x):
    """3x3 / stride-2 / pad-1 patch extraction (conv-as-matmul glue).

    Columns are channel-major / tap-minor (c*9 + tap), zero-padded from 27 to
    K_PAD=32 on the contraction axis (matching zero rows in the folded conv
    weights), so the conv kernel sees a lane-friendlier K.
    TODO(synk): at real GeneralizedRCNNTransform resolution (~800^2) this
    materialized patch matrix is ~9x the image bytes; move the tap gather into
    the Pallas kernel (strided pl.ds loads / manual DMA) at that scale.
    """
    b, c, h, w = x.shape
    xp = jnp.pad(x, ((0, 0), (0, 0), (1, 1), (1, 1)))
    patches = []
    for dy in range(3):
        for dx in range(3):
            patches.append(xp[:, :, dy:dy + h:2, dx:dx + w:2])   # (B, C, Hf, Wf)
    patches = jnp.stack(patches, axis=2)                          # (B, C, 9, Hf, Wf)
    patches = patches.transpose(0, 3, 4, 1, 2)                    # (B, Hf, Wf, C, 9)
    patches = patches.reshape(b * (h // 2) * (w // 2), c * 9)
    return jnp.pad(patches, ((0, 0), (0, K_PAD - c * 9)))


def init_params(key):
    ks = jax.random.split(key, 4)
    s = 0.02
    conv_w = s * jax.random.normal(ks[0], (K_RAW, C_FEAT), jnp.float32)
    conv_b = jnp.zeros((C_FEAT,), jnp.float32)
    # Fold the transform's 1/std into the conv weights (mean is subtracted in
    # the wrapper before zero-padding, so the border matches padding the
    # normalized image with zeros).  Pad K 27 -> 32 with zero rows, cast bf16.
    inv_std = jnp.repeat(1.0 / IMAGENET_STD, 9).reshape(K_RAW, 1)   # channel-major
    conv_w_folded = jnp.pad(conv_w * inv_std, ((0, K_PAD - K_RAW), (0, 0)))
    return {
        "conv_w": conv_w_folded.astype(jnp.bfloat16),                # (K_PAD, C_FEAT)
        "conv_b": conv_b,
        # fc6 rows are ordered (pooled-bin, channel) to match the pooling
        # matmul layout.
        # TODO(synk): if real TwoMLPHead weights are ever loaded, permute the
        # (C, P, P)-flattened PyTorch fc6 rows to this (P*P, C) ordering.
        "fc6_w": (s * jax.random.normal(ks[1], (PP * C_FEAT, REP), jnp.float32)
                  ).astype(jnp.bfloat16),
        "fc6_b": jnp.zeros((REP,), jnp.float32),
        "fc7_w": (s * jax.random.normal(ks[2], (REP, REP), jnp.float32)
                  ).astype(jnp.bfloat16),
        "fc7_b": jnp.zeros((REP,), jnp.float32),
        "proj_w": (s * jax.random.normal(ks[3], (REP, DIM), jnp.float32)
                   ).astype(jnp.bfloat16),
        "proj_b": jnp.zeros((DIM,), jnp.float32),
    }


def image_encoder_rcnn_forward(params, images):
    """images: (B, C_IN, H, W) NCHW -> (B, R, DIM)."""
    # 1) transform: mean-subtract fuses into the im2col gather; 1/std is folded
    #    into the conv-stem weights (no separate normalization kernel).
    # TODO(synk): GeneralizedRCNNTransform also resizes to min_size=800; only
    # the normalization is implemented here.
    centered = images - IMAGENET_MEAN.reshape(1, C_IN, 1, 1)

    # 2) backbone conv stem (conv-as-matmul, channel-last).
    # TODO(synk): the full ResNet50+FPN backbone is not reproduced.
    patches = _im2col_3x3_s2(centered)                               # (512, 32)

    # 3) rpn -> proposals.
    # TODO(synk): RPN objectness / anchor decoding / NMS not implemented; the
    # fixed deterministic proposal boxes are baked into POOL_MAT (a real,
    # data-dependent RPN would need scalar-prefetch box indices instead).

    # 2+4) conv stem + ROI pooling + box_head (TwoMLPHead) + proj, fused into
    #      ONE pallas_call; the feature map never leaves VMEM.
    out = fused_forward(patches, params["conv_w"], params["conv_b"], POOL_MAT,
                        params["fc6_w"], params["fc6_b"],
                        params["fc7_w"], params["fc7_b"],
                        params["proj_w"], params["proj_b"])          # (B*R, DIM)
    return out.reshape(B, R, DIM)


# --------------------------------- main --------------------------------------
if __name__ == "__main__":
    root = jax.random.PRNGKey(0)
    k_img, k_par = jax.random.split(root)
    images = jax.random.uniform(k_img, (B, C_IN, H, W), dtype=jnp.float32)
    params = init_params(k_par)

    fwd = jax.jit(image_encoder_rcnn_forward)
    out = jax.block_until_ready(fwd(params, images))

    assert out.shape == (B, R, DIM), out.shape
    assert out.dtype == jnp.float32
    assert bool(jnp.all(jnp.isfinite(out)))
    print("KERNEL_OK")
</pallas_src>

<mosaic_0001>
module attributes {stable_mosaic.version = 11 : i64} {
  func.func @_fused_kernel(%arg0: i32, %arg1: memref<512x32xf32, #tpu.memory_space<vmem>>, %arg2: memref<32x128xbf16, #tpu.memory_space<vmem>>, %arg3: memref<1x128xf32, #tpu.memory_space<vmem>>, %arg4: memref<256x512xbf16, #tpu.memory_space<vmem>>, %arg5: memref<2048x256xbf16, #tpu.memory_space<vmem>>, %arg6: memref<1x256xf32, #tpu.memory_space<vmem>>, %arg7: memref<256x256xbf16, #tpu.memory_space<vmem>>, %arg8: memref<1x256xf32, #tpu.memory_space<vmem>>, %arg9: memref<256x768xbf16, #tpu.memory_space<vmem>>, %arg10: memref<1x768xf32, #tpu.memory_space<vmem>>, %arg11: memref<16x768xf32, #tpu.memory_space<vmem>>) attributes {dimension_semantics = [#tpu.dimension_semantics<arbitrary>], iteration_bounds = array<i64: 1>, scalar_prefetch = 0 : i64, scratch_operands = 0 : i64, tpu.core_type = #tpu.core_type<tc>, window_params = [{pipeline_mode = #tpu.pipeline_mode<synchronous>, transform_indices = @transform_0, window_bounds = array<i64: 512, 32>}, {pipeline_mode = #tpu.pipeline_mode<synchronous>, transform_indices = @transform_1, window_bounds = array<i64: 32, 128>}, {pipeline_mode = #tpu.pipeline_mode<synchronous>, transform_indices = @transform_2, window_bounds = array<i64: 1, 128>}, {pipeline_mode = #tpu.pipeline_mode<synchronous>, transform_indices = @transform_3, window_bounds = array<i64: 256, 512>}, {pipeline_mode = #tpu.pipeline_mode<synchronous>, transform_indices = @transform_4, window_bounds = array<i64: 2048, 256>}, {pipeline_mode = #tpu.pipeline_mode<synchronous>, transform_indices = @transform_5, window_bounds = array<i64: 1, 256>}, {pipeline_mode = #tpu.pipeline_mode<synchronous>, transform_indices = @transform_6, window_bounds = array<i64: 256, 256>}, {pipeline_mode = #tpu.pipeline_mode<synchronous>, transform_indices = @transform_7, window_bounds = array<i64: 1, 256>}, {pipeline_mode = #tpu.pipeline_mode<synchronous>, transform_indices = @transform_8, window_bounds = array<i64: 256, 768>}, {pipeline_mode = #tpu.pipeline_mode<synchronous>, transform_indices = @transform_9, window_bounds = array<i64: 1, 768>}, {pipeline_mode = #tpu.pipeline_mode<synchronous>, transform_indices = @transform_10, window_bounds = array<i64: 16, 768>}]} {
    %c0 = arith.constant 0 : index
    %c0_0 = arith.constant 0 : index
    %0 = vector.load %arg1[%c0, %c0_0] : memref<512x32xf32, #tpu.memory_space<vmem>>, vector<512x32xf32>
    %c0_1 = arith.constant 0 : index
    %c0_2 = arith.constant 0 : index
    %1 = vector.load %arg2[%c0_1, %c0_2] : memref<32x128xbf16, #tpu.memory_space<vmem>>, vector<32x128xbf16>
    %cst = arith.constant dense<0.000000e+00> : vector<512x128xf32>
    %2 = tpu.matmul %0, %1, %cst {dimension_numbers = #tpu.dot_dimension_numbers<[1], [0], [0], [1], [0, 0, 1, 1], [], []>} : vector<512x32xf32>, vector<32x128xbf16>, vector<512x128xf32> -> vector<512x128xf32>
    %c0_3 = arith.constant 0 : index
    %c0_4 = arith.constant 0 : index
    %3 = vector.load %arg3[%c0_3, %c0_4] : memref<1x128xf32, #tpu.memory_space<vmem>>, vector<1x128xf32>
    %4 = vector.broadcast %3 : vector<1x128xf32> to vector<512x128xf32>
    %5 = arith.addf %2, %4 : vector<512x128xf32>
    %cst_5 = arith.constant 0.000000e+00 : f32
    %6 = vector.broadcast %cst_5 : f32 to vector<512x128xf32>
    %7 = arith.maximumf %5, %6 : vector<512x128xf32>
    %c0_6 = arith.constant 0 : index
    %c0_7 = arith.constant 0 : index
    %8 = vector.load %arg4[%c0_6, %c0_7] : memref<256x512xbf16, #tpu.memory_space<vmem>>, vector<256x512xbf16>
    %cst_8 = arith.constant dense<0.000000e+00> : vector<256x128xf32>
    %9 = tpu.matmul %8, %7, %cst_8 {dimension_numbers = #tpu.dot_dimension_numbers<[1], [0], [0], [1], [0, 0, 1, 1], [], []>} : vector<256x512xbf16>, vector<512x128xf32>, vector<256x128xf32> -> vector<256x128xf32>
    %10 = vector.extract_strided_slice %9 {offsets = [0, 0], sizes = [16, 128], strides = [1, 1]} : vector<256x128xf32> to vector<16x128xf32>
    %11 = vector.extract_strided_slice %9 {offsets = [16, 0], sizes = [16, 128], strides = [1, 1]} : vector<256x128xf32> to vector<16x128xf32>
    %12 = vector.extract_strided_slice %9 {offsets = [32, 0], sizes = [16, 128], strides = [1, 1]} : vector<256x128xf32> to vector<16x128xf32>
    %13 = vector.extract_strided_slice %9 {offsets = [48, 0], sizes = [16, 128], strides = [1, 1]} : vector<256x128xf32> to vector<16x128xf32>
    %14 = vector.extract_strided_slice %9 {offsets = [64, 0], sizes = [16, 128], strides = [1, 1]} : vector<256x128xf32> to vector<16x128xf32>
    %15 = vector.extract_strided_slice %9 {offsets = [80, 0], sizes = [16, 128], strides = [1, 1]} : vector<256x128xf32> to vector<16x128xf32>
    %16 = vector.extract_strided_slice %9 {offsets = [96, 0], sizes = [16, 128], strides = [1, 1]} : vector<256x128xf32> to vector<16x128xf32>
    %17 = vector.extract_strided_slice %9 {offsets = [112, 0], sizes = [16, 128], strides = [1, 1]} : vector<256x128xf32> to vector<16x128xf32>
    %18 = vector.extract_strided_slice %9 {offsets = [128, 0], sizes = [16, 128], strides = [1, 1]} : vector<256x128xf32> to vector<16x128xf32>
    %19 = vector.extract_strided_slice %9 {offsets = [144, 0], sizes = [16, 128], strides = [1, 1]} : vector<256x128xf32> to vector<16x128xf32>
    %20 = vector.extract_strided_slice %9 {offsets = [160, 0], sizes = [16, 128], strides = [1, 1]} : vector<256x128xf32> to vector<16x128xf32>
    %21 = vector.extract_strided_slice %9 {offsets = [176, 0], sizes = [16, 128], strides = [1, 1]} : vector<256x128xf32> to vector<16x128xf32>
    %22 = vector.extract_strided_slice %9 {offsets = [192, 0], sizes = [16, 128], strides = [1, 1]} : vector<256x128xf32> to vector<16x128xf32>
    %23 = vector.extract_strided_slice %9 {offsets = [208, 0], sizes = [16, 128], strides = [1, 1]} : vector<256x128xf32> to vector<16x128xf32>
    %24 = vector.extract_strided_slice %9 {offsets = [224, 0], sizes = [16, 128], strides = [1, 1]} : vector<256x128xf32> to vector<16x128xf32>
    %25 = vector.extract_strided_slice %9 {offsets = [240, 0], sizes = [16, 128], strides = [1, 1]} : vector<256x128xf32> to vector<16x128xf32>
    %26 = tpu.concatenate %10, %11, %12, %13, %14, %15, %16, %17, %18, %19, %20, %21, %22, %23, %24, %25 in 1 : vector<16x128xf32>, vector<16x128xf32>, vector<16x128xf32>, vector<16x128xf32>, vector<16x128xf32>, vector<16x128xf32>, vector<16x128xf32>, vector<16x128xf32>, vector<16x128xf32>, vector<16x128xf32>, vector<16x128xf32>, vector<16x128xf32>, vector<16x128xf32>, vector<16x128xf32>, vector<16x128xf32>, vector<16x128xf32> -> vector<16x2048xf32>
    %c0_9 = arith.constant 0 : index
    %c0_10 = arith.constant 0 : index
    %27 = vector.load %arg5[%c0_9, %c0_10] : memref<2048x256xbf16, #tpu.memory_space<vmem>>, vector<2048x256xbf16>
    %cst_11 = arith.constant dense<0.000000e+00> : vector<16x256xf32>
    %28 = tpu.matmul %26, %27, %cst_11 {dimension_numbers = #tpu.dot_dimension_numbers<[1], [0], [0], [1], [0, 0, 1, 1], [], []>} : vector<16x2048xf32>, vector<2048x256xbf16>, vector<16x256xf32> -> vector<16x256xf32>
    %c0_12 = arith.constant 0 : index
    %c0_13 = arith.constant 0 : index
    %29 = vector.load %arg6[%c0_12, %c0_13] : memref<1x256xf32, #tpu.memory_space<vmem>>, vector<1x256xf32>
    %30 = vector.broadcast %29 : vector<1x256xf32> to vector<16x256xf32>
    %31 = arith.addf %28, %30 : vector<16x256xf32>
    %cst_14 = arith.constant 0.000000e+00 : f32
    %32 = vector.broadcast %cst_14 : f32 to vector<16x256xf32>
    %33 = arith.maximumf %31, %32 : vector<16x256xf32>
    %c0_15 = arith.constant 0 : index
    %c0_16 = arith.constant 0 : index
    %34 = vector.load %arg7[%c0_15, %c0_16] : memref<256x256xbf16, #tpu.memory_space<vmem>>, vector<256x256xbf16>
    %cst_17 = arith.constant dense<0.000000e+00> : vector<16x256xf32>
    %35 = tpu.matmul %33, %34, %cst_17 {dimension_numbers = #tpu.dot_dimension_numbers<[1], [0], [0], [1], [0, 0, 1, 1], [], []>} : vector<16x256xf32>, vector<256x256xbf16>, vector<16x256xf32> -> vector<16x256xf32>
    %c0_18 = arith.constant 0 : index
    %c0_19 = arith.constant 0 : index
    %36 = vector.load %arg8[%c0_18, %c0_19] : memref<1x256xf32, #tpu.memory_space<vmem>>, vector<1x256xf32>
    %37 = vector.broadcast %36 : vector<1x256xf32> to vector<16x256xf32>
    %38 = arith.addf %35, %37 : vector<16x256xf32>
    %cst_20 = arith.constant 0.000000e+00 : f32
    %39 = vector.broadcast %cst_20 : f32 to vector<16x256xf32>
    %40 = arith.maximumf %38, %39 : vector<16x256xf32>
    %c0_21 = arith.constant 0 : index
    %c0_22 = arith.constant 0 : index
    %41 = vector.load %arg9[%c0_21, %c0_22] : memref<256x768xbf16, #tpu.memory_space<vmem>>, vector<256x768xbf16>
    %cst_23 = arith.constant dense<0.000000e+00> : vector<16x768xf32>
    %42 = tpu.matmul %40, %41, %cst_23 {dimension_numbers = #tpu.dot_dimension_numbers<[1], [0], [0], [1], [0, 0, 1, 1], [], []>} : vector<16x256xf32>, vector<256x768xbf16>, vector<16x768xf32> -> vector<16x768xf32>
    %c0_24 = arith.constant 0 : index
    %c0_25 = arith.constant 0 : index
    %43 = vector.load %arg10[%c0_24, %c0_25] : memref<1x768xf32, #tpu.memory_space<vmem>>, vector<1x768xf32>
    %44 = vector.broadcast %43 : vector<1x768xf32> to vector<16x768xf32>
    %45 = arith.addf %42, %44 : vector<16x768xf32>
    %c0_26 = arith.constant 0 : index
    %c0_27 = arith.constant 0 : index
    %46 = vector.load %arg11[%c0_26, %c0_27] : memref<16x768xf32, #tpu.memory_space<vmem>>, vector<16x768xf32>
    tpu.vector_store %arg11[%c0_26, %c0_27], %45 {strides = array<i32>} : memref<16x768xf32, #tpu.memory_space<vmem>>, vector<16x768xf32>,
    return
  }
  func.func @transform_0(%arg0: i32) -> (i32, i32) {
    %c0_i32 = arith.constant 0 : i32
    %c0_i32_0 = arith.constant 0 : i32
    %c0_i32_1 = arith.constant 0 : i32
    return %c0_i32, %c0_i32_0 : i32, i32
  }
  func.func @transform_1(%arg0: i32) -> (i32, i32) {
    %c0_i32 = arith.constant 0 : i32
    %c0_i32_0 = arith.constant 0 : i32
    %c0_i32_1 = arith.constant 0 : i32
    return %c0_i32, %c0_i32_0 : i32, i32
  }
  func.func @transform_2(%arg0: i32) -> (i32, i32) {
    %c0_i32 = arith.constant 0 : i32
    %c0_i32_0 = arith.constant 0 : i32
    %c0_i32_1 = arith.constant 0 : i32
    return %c0_i32, %c0_i32_0 : i32, i32
  }
  func.func @transform_3(%arg0: i32) -> (i32, i32) {
    %c0_i32 = arith.constant 0 : i32
    %c0_i32_0 = arith.constant 0 : i32
    %c0_i32_1 = arith.constant 0 : i32
    return %c0_i32, %c0_i32_0 : i32, i32
  }
  func.func @transform_4(%arg0: i32) -> (i32, i32) {
    %c0_i32 = arith.constant 0 : i32
    %c0_i32_0 = arith.constant 0 : i32
    %c0_i32_1 = arith.constant 0 : i32
    return %c0_i32, %c0_i32_0 : i32, i32
  }
  func.func @transform_5(%arg0: i32) -> (i32, i32) {
    %c0_i32 = arith.constant 0 : i32
    %c0_i32_0 = arith.constant 0 : i32
    %c0_i32_1 = arith.constant 0 : i32
    return %c0_i32, %c0_i32_0 : i32, i32
  }
  func.func @transform_6(%arg0: i32) -> (i32, i32) {
    %c0_i32 = arith.constant 0 : i32
    %c0_i32_0 = arith.constant 0 : i32
    %c0_i32_1 = arith.constant 0 : i32
    return %c0_i32, %c0_i32_0 : i32, i32
  }
  func.func @transform_7(%arg0: i32) -> (i32, i32) {
    %c0_i32 = arith.constant 0 : i32
    %c0_i32_0 = arith.constant 0 : i32
    %c0_i32_1 = arith.constant 0 : i32
    return %c0_i32, %c0_i32_0 : i32, i32
  }
  func.func @transform_8(%arg0: i32) -> (i32, i32) {
    %c0_i32 = arith.constant 0 : i32
    %c0_i32_0 = arith.constant 0 : i32
    %c0_i32_1 = arith.constant 0 : i32
    return %c0_i32, %c0_i32_0 : i32, i32
  }
  func.func @transform_9(%arg0: i32) -> (i32, i32) {
    %c0_i32 = arith.constant 0 : i32
    %c0_i32_0 = arith.constant 0 : i32
    %c0_i32_1 = arith.constant 0 : i32
    return %c0_i32, %c0_i32_0 : i32, i32
  }
  func.func @transform_10(%arg0: i32) -> (i32, i32) {
    %c0_i32 = arith.constant 0 : i32
    %c0_i32_0 = arith.constant 0 : i32
    %c0_i32_1 = arith.constant 0 : i32
    return %c0_i32, %c0_i32_0 : i32, i32
  }
}

</mosaic_0001>

<bundles_post_ra>
// kernel: image_encoder_rcnn_forward.1
= control target key start
LH: loop header
LB: loop body
LE: loop exit
PB: predicated region body
PF: predicated region fallthrough
CT: control target
= control target key end

     0   :  { %s10413_s0 = inlined_call_operand.vmem [shape: f32[512,32], index: 0, kind: input, shape index: {}]   ;;  %s10414_s1 = inlined_call_operand.vmem [shape: bf16[32,128], index: 1, kind: input, shape index: {}]   ;;  %s10415_s2 = inlined_call_operand.vmem [shape: f32[1,128], index: 2, kind: input, shape index: {}]   ;;  %s10416_s3 = inlined_call_operand.vmem [shape: bf16[256,512], index: 3, kind: input, shape index: {}]   ;;  %s10417_s4 = inlined_call_operand.vmem [shape: bf16[2048,256], index: 4, kind: input, shape index: {}]   ;;  %s10418_s5 = inlined_call_operand.vmem [shape: f32[1,256], index: 5, kind: input, shape index: {}]   ;;  %s10419_s6 = inlined_call_operand.vmem [shape: bf16[256,256], index: 6, kind: input, shape index: {}]   ;;  %s10420_s7 = inlined_call_operand.vmem [shape: f32[1,256], index: 7, kind: input, shape index: {}]   ;;  %s10421_s8 = inlined_call_operand.vmem [shape: bf16[256,768], index: 8, kind: input, shape index: {}]   ;;  %s10422_s9 = inlined_call_operand.vmem [shape: f32[1,768], index: 9, kind: input, shape index: {}]   ;;  %s10423_s10 = inlined_call_operand.hbm [shape: f32[16,768], index: 10, kind: output, shape index: {}]  }
   0x1   :  { %v6304_v0 = vld [vmem:[%s10414_s1 + $0x8] sm:$0xff]  ;;  %v6303_v1 = vld [vmem:[%s10414_s1] sm:$0xff] }
   0x2   :  { %320 = vmatpush.bf16.msra.mxu0 %v6304_v0 }
   0x3   :  { %15 = vsyncpa [#allocation3], 0  ;;  %v37_v2 = vld [vmem:[%s10413_s0] sm:$0xff]  ;;  %vm121_vm0 = vcmask 261120   ;;  %v38_v3 = vld [vmem:[%s10413_s0 + $0x8] sm:$0xff]  ;;  %s6784_s20 = smov 768  }
   0x4   :  { %v39_v4 = vld [vmem:[%s10413_s0 + $0x10] sm:$0xff]  ;;  %v40_v5 = vld [vmem:[%s10413_s0 + $0x18] sm:$0xff]  ;;  %v41_v6 = vld [vmem:[%s10413_s0 + $0x20] sm:$0xff]  ;;  %s6785_s21 = smov 48  }
   0x5   :  { %v42_v7 = vld [vmem:[%s10413_s0 + $0x28] sm:$0xff]  ;;  %v43_v8 = vld [vmem:[%s10413_s0 + $0x30] sm:$0xff]  ;;  %v44_v9 = vld [vmem:[%s10413_s0 + $0x38] sm:$0xff] }
   0x6   :  { %321 = vmatpush.bf16.msra.mxu0 %v6303_v1  ;;  %v45_v10 = vld [vmem:[%s10413_s0 + $0x40] sm:$0xff]  ;;  %v46_v11 = vld [vmem:[%s10413_s0 + $0x48] sm:$0xff]  ;;  %v47_v12 = vld [vmem:[%s10413_s0 + $0x50] sm:$0xff] }
   0x7   :  { %v48_v13 = vld [vmem:[%s10413_s0 + $0x58] sm:$0xff]  ;;  %v49_v14 = vld [vmem:[%s10413_s0 + $0x60] sm:$0xff]  ;;  %v50_v15 = vld [vmem:[%s10413_s0 + $0x68] sm:$0xff] }
   0x8   :  { %v51_v16 = vld [vmem:[%s10413_s0 + $0x70] sm:$0xff]  ;;  %v52_v17 = vld [vmem:[%s10413_s0 + $0x78] sm:$0xff]  ;;  %v53_v19 = vld [vmem:[%s10413_s0 + $0x80] sm:$0xff] }
   0x9   :  { %4447 = vmatmul.msk.f32.vlgmr.msra.gmra.mxu0 %vm121_vm0, %v37_v2  ;;  %v54_v21 = vld [vmem:[%s10413_s0 + $0x88] sm:$0xff]  ;;  %v55_v23 = vld [vmem:[%s10413_s0 + $0x90] sm:$0xff]  ;;  %v56_v25 = vld [vmem:[%s10413_s0 + $0x98] sm:$0xff] }
   0xa   :  { %v57_v27 = vld [vmem:[%s10413_s0 + $0xa0] sm:$0xff]  ;;  %v58_v29 = vld [vmem:[%s10413_s0 + $0xa8] sm:$0xff]  ;;  %v59_v31 = vld [vmem:[%s10413_s0 + $0xb0] sm:$0xff] }
   0xb   :  { %v60_v33 = vld [vmem:[%s10413_s0 + $0xb8] sm:$0xff]  ;;  %v61_v35 = vld [vmem:[%s10413_s0 + $0xc0] sm:$0xff]  ;;  %v62_v37 = vld [vmem:[%s10413_s0 + $0xc8] sm:$0xff] }
   0xc   :  { %v63_v39 = vld [vmem:[%s10413_s0 + $0xd0] sm:$0xff]  ;;  %v64_v41 = vld [vmem:[%s10413_s0 + $0xd8] sm:$0xff]  ;;  %v65_v43 = vld [vmem:[%s10413_s0 + $0xe0] sm:$0xff] }
   0xd   :  { %v66_v45 = vld [vmem:[%s10413_s0 + $0xe8] sm:$0xff]  ;;  %v67_v47 = vld [vmem:[%s10413_s0 + $0xf0] sm:$0xff]  ;;  %v6986_v48 = vld [vmem:[%s10415_s2] ss:$0 sm:$0xff]  ;;  %s4427_s2 = sshll.u32 %s10423_s10, 4  ;;  %s4428_s2 = int_to_ptr.hbm [resolvable:$true] %s4427_s2 }
   0xe   :  { %v68_v50 = vld [vmem:[%s10413_s0 + $0xf8] sm:$0xff]  ;;  %v69_v60 = vld [vmem:[%s10413_s0 + $0x100] sm:$0xff] }
  0x11   :  { %4448 = vmatmul.msk.f32.gmra.mxu0 %vm121_vm0, %v38_v3 }
  0x19   :  { %4449 = vmatmul.msk.f32.gmra.mxu0 %vm121_vm0, %v39_v4 }
  0x21   :  { %4450 = vmatmul.msk.f32.gmra.mxu0 %vm121_vm0, %v40_v5 }
  0x29   :  { %4451 = vmatmul.msk.f32.gmra.mxu0 %vm121_vm0, %v41_v6  ;;  %v70_v6 = vld [vmem:[%s10413_s0 + $0x108] sm:$0xff] }
  0x31   :  { %4452 = vmatmul.msk.f32.gmra.mxu0 %vm121_vm0, %v42_v7 }
  0x39   :  { %4453 = vmatmul.msk.f32.gmra.mxu0 %vm121_vm0, %v43_v8 }
  0x41   :  { %4454 = vmatmul.msk.f32.gmra.mxu0 %vm121_vm0, %v44_v9 }
  0x49   :  { %4455 = vmatmul.msk.f32.gmra.mxu0 %vm121_vm0, %v45_v10 }
  0x51   :  { %4456 = vmatmul.msk.f32.gmra.mxu0 %vm121_vm0, %v46_v11 }
  0x59   :  { %4457 = vmatmul.msk.f32.gmra.mxu0 %vm121_vm0, %v47_v12 }
  0x61   :  { %4458 = vmatmul.msk.f32.gmra.mxu0 %vm121_vm0, %v48_v13 }
  0x69   :  { %4459 = vmatmul.msk.f32.gmra.mxu0 %vm121_vm0, %v49_v14 }
  0x71   :  { %4460 = vmatmul.msk.f32.gmra.mxu0 %vm121_vm0, %v50_v15 }
  0x79   :  { %4461 = vmatmul.msk.f32.gmra.mxu0 %vm121_vm0, %v51_v16  ;;  %v71_v16 = vld [vmem:[%s10413_s0 + $0x110] sm:$0xff] }
  0x81   :  { %4462 = vmatmul.msk.f32.gmra.mxu0 %vm121_vm0, %v52_v17 }
  0x86   :  { %v6911_v18 = vpop.f32.mrf.mxu0 }
  0x89   :  { %4463 = vmatmul.msk.f32.gmra.mxu0 %vm121_vm0, %v53_v19 }
  0x8e   :  { %v6917_v20 = vpop.f32.mrf.mxu0 }
  0x91   :  { %4464 = vmatmul.msk.f32.gmra.mxu0 %vm121_vm0, %v54_v21  ;;  %v327_v21 = vadd.f32 %v6986_v48, %v6917_v20 }
  0x96   :  { %v6923_v22 = vpop.f32.mrf.mxu0 }
  0x97   :  { %v330_v17 = vadd.f32 %v6986_v48, %v6923_v22  ;;  %v72_v22 = vld [vmem:[%s10413_s0 + $0x118] sm:$0xff] }
  0x99   :  { %4465 = vmatmul.msk.f32.gmra.mxu0 %vm121_vm0, %v55_v23 }
  0x9e   :  { %v6929_v24 = vpop.f32.mrf.mxu0 }
  0x9f   :  { %v333_v13 = vadd.f32 %v6986_v48, %v6929_v24  ;;  %v324_v24 = vadd.f32 %v6986_v48, %v6911_v18  ;;  %v73_v18 = vld [vmem:[%s10413_s0 + $0x120] sm:$0xff] }
  0xa1   :  { %4466 = vmatmul.msk.f32.gmra.mxu0 %vm121_vm0, %v56_v25  ;;  %v518_v23 = vmax.f32 %v333_v13, 0.0  ;;  %v517_v25 = vmax.f32 %v330_v17, 0.0 }
  0xa6   :  { %v6935_v26 = vpop.f32.mrf.mxu0 }
  0xa7   :  { %v336_v11 = vadd.f32 %v6986_v48, %v6935_v26  ;;  %v516_v26 = vmax.f32 %v327_v21, 0.0 }
  0xa9   :  { %4467 = vmatmul.msk.f32.gmra.mxu0 %vm121_vm0, %v57_v27  ;;  %v519_v19 = vmax.f32 %v336_v11, 0.0 }
  0xae   :  { %v6941_v28 = vpop.f32.mrf.mxu0 }
  0xaf   :  { %v339_v9 = vadd.f32 %v6986_v48, %v6941_v28  ;;  %v515_v28 = vmax.f32 %v324_v24, 0.0 }
  0xb1   :  { %4468 = vmatmul.msk.f32.gmra.mxu0 %vm121_vm0, %v58_v29  ;;  %v520_v14 = vmax.f32 %v339_v9, 0.0 }
  0xb6   :  { %v341_v30 = vpop.f32.mrf.mxu0 }
  0xb7   :  { %v342_v7 = vadd.f32 %v6986_v48, %v341_v30  ;;  %v74_v30 = vld [vmem:[%s10413_s0 + $0x128] sm:$0xff] }
  0xb9   :  { %4469 = vmatmul.msk.f32.gmra.mxu0 %vm121_vm0, %v59_v31  ;;  %v521_v12 = vmax.f32 %v342_v7, 0.0 }
  0xbe   :  { %v344_v32 = vpop.f32.mrf.mxu0 }
  0xbf   :  { %v345_v3 = vadd.f32 %v6986_v48, %v344_v32  ;;  %v75_v32 = vld [vmem:[%s10413_s0 + $0x130] sm:$0xff] }
  0xc1   :  { %4470 = vmatmul.msk.f32.gmra.mxu0 %vm121_vm0, %v60_v33  ;;  %v522_v10 = vmax.f32 %v345_v3, 0.0 }
  0xc6   :  { %v347_v34 = vpop.f32.mrf.mxu0 }
  0xc7   :  { %v348_v1 = vadd.f32 %v6986_v48, %v347_v34  ;;  %v76_v34 = vld [vmem:[%s10413_s0 + $0x138] sm:$0xff] }
  0xc9   :  { %4471 = vmatmul.msk.f32.gmra.mxu0 %vm121_vm0, %v61_v35  ;;  %v523_v8 = vmax.f32 %v348_v1, 0.0  ;;  %v85_v1 = vld [vmem:[%s10413_s0 + $0x180] sm:$0xff] }
  0xce   :  { %v350_v36 = vpop.f32.mrf.mxu0 }
  0xcf   :  { %v351_v63 = vadd.f32 %v6986_v48, %v350_v36  ;;  %v77_v36 = vld [vmem:[%s10413_s0 + $0x140] sm:$0xff] }
  0xd1   :  { %4472 = vmatmul.msk.f32.gmra.mxu0 %vm121_vm0, %v62_v37  ;;  %v524_v4 = vmax.f32 %v351_v63, 0.0 }
  0xd6   :  { %v353_v38 = vpop.f32.mrf.mxu0 }
  0xd7   :  { %v354_v61 = vadd.f32 %v6986_v48, %v353_v38  ;;  %v78_v38 = vld [vmem:[%s10413_s0 + $0x148] sm:$0xff] }
  0xd9   :  { %4473 = vmatmul.msk.f32.gmra.mxu0 %vm121_vm0, %v63_v39  ;;  %v525_v2 = vmax.f32 %v354_v61, 0.0 }
  0xde   :  { %v356_v40 = vpop.f32.mrf.mxu0 }
  0xdf   :  { %v357_v57 = vadd.f32 %v6986_v48, %v356_v40  ;;  %v79_v40 = vld [vmem:[%s10413_s0 + $0x150] sm:$0xff] }
  0xe1   :  { %4474 = vmatmul.msk.f32.gmra.mxu0 %vm121_vm0, %v64_v41  ;;  %v526_v0 = vmax.f32 %v357_v57, 0.0 }
  0xe6   :  { %v359_v42 = vpop.f32.mrf.mxu0 }
  0xe7   :  { %v360_v55 = vadd.f32 %v6986_v48, %v359_v42  ;;  %v80_v42 = vld [vmem:[%s10413_s0 + $0x158] sm:$0xff] }
  0xe9   :  { %4475 = vmatmul.msk.f32.gmra.mxu0 %vm121_vm0, %v65_v43  ;;  %v527_v62 = vmax.f32 %v360_v55, 0.0 }
  0xee   :  { %v362_v44 = vpop.f32.mrf.mxu0 }
  0xef   :  { %v363_v53 = vadd.f32 %v6986_v48, %v362_v44  ;;  %v81_v44 = vld [vmem:[%s10413_s0 + $0x160] sm:$0xff] }
  0xf1   :  { %4476 = vmatmul.msk.f32.gmra.mxu0 %vm121_vm0, %v66_v45  ;;  %v528_v58 = vmax.f32 %v363_v53, 0.0 }
  0xf6   :  { %v365_v46 = vpop.f32.mrf.mxu0 }
  0xf7   :  { %v366_v51 = vadd.f32 %v6986_v48, %v365_v46  ;;  %v82_v46 = vld [vmem:[%s10413_s0 + $0x168] sm:$0xff] }
  0xf9   :  { %4477 = vmatmul.msk.f32.gmra.mxu0 %vm121_vm0, %v67_v47  ;;  %v529_v56 = vmax.f32 %v366_v51, 0.0  ;;  %v6307_v51 = vld [vmem:[%s10416_s3 + $0xc] sm:$0xf0] }
  0xfe   :  { %v368_v49 = vpop.f32.mrf.mxu0 }
  0xff   :  { %v369_v52 = vadd.f32 %v6986_v48, %v368_v49  ;;  %v83_v49 = vld [vmem:[%s10413_s0 + $0x170] sm:$0xff] }
 0x101   :  { %4478 = vmatmul.msk.f32.gmra.mxu0 %vm121_vm0, %v68_v50  ;;  %v530_v54 = vmax.f32 %v369_v52, 0.0  ;;  %v4513_v50 = vld [vmem:[%s10416_s3] sm:$0xf] }
 0x102   :  { %v4514_v52 = vor.u32 %v6307_v51, %v4513_v50 }
 0x103   :  { %963 = vmatpush.msra.mxu1 %v530_v54  ;;  %v84_v54 = vld [vmem:[%s10413_s0 + $0x178] sm:$0xff] }
 0x105   :  { %964 = vmatpush.msra.mxu1 %v529_v56 }
 0x106   :  { %v6997_v59 = vpop.f32.mrf.mxu0 }
 0x107   :  { %965 = vmatpush.msra.mxu1 %v528_v58 }
 0x109   :  { %4479 = vmatmul.msk.f32.gmra.mxu0 %vm121_vm0, %v69_v60  ;;  %966 = vmatpush.msra.mxu1 %v527_v62 }
 0x10b   :  { %967 = vmatpush.msra.mxu1 %v526_v0 }
 0x10d   :  { %968 = vmatpush.msra.mxu1 %v525_v2 }
 0x10e   :  { %v7007_v5 = vpop.f32.mrf.mxu0 }
 0x10f   :  { %969 = vmatpush.msra.mxu1 %v524_v4  ;;  %v4529_v4 = vld [vmem:[%s10416_s3 + $0x20] sm:$0xf] }
 0x111   :  { %4480 = vmatmul.msk.f32.gmra.mxu0 %vm121_vm0, %v70_v6  ;;  %970 = vmatpush.msra.mxu1 %v523_v8  ;;  %v6311_v6 = vld [vmem:[%s10416_s3 + $0x2c] sm:$0xf0] }
 0x112   :  { %v4530_v7 = vor.u32 %v6311_v6, %v4529_v4  ;;  %v6317_v4 = vld [vmem:[%s10416_s3 + $0x64] sm:$0xf]  ;;  %v4563_v6 = vld [vmem:[%s10416_s3 + $0x70] sm:$0xf0] }
 0x113   :  { %971 = vmatpush.msra.mxu1 %v522_v10 }
 0x115   :  { %972 = vmatpush.msra.mxu1 %v521_v12 }
 0x116   :  { %v7020_v15 = vpop.f32.mrf.mxu0 }
 0x117   :  { %973 = vmatpush.msra.mxu1 %v520_v14 }
 0x119   :  { %4481 = vmatmul.msk.f32.gmra.mxu0 %vm121_vm0, %v71_v16  ;;  %974 = vmatpush.msra.mxu1 %v519_v19  ;;  %v86_v16 = vld [vmem:[%s10413_s0 + $0x188] sm:$0xff] }
 0x11b   :  { %975 = vmatpush.msra.mxu1 %v518_v23 }
 0x11d   :  { %976 = vmatpush.msra.mxu1 %v517_v25 }
 0x11e   :  { %v7032_v27 = vpop.f32.mrf.mxu0 }
 0x11f   :  { %977 = vmatpush.msra.mxu1 %v516_v26  ;;  %v381_v26 = vadd.f32 %v6986_v48, %v7032_v27  ;;  %v6315_v27 = vld [vmem:[%s10416_s3 + $0x4c] sm:$0xf0] }
 0x121   :  { %4482 = vmatmul.msk.f32.gmra.mxu0 %vm121_vm0, %v72_v22  ;;  %978 = vmatpush.msra.mxu1 %v515_v28 }
 0x122   :  { %979 = vmatmul.bf16.vlgmr.msra.gmra.mxu1 %v4514_v52  ;;  %v91_v52 = vld [vmem:[%s10413_s0 + $0x1b0] sm:$0xff] }
 0x126   :  { %v7038_v20 = vpop.f32.mrf.mxu0 }
 0x127   :  { %v384_v24 = vadd.f32 %v6986_v48, %v7038_v20  ;;  %v4545_v20 = vld [vmem:[%s10416_s3 + $0x40] sm:$0xf] }
 0x129   :  { %4483 = vmatmul.msk.f32.gmra.mxu0 %vm121_vm0, %v73_v18  ;;  %v87_v18 = vld [vmem:[%s10413_s0 + $0x190] sm:$0xff] }
 0x12e   :  { %v7044_v29 = vpop.f32.mrf.mxu0 }
 0x12f   :  { %v387_v21 = vadd.f32 %v6986_v48, %v7044_v29  ;;  %v378_v29 = vadd.f32 %v6986_v48, %v7020_v15  ;;  %v372_v15 = vadd.f32 %v6986_v48, %v6997_v59 }
 0x131   :  { %4484 = vmatmul.msk.f32.gmra.mxu0 %vm121_vm0, %v74_v30  ;;  %v536_v22 = vmax.f32 %v387_v21, 0.0  ;;  %v535_v30 = vmax.f32 %v384_v24, 0.0  ;;  %v531_v59 = vmax.f32 %v372_v15, 0.0  ;;  %v99_v15 = vld [vmem:[%s10413_s0 + $0x1f0] sm:$0xff] }
 0x132   :  { %984 = vmatmul.bf16.gmra.mxu1 %v4530_v7 }
 0x136   :  { %v7050_v31 = vpop.f32.mrf.mxu0 }
 0x137   :  { %v390_v17 = vadd.f32 %v6986_v48, %v7050_v31  ;;  %v4546_v31 = vor.u32 %v6315_v27, %v4545_v20  ;;  %v4595_v20 = vld [vmem:[%s10416_s3 + $0xb0] sm:$0xf0] }
 0x139   :  { %4485 = vmatmul.msk.f32.gmra.mxu0 %vm121_vm0, %v75_v32  ;;  %v537_v25 = vmax.f32 %v390_v17, 0.0  ;;  %v375_v32 = vadd.f32 %v6986_v48, %v7007_v5  ;;  %v6321_v17 = vld [vmem:[%s10416_s3 + $0x84] sm:$0xf] }
 0x13b   :  { %v532_v5 = vmax.f32 %v375_v32, 0.0 }
 0x13e   :  { %v392_v33 = vpop.f32.mrf.mxu0 }
 0x13f   :  { %v393_v12 = vadd.f32 %v6986_v48, %v392_v33  ;;  %v534_v33 = vmax.f32 %v381_v26, 0.0  ;;  %v97_v26 = vld [vmem:[%s10413_s0 + $0x1e0] sm:$0xff] }
 0x141   :  { %4486 = vmatmul.msk.f32.gmra.mxu0 %vm121_vm0, %v76_v34  ;;  %v538_v23 = vmax.f32 %v393_v12, 0.0  ;;  %v533_v34 = vmax.f32 %v378_v29, 0.0  ;;  %v4609_v12 = vld [vmem:[%s10416_s3 + $0xc0] sm:$0xf] }
 0x142   :  { %989 = vmatmul.bf16.gmra.mxu1 %v4546_v31  ;;  %v98_v31 = vld [vmem:[%s10413_s0 + $0x1e8] sm:$0xff] }
 0x146   :  { %v395_v35 = vpop.f32.mrf.mxu0 }
 0x147   :  { %v396_v10 = vadd.f32 %v6986_v48, %v395_v35  ;;  %v6305_v35 = vld [vmem:[%s10416_s3 + $0x4] sm:$0xf] }
 0x149   :  { %4487 = vmatmul.msk.f32.gmra.mxu0 %vm121_vm0, %v77_v36  ;;  %v539_v19 = vmax.f32 %v396_v10, 0.0  ;;  %v4515_v36 = vld [vmem:[%s10416_s3 + $0x10] sm:$0xf0] }
 0x14e   :  { %v398_v37 = vpop.f32.mrf.mxu0 }
 0x14f   :  { %v399_v8 = vadd.f32 %v6986_v48, %v398_v37 }
 0x151   :  { %4488 = vmatmul.msk.f32.gmra.mxu0 %vm121_vm0, %v78_v38  ;;  %v540_v13 = vmax.f32 %v399_v8, 0.0  ;;  %v88_v38 = vld [vmem:[%s10413_s0 + $0x198] sm:$0xff]  ;;  %v94_v8 = vld [vmem:[%s10413_s0 + $0x1c8] sm:$0xff] }
 0x156   :  { %v401_v39 = vpop.f32.mrf.mxu0 }
 0x157   :  { %v402_v2 = vadd.f32 %v6986_v48, %v401_v39  ;;  %v4518_v39 = vor.u32 %v6305_v35, %v4515_v36  ;;  %v4641_v35 = vld [vmem:[%s10416_s3 + $0x100] sm:$0xf]  ;;  %v6339_v36 = vld [vmem:[%s10416_s3 + $0x10c] sm:$0xf0] }
 0x159   :  { %4489 = vmatmul.msk.f32.gmra.mxu0 %vm121_vm0, %v79_v40  ;;  %v541_v11 = vmax.f32 %v402_v2, 0.0  ;;  %v6327_v2 = vld [vmem:[%s10416_s3 + $0xac] sm:$0xf0] }
 0x15e   :  { %v404_v41 = vpop.f32.mrf.mxu0 }
 0x15f   :  { %v405_v62 = vadd.f32 %v6986_v48, %v404_v41  ;;  %v89_v41 = vld [vmem:[%s10413_s0 + $0x1a0] sm:$0xff] }
 0x161   :  { %4490 = vmatmul.msk.f32.gmra.mxu0 %vm121_vm0, %v80_v42  ;;  %v542_v9 = vmax.f32 %v405_v62, 0.0  ;;  %v4561_v42 = vld [vmem:[%s10416_s3 + $0x60] sm:$0xf] }
 0x166   :  { %v407_v43 = vpop.f32.mrf.mxu0 }
 0x167   :  { %v408_v60 = vadd.f32 %v6986_v48, %v407_v43  ;;  %v6319_v43 = vld [vmem:[%s10416_s3 + $0x6c] sm:$0xf0] }
 0x169   :  { %4491 = vmatmul.msk.f32.gmra.mxu0 %vm121_vm0, %v81_v44  ;;  %v543_v3 = vmax.f32 %v408_v60, 0.0  ;;  %v4562_v44 = vor.u32 %v6319_v43, %v4561_v42  ;;  %v92_v60 = vld [vmem:[%s10413_s0 + $0x1b8] sm:$0xff] }
 0x16b   :  { %994 = vmatmul.bf16.gmra.mxu1 %v4562_v44 }
 0x16e   :  { %v410_v45 = vpop.f32.mrf.mxu0 }
 0x16f   :  { %v411_v57 = vadd.f32 %v6986_v48, %v410_v45  ;;  %v6309_v45 = vld [vmem:[%s10416_s3 + $0x24] sm:$0xf] }
 0x171   :  { %4492 = vmatmul.msk.f32.gmra.mxu0 %vm121_vm0, %v82_v46  ;;  %v544_v63 = vmax.f32 %v411_v57, 0.0  ;;  %v4531_v46 = vld [vmem:[%s10416_s3 + $0x30] sm:$0xf0] }
 0x172   :  { %v4534_v50 = vor.u32 %v6309_v45, %v4531_v46  ;;  %v4547_v57 = vld [vmem:[%s10416_s3 + $0x50] sm:$0xf0] }
 0x176   :  { %v413_v47 = vpop.f32.mrf.mxu0 }
 0x177   :  { %v414_v55 = vadd.f32 %v6986_v48, %v413_v47 }
 0x179   :  { %4493 = vmatmul.msk.f32.gmra.mxu0 %vm121_vm0, %v83_v49  ;;  %v545_v61 = vmax.f32 %v414_v55, 0.0  ;;  %v90_v49 = vld [vmem:[%s10413_s0 + $0x1a8] sm:$0xff] }
 0x17e   :  { %v416_v53 = vpop.f32.mrf.mxu0 }
 0x17f   :  { %v417_v56 = vadd.f32 %v6986_v48, %v416_v53  ;;  %v4577_v53 = vld [vmem:[%s10416_s3 + $0x80] sm:$0xf] }
 0x181   :  { %4494 = vmatmul.msk.f32.gmra.mxu0 %vm121_vm0, %v84_v54  ;;  %v546_v58 = vmax.f32 %v417_v56, 0.0  ;;  %v6323_v54 = vld [vmem:[%s10416_s3 + $0x8c] sm:$0xf0]  ;;  %v6313_v56 = vld [vmem:[%s10416_s3 + $0x44] sm:$0xf] }
 0x182   :  { %v4578_v55 = vor.u32 %v6323_v54, %v4577_v53 }
 0x183   :  { %1060 = vmatpush.msra.mxu2 %v546_v58 }
 0x184   :  { %999 = vmatmul.bf16.gmra.mxu1 %v4578_v55 }
 0x185   :  { %1061 = vmatpush.msra.mxu2 %v545_v61  ;;  %v4550_v61 = vor.u32 %v6313_v56, %v4547_v57 }
 0x186   :  { %v7103_v0 = vpop.f32.mrf.mxu0 }
 0x187   :  { %1062 = vmatpush.msra.mxu2 %v544_v63  ;;  %v93_v63 = vld [vmem:[%s10413_s0 + $0x1c0] sm:$0xff] }
 0x189   :  { %4495 = vmatmul.msk.f32.gmra.mxu0 %vm121_vm0, %v85_v1  ;;  %1063 = vmatpush.msra.mxu2 %v543_v3  ;;  %v4593_v1 = vld [vmem:[%s10416_s3 + $0xa0] sm:$0xf] }
 0x18a   :  { %v4594_v3 = vor.u32 %v6327_v2, %v4593_v1 }
 0x18b   :  { %1064 = vmatpush.msra.mxu2 %v542_v9  ;;  %v4566_v9 = vor.u32 %v6317_v4, %v4563_v6 }
 0x18d   :  { %1065 = vmatpush.msra.mxu2 %v541_v11  ;;  %v95_v11 = vld [vmem:[%s10413_s0 + $0x1d0] sm:$0xff] }
 0x18e   :  { %v7119_v14 = vpop.f32.mrf.mxu0 }
 0x18f   :  { %1066 = vmatpush.msra.mxu2 %v540_v13  ;;  %v6331_v13 = vld [vmem:[%s10416_s3 + $0xcc] sm:$0xf0] }
 0x191   :  { %4496 = vmatmul.msk.f32.gmra.mxu0 %vm121_vm0, %v86_v16  ;;  %1067 = vmatpush.msra.mxu2 %v539_v19  ;;  %v4610_v16 = vor.u32 %v6331_v13, %v4609_v12  ;;  %v4579_v19 = vld [vmem:[%s10416_s3 + $0x90] sm:$0xf0] }
 0x192   :  { %v4582_v24 = vor.u32 %v6321_v17, %v4579_v19 }
 0x193   :  { %1068 = vmatpush.msra.mxu2 %v538_v23  ;;  %v96_v23 = vld [vmem:[%s10413_s0 + $0x1d8] sm:$0xff] }
 0x194   :  { %1004 = vmatmul.bf16.gmra.mxu1 %v4594_v3 }
 0x195   :  { %1069 = vmatpush.msra.mxu2 %v537_v25 }
 0x196   :  { %v7133_v28 = vpop.f32.mrf.mxu0 }
 0x197   :  { %1070 = vmatpush.msra.mxu2 %v536_v22  ;;  %v4625_v22 = vld [vmem:[%s10416_s3 + $0xe0] sm:$0xf] }
 0x199   :  { %4497 = vmatmul.msk.f32.gmra.mxu0 %vm121_vm0, %v87_v18  ;;  %1071 = vmatpush.msra.mxu2 %v535_v30  ;;  %v6335_v18 = vld [vmem:[%s10416_s3 + $0xec] sm:$0xf0]  ;;  %v6325_v30 = vld [vmem:[%s10416_s3 + $0xa4] sm:$0xf] }
 0x19a   :  { %v4626_v29 = vor.u32 %v6335_v18, %v4625_v22  ;;  %v4598_v32 = vor.u32 %v6325_v30, %v4595_v20  ;;  %v6347_v22 = vld [vmem:[%s10416_s3 + $0x14c] sm:$0xf0]  ;;  %v423_v18 = vadd.f32 %v6986_v48, %v7119_v14  ;;  %v4521_v30 = vld [vmem:[%s10416_s3 + $0x8] sm:$0xf]  ;;  %v420_v20 = vadd.f32 %v6986_v48, %v7103_v0  ;;  %v6337_v14 = vld [vmem:[%s10416_s3 + $0x104] sm:$0xf] }
 0x19b   :  { %1072 = vmatpush.msra.mxu2 %v534_v33 }
 0x19c   :  { %v547_v0 = vmax.f32 %v420_v20, 0.0 }
 0x19d   :  { %1073 = vmatpush.msra.mxu2 %v533_v34 }
 0x19e   :  { %v7157_v37 = vpop.f32.mrf.mxu0 }
 0x19f   :  { %1074 = vmatpush.msra.mxu2 %v532_v5  ;;  %v7278_v34 = vpop.f32.mrf.mxu1  ;;  %v4642_v5 = vor.u32 %v6339_v36, %v4641_v35 }
 0x1a1   :  { %4498 = vmatmul.msk.f32.gmra.mxu0 %vm121_vm0, %v88_v38  ;;  %1075 = vmatpush.msra.mxu2 %v531_v59  ;;  %v6329_v38 = vld [vmem:[%s10416_s3 + $0xc4] sm:$0xf] }
 0x1a2   :  { %1076 = vmatmul.bf16.vlgmr.msra.gmra.mxu2 %v4518_v39  ;;  %v4611_v39 = vld [vmem:[%s10416_s3 + $0xd0] sm:$0xf0] }
 0x1a3   :  { %v4614_v42 = vor.u32 %v6329_v38, %v4611_v39 }
 0x1a4   :  { %1009 = vmatmul.bf16.gmra.mxu1 %v4610_v16 }
 0x1a6   :  { %v7163_v40 = vpop.f32.mrf.mxu0 }
 0x1a7   :  { %v7298_v45 = vpop.f32.mrf.mxu1 }
 0x1a9   :  { %4499 = vmatmul.msk.f32.gmra.mxu0 %vm121_vm0, %v89_v41  ;;  %v100_v41 = vld [vmem:[%s10413_s0 + $0x1f8] sm:$0xff] }
 0x1ae   :  { %v7181_v47 = vpop.f32.mrf.mxu0 }
 0x1af   :  { %v435_v17 = vadd.f32 %v6986_v48, %v7181_v47 }
 0x1b1   :  { %4500 = vmatmul.msk.f32.gmra.mxu0 %vm121_vm0, %v90_v49 }
 0x1b2   :  { %1081 = vmatmul.bf16.gmra.mxu2 %v4534_v50 }
 0x1b4   :  { %1014 = vmatmul.bf16.gmra.mxu1 %v4626_v29 }
 0x1b6   :  { %v7187_v51 = vpop.f32.mrf.mxu0 }
 0x1b9   :  { %4501 = vmatmul.msk.f32.gmra.mxu0 %vm121_vm0, %v91_v52 }
 0x1be   :  { %v7205_v58 = vpop.f32.mrf.mxu0 }
 0x1c1   :  { %4502 = vmatmul.msk.f32.gmra.mxu0 %vm121_vm0, %v92_v60  ;;  %v7307_v60 = vpop.f32.mrf.mxu1 }
 0x1c2   :  { %1086 = vmatmul.bf16.gmra.mxu2 %v4550_v61  ;;  %v4657_v61 = vld [vmem:[%s10416_s3 + $0x120] sm:$0xf] }
 0x1c4   :  { %1019 = vmatmul.bf16.gmra.mxu1 %v4642_v5 }
 0x1c6   :  { %v7211_v62 = vpop.f32.mrf.mxu0 }
 0x1c7   :  { %v444_v4 = vadd.f32 %v6986_v48, %v7211_v62  ;;  %v438_v62 = vadd.f32 %v6986_v48, %v7187_v51  ;;  %v552_v51 = vmax.f32 %v435_v17, 0.0 }
 0x1c9   :  { %4503 = vmatmul.msk.f32.gmra.mxu0 %vm121_vm0, %v93_v63  ;;  %v6343_v63 = vld [vmem:[%s10416_s3 + $0x12c] sm:$0xf0]  ;;  %v555_v13 = vmax.f32 %v444_v4, 0.0  ;;  %v7331_v16 = vpop.f32.mrf.mxu1 }
 0x1ca   :  { %v4658_v1 = vor.u32 %v6343_v63, %v4657_v61 }
 0x1ce   :  { %v7229_v7 = vpop.f32.mrf.mxu0 }
 0x1cf   :  { %v447_v2 = vadd.f32 %v6986_v48, %v7229_v7 }
 0x1d1   :  { %4504 = vmatmul.msk.f32.gmra.mxu0 %vm121_vm0, %v94_v8  ;;  %v6333_v8 = vld [vmem:[%s10416_s3 + $0xe4] sm:$0xf]  ;;  %v556_v7 = vmax.f32 %v447_v2, 0.0 }
 0x1d2   :  { %1091 = vmatmul.bf16.gmra.mxu2 %v4566_v9  ;;  %v4627_v9 = vld [vmem:[%s10416_s3 + $0xf0] sm:$0xf0] }
 0x1d3   :  { %v4630_v12 = vor.u32 %v6333_v8, %v4627_v9  ;;  %v6345_v8 = vld [vmem:[%s10416_s3 + $0x144] sm:$0xf]  ;;  %v4675_v9 = vld [vmem:[%s10416_s3 + $0x150] sm:$0xf0] }
 0x1d4   :  { %1024 = vmatmul.bf16.gmra.mxu1 %v4658_v1 }
 0x1d6   :  { %v449_v10 = vpop.f32.mrf.mxu0 }
 0x1d7   :  { %v450_v56 = vadd.f32 %v6986_v48, %v449_v10  ;;  %v441_v10 = vadd.f32 %v6986_v48, %v7205_v58  ;;  %v432_v58 = vadd.f32 %v6986_v48, %v7163_v40  ;;  %v4673_v40 = vld [vmem:[%s10416_s3 + $0x140] sm:$0xf] }
 0x1d9   :  { %4505 = vmatmul.msk.f32.gmra.mxu0 %vm121_vm0, %v95_v11  ;;  %v557_v6 = vmax.f32 %v450_v56, 0.0  ;;  %v554_v19 = vmax.f32 %v441_v10, 0.0  ;;  %v551_v47 = vmax.f32 %v432_v58, 0.0 }
 0x1de   :  { %v452_v21 = vpop.f32.mrf.mxu0 }
 0x1df   :  { %v453_v53 = vadd.f32 %v6986_v48, %v452_v21  ;;  %v553_v21 = vmax.f32 %v438_v62, 0.0 }
 0x1e1   :  { %4506 = vmatmul.msk.f32.gmra.mxu0 %vm121_vm0, %v96_v23  ;;  %v558_v3 = vmax.f32 %v453_v53, 0.0  ;;  %v429_v23 = vadd.f32 %v6986_v48, %v7157_v37  ;;  %v4674_v37 = vor.u32 %v6347_v22, %v4673_v40  ;;  %v6349_v40 = vld [vmem:[%s10416_s3 + $0x164] sm:$0xf]  ;;  %v4691_v22 = vld [vmem:[%s10416_s3 + $0x170] sm:$0xf0] }
 0x1e2   :  { %1096 = vmatmul.bf16.gmra.mxu2 %v4582_v24  ;;  %v426_v24 = vadd.f32 %v6986_v48, %v7133_v28 }
 0x1e3   :  { %v550_v28 = vmax.f32 %v429_v23, 0.0 }
 0x1e4   :  { %v549_v29 = vmax.f32 %v426_v24, 0.0  ;;  %1029 = vmatmul.bf16.gmra.mxu1 %v4674_v37 }
 0x1e6   :  { %v455_v25 = vpop.f32.mrf.mxu0 }
 0x1e7   :  { %v456_v50 = vadd.f32 %v6986_v48, %v455_v25 }
 0x1e9   :  { %4507 = vmatmul.msk.f32.gmra.mxu0 %vm121_vm0, %v97_v26  ;;  %v559_v57 = vmax.f32 %v456_v50, 0.0  ;;  %v7343_v26 = vpop.f32.mrf.mxu1 }
 0x1ee   :  { %v458_v27 = vpop.f32.mrf.mxu0 }
 0x1ef   :  { %v459_v46 = vadd.f32 %v6986_v48, %v458_v27  ;;  %v6308_v27 = vld [vmem:[%s10416_s3 + $0x14] sm:$0xf0] }
 0x1f1   :  { %4508 = vmatmul.msk.f32.gmra.mxu0 %vm121_vm0, %v98_v31  ;;  %v560_v54 = vmax.f32 %v459_v46, 0.0  ;;  %v4643_v31 = vld [vmem:[%s10416_s3 + $0x110] sm:$0xf0]  ;;  %v992_v36 = vpop.f32.mrf.mxu1  ;;  %v6341_v46 = vld [vmem:[%s10416_s3 + $0x124] sm:$0xf] }
 0x1f2   :  { %1101 = vmatmul.bf16.gmra.mxu2 %v4598_v32  ;;  %v548_v32 = vmax.f32 %v423_v18, 0.0  ;;  %v4646_v35 = vor.u32 %v6337_v14, %v4643_v31 }
 0x1f6   :  { %v461_v33 = vpop.f32.mrf.mxu0 }
 0x1f7   :  { %v462_v43 = vadd.f32 %v6986_v48, %v461_v33 }
 0x1f9   :  { %4509 = vmatmul.msk.f32.gmra.mxu0 %vm121_vm0, %v99_v15  ;;  %v561_v52 = vmax.f32 %v462_v43, 0.0  ;;  %v4522_v15 = vor.u32 %v6308_v27, %v4521_v30  ;;  %v4694_v30 = vor.u32 %v6349_v40, %v4691_v22 }
 0x1fe   :  { %v464_v59 = vpop.f32.mrf.mxu0 }
 0x1ff   :  { %v465_v44 = vadd.f32 %v6986_v48, %v464_v59  ;;  %v995_v59 = vpop.f32.mrf.mxu1 }
 0x201   :  { %4510 = vmatmul.msk.f32.gmra.mxu0 %vm121_vm0, %v100_v41  ;;  %v562_v49 = vmax.f32 %v465_v44, 0.0  ;;  %v4689_v41 = vld [vmem:[%s10416_s3 + $0x160] sm:$0xf]  ;;  %v4537_v44 = vld [vmem:[%s10416_s3 + $0x28] sm:$0xf] }
 0x202   :  { %1106 = vmatmul.bf16.gmra.mxu2 %v4614_v42  ;;  %v6351_v42 = vld [vmem:[%s10416_s3 + $0x16c] sm:$0xf0] }
 0x203   :  { %1157 = vmatpush.msra.mxu3 %v562_v49  ;;  %v4690_v43 = vor.u32 %v6351_v42, %v4689_v41  ;;  %v4659_v49 = vld [vmem:[%s10416_s3 + $0x130] sm:$0xf0] }
 0x204   :  { %v4662_v56 = vor.u32 %v6341_v46, %v4659_v49  ;;  %v4707_v41 = vld [vmem:[%s10416_s3 + $0x190] sm:$0xf0] }
 0x205   :  { %1158 = vmatpush.msra.mxu3 %v561_v52  ;;  %1034 = vmatmul.bf16.gmra.mxu1 %v4690_v43 }
 0x206   :  { %v7304_v55 = vpop.f32.mrf.mxu0 }
 0x207   :  { %1159 = vmatpush.msra.mxu3 %v560_v54 }
 0x209   :  { %1160 = vmatpush.msra.mxu3 %v559_v57  ;;  %v997_v57 = vpop.f32.mrf.mxu1 }
 0x20b   :  { %1161 = vmatpush.msra.mxu3 %v558_v3  ;;  %v4705_v3 = vld [vmem:[%s10416_s3 + $0x180] sm:$0xf] }
 0x20d   :  { %1162 = vmatpush.msra.mxu3 %v557_v6  ;;  %v4553_v6 = vld [vmem:[%s10416_s3 + $0x48] sm:$0xf] }
 0x20e   :  { %v7327_v11 = vpop.f32.mrf.mxu0 }
 0x20f   :  { %1163 = vmatpush.msra.mxu3 %v556_v7 }
 0x211   :  { %1164 = vmatpush.msra.mxu3 %v555_v13  ;;  %v7402_v2 = vpop.f32.mrf.mxu1  ;;  %v4678_v13 = vor.u32 %v6345_v8, %v4675_v9 }
 0x212   :  { %1111 = vmatmul.bf16.gmra.mxu2 %v4630_v12 }
 0x213   :  { %1165 = vmatpush.msra.mxu3 %v554_v19 }
 0x215   :  { %1166 = vmatpush.msra.mxu3 %v553_v21 }
 0x216   :  { %v7341_v25 = vpop.f32.mrf.mxu0 }
 0x217   :  { %1167 = vmatpush.msra.mxu3 %v552_v51  ;;  %v4721_v51 = vld [vmem:[%s10416_s3 + $0x1a0] sm:$0xf] }
 0x219   :  { %1168 = vmatpush.msra.mxu3 %v551_v47  ;;  %v7427_v17 = vpop.f32.mrf.mxu1  ;;  %v4569_v47 = vld [vmem:[%s10416_s3 + $0x68] sm:$0xf] }
 0x21b   :  { %1169 = vmatpush.msra.mxu3 %v550_v28 }
 0x21d   :  { %1170 = vmatpush.msra.mxu3 %v549_v29 }
 0x21e   :  { %v7367_v33 = vpop.f32.mrf.mxu0 }
 0x21f   :  { %1171 = vmatpush.msra.mxu3 %v548_v32  ;;  %v4737_v32 = vld [vmem:[%s10416_s3 + $0x1c0] sm:$0xf] }
 0x221   :  { %1172 = vmatpush.msra.mxu3 %v547_v0  ;;  %v7434_v23 = vpop.f32.mrf.mxu1 }
 0x222   :  { %1173 = vmatmul.bf16.vlgmr.msra.gmra.mxu3 %v4522_v15  ;;  %1116 = vmatmul.bf16.gmra.mxu2 %v4646_v35  ;;  %v6363_v15 = vld [vmem:[%s10416_s3 + $0x1cc] sm:$0xf0] }
 0x223   :  { %v4738_v35 = vor.u32 %v6363_v15, %v4737_v32 }
 0x225   :  { %v1077_v5 = vpop.f32.mrf.mxu2 }
 0x226   :  { %v7369_v38 = vpop.f32.mrf.mxu0  ;;  %v7372_v39 = vadd.f32 %v1077_v5, %v7278_v34  ;;  %v6312_v34 = vld [vmem:[%s10416_s3 + $0x34] sm:$0xf0] }
 0x227   :  { %v4538_v53 = vor.u32 %v6312_v34, %v4537_v44  ;;  %v6324_v5 = vld [vmem:[%s10416_s3 + $0x94] sm:$0xf0] }
 0x229   :  { %v7458_v20 = vpop.f32.mrf.mxu1 }
 0x22d   :  { %v1079_v50 = vpop.f32.mrf.mxu2 }
 0x22e   :  { %v7392_v52 = vpop.f32.mrf.mxu0  ;;  %v7395_v54 = vadd.f32 %v1079_v50, %v7298_v45  ;;  %v6355_v45 = vld [vmem:[%s10416_s3 + $0x18c] sm:$0xf0] }
 0x22f   :  { %v4706_v4 = vor.u32 %v6355_v45, %v4705_v3  ;;  %v6328_v3 = vld [vmem:[%s10416_s3 + $0xb4] sm:$0xf0]  ;;  %v6357_v45 = vld [vmem:[%s10416_s3 + $0x1a4] sm:$0xf] }
 0x231   :  { %1039 = vmatmul.bf16.gmra.mxu1 %v4706_v4  ;;  %v7468_v0 = vpop.f32.mrf.mxu1  ;;  %v4723_v4 = vld [vmem:[%s10416_s3 + $0x1b0] sm:$0xf0] }
 0x232   :  { %1178 = vmatmul.bf16.gmra.mxu3 %v4538_v53  ;;  %1121 = vmatmul.bf16.gmra.mxu2 %v4662_v56  ;;  %v4753_v53 = vld [vmem:[%s10416_s3 + $0x1e0] sm:$0xf]  ;;  %v6367_v56 = vld [vmem:[%s10416_s3 + $0x1ec] sm:$0xf0]  ;;  %v4726_v9 = vor.u32 %v6357_v45, %v4723_v4  ;;  %v483_v45 = vadd.f32 %v6986_v48, %v7392_v52 }
 0x235   :  { %v1082_v61 = vpop.f32.mrf.mxu2 }
 0x236   :  { %v7397_v63 = vpop.f32.mrf.mxu0  ;;  %v7400_v1 = vadd.f32 %v1082_v61, %v7307_v60  ;;  %v6316_v60 = vld [vmem:[%s10416_s3 + $0x54] sm:$0xf0]  ;;  %v4754_v61 = vor.u32 %v6367_v56, %v4753_v53 }
 0x237   :  { %v4554_v12 = vor.u32 %v6316_v60, %v4553_v6 }
 0x239   :  { %v7484_v49 = vpop.f32.mrf.mxu1 }
 0x23d   :  { %v1084_v10 = vpop.f32.mrf.mxu2 }
 0x23e   :  { %v7422_v7 = vpop.f32.mrf.mxu0  ;;  %v7425_v62 = vadd.f32 %v1084_v10, %v7331_v16  ;;  %v6359_v16 = vld [vmem:[%s10416_s3 + $0x1ac] sm:$0xf0] }
 0x23f   :  { %v4722_v24 = vor.u32 %v6359_v16, %v4721_v51  ;;  %v6361_v51 = vld [vmem:[%s10416_s3 + $0x1c4] sm:$0xf]  ;;  %v4739_v16 = vld [vmem:[%s10416_s3 + $0x1d0] sm:$0xf0]  ;;  %v489_v53 = vadd.f32 %v6986_v48, %v7422_v7 }
 0x241   :  { %1044 = vmatmul.bf16.gmra.mxu1 %v4722_v24  ;;  %v7504_v6 = vpop.f32.mrf.mxu1  ;;  %v570_v4 = vmax.f32 %v489_v53, 0.0 }
 0x242   :  { %1183 = vmatmul.bf16.gmra.mxu3 %v4554_v12  ;;  %1126 = vmatmul.bf16.gmra.mxu2 %v4678_v13  ;;  %v4617_v13 = vld [vmem:[%s10416_s3 + $0xc8] sm:$0xf] }
 0x245   :  { %v1087_v19 = vpop.f32.mrf.mxu2 }
 0x246   :  { %v7429_v58 = vpop.f32.mrf.mxu0  ;;  %v7432_v21 = vadd.f32 %v1087_v19, %v7343_v26  ;;  %v6320_v26 = vld [vmem:[%s10416_s3 + $0x74] sm:$0xf0] }
 0x247   :  { %v4570_v28 = vor.u32 %v6320_v26, %v4569_v47  ;;  %v6332_v19 = vld [vmem:[%s10416_s3 + $0xd4] sm:$0xf0]  ;;  %v4742_v26 = vor.u32 %v6361_v51, %v4739_v16  ;;  %v6306_v51 = vld [vmem:[%s10416_s3 + $0xc] sm:$0xf]  ;;  %v4649_v16 = vld [vmem:[%s10416_s3 + $0x108] sm:$0xf] }
 0x248   :  { %v4618_v47 = vor.u32 %v6332_v19, %v4617_v13  ;;  %v471_v13 = vadd.f32 %v6986_v48, %v7327_v11  ;;  %v6340_v11 = vld [vmem:[%s10416_s3 + $0x114] sm:$0xf0] }
 0x249   :  { %v7506_v12 = vpop.f32.mrf.mxu1 }
 0x24d   :  { %v1089_v37 = vpop.f32.mrf.mxu2 }
 0x24e   :  { %v7454_v18 = vpop.f32.mrf.mxu0  ;;  %v7456_v29 = vadd.f32 %v1089_v37, %v992_v36  ;;  %v4585_v36 = vld [vmem:[%s10416_s3 + $0x88] sm:$0xf] }
 0x24f   :  { %v4586_v44 = vor.u32 %v6324_v5, %v4585_v36 }
 0x251   :  { %1049 = vmatmul.bf16.gmra.mxu1 %v4738_v35 }
 0x252   :  { %1188 = vmatmul.bf16.gmra.mxu3 %v4570_v28  ;;  %1131 = vmatmul.bf16.gmra.mxu2 %v4694_v30  ;;  %v7523_v30 = vpop.f32.mrf.mxu1 }
 0x255   :  { %v1092_v27 = vpop.f32.mrf.mxu2 }
 0x256   :  { %v497_v14 = vpop.f32.mrf.mxu0  ;;  %v7460_v31 = vadd.f32 %v1092_v27, %v995_v59  ;;  %v6353_v59 = vld [vmem:[%s10416_s3 + $0x184] sm:$0xf] }
 0x257   :  { %v4710_v46 = vor.u32 %v6353_v59, %v4707_v41  ;;  %v498_v36 = vadd.f32 %v6986_v48, %v497_v14  ;;  %v495_v59 = vadd.f32 %v6986_v48, %v7454_v18  ;;  %v6336_v14 = vld [vmem:[%s10416_s3 + $0xf4] sm:$0xf0]  ;;  %v6365_v18 = vld [vmem:[%s10416_s3 + $0x1e4] sm:$0xf] }
 0x259   :  { %v572_v56 = vmax.f32 %v495_v59, 0.0 }
 0x25d   :  { %v1094_v42 = vpop.f32.mrf.mxu2 }
 0x25e   :  { %v500_v43 = vpop.f32.mrf.mxu0  ;;  %v7482_v34 = vadd.f32 %v1094_v42, %v997_v57  ;;  %v4601_v57 = vld [vmem:[%s10416_s3 + $0xa8] sm:$0xf]  ;;  %v573_v42 = vmax.f32 %v498_v36, 0.0 }
 0x25f   :  { %v4602_v8 = vor.u32 %v6328_v3, %v4601_v57  ;;  %v501_v15 = vadd.f32 %v6986_v48, %v500_v43  ;;  %v7538_v43 = vpop.f32.mrf.mxu1  ;;  %v486_v57 = vadd.f32 %v6986_v48, %v7397_v63 }
 0x261   :  { %1054 = vmatmul.bf16.gmra.mxu1 %v4754_v61  ;;  %v574_v41 = vmax.f32 %v501_v15, 0.0  ;;  %v569_v7 = vmax.f32 %v486_v57, 0.0  ;;  %v6344_v15 = vld [vmem:[%s10416_s3 + $0x134] sm:$0xf0] }
 0x262   :  { %1193 = vmatmul.bf16.gmra.mxu3 %v4586_v44  ;;  %1136 = vmatmul.bf16.gmra.mxu2 %v4710_v46  ;;  %v4633_v44 = vld [vmem:[%s10416_s3 + $0xe8] sm:$0xf]  ;;  %v492_v46 = vadd.f32 %v6986_v48, %v7429_v58 }
 0x263   :  { %v4634_v58 = vor.u32 %v6336_v14, %v4633_v44  ;;  %v6314_v44 = vld [vmem:[%s10416_s3 + $0x4c] sm:$0xf]  ;;  %v6348_v14 = vld [vmem:[%s10416_s3 + $0x154] sm:$0xf0] }
 0x264   :  { %v571_v3 = vmax.f32 %v492_v46, 0.0  ;;  %v4555_v46 = vld [vmem:[%s10416_s3 + $0x58] sm:$0xf0] }
 0x266   :  { %v503_v50 = vpop.f32.mrf.mxu0 }
 0x267   :  { %v504_v27 = vadd.f32 %v6986_v48, %v503_v50  ;;  %v4755_v50 = vld [vmem:[%s10416_s3 + $0x1f0] sm:$0xf0]  ;;  %v7556_v63 = vpop.f32.mrf.mxu1 }
 0x268   :  { %v4758_v61 = vor.u32 %v6365_v18, %v4755_v50 }
 0x269   :  { %v575_v5 = vmax.f32 %v504_v27, 0.0  ;;  %v4539_v27 = vld [vmem:[%s10416_s3 + $0x38] sm:$0xf0] }
 0x26e   :  { %v506_v60 = vpop.f32.mrf.mxu0 }
 0x26f   :  { %v507_v37 = vadd.f32 %v6986_v48, %v506_v60  ;;  %v480_v60 = vadd.f32 %v6986_v48, %v7369_v38 }
 0x271   :  { %v576_v35 = vmax.f32 %v507_v37, 0.0  ;;  %v567_v52 = vmax.f32 %v480_v60, 0.0 }
 0x272   :  { %1198 = vmatmul.bf16.gmra.mxu3 %v4602_v8  ;;  %1141 = vmatmul.bf16.gmra.mxu2 %v4726_v9  ;;  %v477_v8 = vadd.f32 %v6986_v48, %v7367_v33  ;;  %v568_v9 = vmax.f32 %v483_v45, 0.0  ;;  %v468_v33 = vadd.f32 %v6986_v48, %v7304_v55  ;;  %v4571_v45 = vld [vmem:[%s10416_s3 + $0x78] sm:$0xf0] }
 0x274   :  { %v566_v19 = vmax.f32 %v477_v8, 0.0 }
 0x276   :  { %v509_v10 = vpop.f32.mrf.mxu0 }
 0x277   :  { %v510_v40 = vadd.f32 %v6986_v48, %v509_v10  ;;  %v474_v10 = vadd.f32 %v6986_v48, %v7341_v25  ;;  %v4523_v25 = vld [vmem:[%s10416_s3 + $0x18] sm:$0xf0] }
 0x279   :  { %v577_v32 = vmax.f32 %v510_v40, 0.0  ;;  %v565_v38 = vmax.f32 %v474_v10, 0.0  ;;  %v563_v40 = vmax.f32 %v468_v33, 0.0  ;;  %v4825_v10 = vld [vmem:[%s10417_s4 + $0x70] sm:$0xf] }
 0x27e   :  { %v512_v24 = vpop.f32.mrf.mxu0 }
 0x27f   :  { %v513_v22 = vadd.f32 %v6986_v48, %v512_v24  ;;  %v564_v24 = vmax.f32 %v471_v13, 0.0  ;;  %v7576_v48 = vpop.f32.mrf.mxu1  ;;  %v4817_v13 = vld [vmem:[%s10417_s4 + $0x60] sm:$0xf] }
 0x281   :  { %v578_v28 = vmax.f32 %v513_v22, 0.0 }
 0x282   :  { %1203 = vmatmul.bf16.gmra.mxu3 %v4618_v47  ;;  %1146 = vmatmul.bf16.gmra.mxu2 %v4742_v26  ;;  %v4526_v47 = vor.u32 %v6306_v51, %v4523_v25  ;;  %v4650_v26 = vor.u32 %v6340_v11, %v4649_v16  ;;  %v6322_v25 = vld [vmem:[%s10416_s3 + $0x8c] sm:$0xf]  ;;  %v4587_v16 = vld [vmem:[%s10416_s3 + $0x98] sm:$0xf0] }
 0x283   :  { %1254 = vmatpush.msrb.mxu1 %v578_v28  ;;  %v6310_v28 = vld [vmem:[%s10416_s3 + $0x2c] sm:$0xf] }
 0x285   :  { %1255 = vmatpush.msrb.mxu1 %v577_v32  ;;  %v4665_v32 = vld [vmem:[%s10416_s3 + $0x128] sm:$0xf] }
 0x287   :  { %1256 = vmatpush.msrb.mxu1 %v576_v35  ;;  %v7581_v37 = vpop.f32.mrf.mxu1  ;;  %v4542_v35 = vor.u32 %v6310_v28, %v4539_v27  ;;  %v6383_v28 = vld [vmem:[%s10417_s4 + $0x74] sm:$0xf]  ;;  %v4827_v27 = vld [vmem:[%s10417_s4 + $0x78] sm:$0xf0] }
 0x289   :  { %1257 = vmatpush.msrb.mxu1 %v575_v5  ;;  %v4666_v5 = vor.u32 %v6344_v15, %v4665_v32  ;;  %v4830_v32 = vor.u32 %v6383_v28, %v4827_v27  ;;  %v4809_v15 = vld [vmem:[%s10417_s4 + $0x50] sm:$0xf]  ;;  %v6375_v28 = vld [vmem:[%s10417_s4 + $0x34] sm:$0xf]  ;;  %v4795_v27 = vld [vmem:[%s10417_s4 + $0x38] sm:$0xf0] }
 0x28b   :  { %1258 = vmatpush.msrb.mxu1 %v574_v41  ;;  %3133 = vmatpush.bf16.msrb.mxu0 %v4830_v32  ;;  %v4798_v32 = vor.u32 %v6375_v28, %v4795_v27  ;;  %v4771_v28 = vld [vmem:[%s10417_s4 + $0x8] sm:$0xf0] }
 0x28d   :  { %1259 = vmatpush.msrb.mxu1 %v573_v42 }
 0x28f   :  { %1260 = vmatpush.msrb.mxu1 %v572_v56  ;;  %v7598_v59 = vpop.f32.mrf.mxu1 }
 0x291   :  { %1261 = vmatpush.msrb.mxu1 %v571_v3  ;;  %v6318_v3 = vld [vmem:[%s10416_s3 + $0x6c] sm:$0xf] }
 0x292   :  { %1208 = vmatmul.bf16.gmra.mxu3 %v4634_v58  ;;  %1151 = vmatmul.bf16.gmra.mxu2 %v4758_v61  ;;  %v4574_v60 = vor.u32 %v6318_v3, %v4571_v45  ;;  %v4793_v3 = vld [vmem:[%s10417_s4 + $0x30] sm:$0xf]  ;;  %v6376_v45 = vld [vmem:[%s10417_s4 + $0x34] sm:$0xf0] }
 0x293   :  { %1262 = vmatpush.msrb.mxu1 %v570_v4  ;;  %v6352_v4 = vld [vmem:[%s10416_s3 + $0x174] sm:$0xf0] }
 0x295   :  { %1263 = vmatpush.msrb.mxu1 %v569_v7 }
 0x297   :  { %1264 = vmatpush.msrb.mxu1 %v568_v9  ;;  %v7615_v50 = vpop.f32.mrf.mxu1 }
 0x299   :  { %1265 = vmatpush.msrb.mxu1 %v567_v52  ;;  %v6384_v52 = vld [vmem:[%s10417_s4 + $0x74] sm:$0xf0] }
 0x29b   :  { %1266 = vmatpush.msrb.mxu1 %v566_v19  ;;  %v4826_v19 = vor.u32 %v6384_v52, %v4825_v10  ;;  %v4803_v10 = vld [vmem:[%s10417_s4 + $0x48] sm:$0xf0] }
 0x29d   :  { %1267 = vmatpush.msrb.mxu1 %v565_v38  ;;  %2893 = vmatpush.bf16.msrb.mxu2 %v4826_v19  ;;  %v6326_v19 = vld [vmem:[%s10416_s3 + $0xac] sm:$0xf] }
 0x29f   :  { %1268 = vmatpush.msrb.mxu1 %v564_v24  ;;  %v7623_v57 = vpop.f32.mrf.mxu1  ;;  %v4713_v24 = vld [vmem:[%s10416_s3 + $0x188] sm:$0xf] }
 0x2a1   :  { %1269 = vmatpush.msrb.mxu1 %v563_v40 }
 0x2a2   :  { %1270 = vmatmul.bf16.vlgmr.msrb.gmra.mxu1 %v4526_v47  ;;  %1213 = vmatmul.bf16.gmra.mxu3 %v4650_v26  ;;  %v4590_v26 = vor.u32 %v6322_v25, %v4587_v16  ;;  %v4729_v25 = vld [vmem:[%s10416_s3 + $0x1a8] sm:$0xf]  ;;  %v6360_v16 = vld [vmem:[%s10416_s3 + $0x1b4] sm:$0xf0] }
 0x2a5   :  { %v1174_v55 = vpop.f32.mrf.mxu3 }
 0x2a6   :  { %v7579_v22 = vadd.f32 %v1174_v55, %v7372_v39 }
 0x2ad   :  { %v1176_v39 = vpop.f32.mrf.mxu3 }
 0x2ae   :  { %v7596_v36 = vadd.f32 %v1176_v39, %v7395_v54  ;;  %v4681_v54 = vld [vmem:[%s10416_s3 + $0x148] sm:$0xf]  ;;  %v7640_v9 = vpop.f32.mrf.mxu1  ;;  %v6381_v39 = vld [vmem:[%s10417_s4 + $0x64] sm:$0xf] }
 0x2af   :  { %v4682_v56 = vor.u32 %v6348_v14, %v4681_v54  ;;  %v6379_v54 = vld [vmem:[%s10417_s4 + $0x54] sm:$0xf]  ;;  %v4811_v14 = vld [vmem:[%s10417_s4 + $0x58] sm:$0xf0] }
 0x2b2   :  { %1275 = vmatmul.bf16.gmra.mxu1 %v4542_v35  ;;  %1218 = vmatmul.bf16.gmra.mxu3 %v4666_v5  ;;  %v4819_v5 = vld [vmem:[%s10417_s4 + $0x68] sm:$0xf0] }
 0x2b5   :  { %v1179_v41 = vpop.f32.mrf.mxu3 }
 0x2b6   :  { %v7601_v42 = vadd.f32 %v1179_v41, %v7400_v1  ;;  %v4558_v1 = vor.u32 %v6314_v44, %v4555_v46  ;;  %v7663_v11 = vpop.f32.mrf.mxu1  ;;  %v4801_v41 = vld [vmem:[%s10417_s4 + $0x40] sm:$0xf]  ;;  %v6378_v44 = vld [vmem:[%s10417_s4 + $0x44] sm:$0xf0]  ;;  %v4822_v46 = vor.u32 %v6381_v39, %v4819_v5  ;;  %v4873_v39 = vld [vmem:[%s10417_s4 + $0xd0] sm:$0xf] }
 0x2b7   :  { %v6396_v5 = vld [vmem:[%s10417_s4 + $0xd4] sm:$0xf0] }
 0x2b8   :  { %3134 = vmatpush.bf16.msrb.mxu0 %v4822_v46  ;;  %v4874_v46 = vor.u32 %v6396_v5, %v4873_v39  ;;  %v6390_v39 = vld [vmem:[%s10417_s4 + $0xa4] sm:$0xf0]  ;;  %v4937_v5 = vld [vmem:[%s10417_s4 + $0x150] sm:$0xf] }
 0x2bd   :  { %v1181_v18 = vpop.f32.mrf.mxu3 }
 0x2be   :  { %v7618_v53 = vadd.f32 %v1181_v18, %v7425_v62  ;;  %v4697_v62 = vld [vmem:[%s10416_s3 + $0x168] sm:$0xf]  ;;  %v7704_v18 = vpop.f32.mrf.mxu1 }
 0x2bf   :  { %v4698_v8 = vor.u32 %v6352_v4, %v4697_v62  ;;  %v4814_v4 = vor.u32 %v6379_v54, %v4811_v14  ;;  %v4769_v14 = vld [vmem:[%s10417_s4] sm:$0xf] }
 0x2c1   :  { %3135 = vmatpush.bf16.msrb.mxu0 %v4814_v4 }
 0x2c2   :  { %1280 = vmatmul.bf16.gmra.mxu1 %v4558_v1  ;;  %1223 = vmatmul.bf16.gmra.mxu3 %v4682_v56  ;;  %v4802_v1 = vor.u32 %v6378_v44, %v4801_v41  ;;  %v4889_v56 = vld [vmem:[%s10417_s4 + $0xf0] sm:$0xf]  ;;  %v6373_v41 = vld [vmem:[%s10417_s4 + $0x24] sm:$0xf]  ;;  %v4787_v44 = vld [vmem:[%s10417_s4 + $0x28] sm:$0xf0] }
 0x2c3   :  { %v4790_v54 = vor.u32 %v6373_v41, %v4787_v44  ;;  %v6412_v41 = vld [vmem:[%s10417_s4 + $0x154] sm:$0xf0] }
 0x2c4   :  { %v4938_v44 = vor.u32 %v6412_v41, %v4937_v5  ;;  %v6428_v5 = vld [vmem:[%s10417_s4 + $0x1d4] sm:$0xf0] }
 0x2c5   :  { %v1184_v58 = vpop.f32.mrf.mxu3 }
 0x2c6   :  { %v7621_v61 = vadd.f32 %v1184_v58, %v7432_v21  ;;  %v6400_v58 = vld [vmem:[%s10417_s4 + $0xf4] sm:$0xf0] }
 0x2c7   :  { %v4890_v62 = vor.u32 %v6400_v58, %v4889_v56  ;;  %v4865_v56 = vld [vmem:[%s10417_s4 + $0xc0] sm:$0xf] }
 0x2c9   :  { %2908 = vmatpush.bf16.msrb.mxu3 %v4890_v62  ;;  %v6416_v62 = vld [vmem:[%s10417_s4 + $0x174] sm:$0xf0] }
 0x2cd   :  { %v1186_v21 = vpop.f32.mrf.mxu3 }
 0x2ce   :  { %v7638_v7 = vadd.f32 %v1186_v21, %v7456_v29  ;;  %v6382_v29 = vld [vmem:[%s10417_s4 + $0x64] sm:$0xf0]  ;;  %v4881_v21 = vld [vmem:[%s10417_s4 + $0xe0] sm:$0xf] }
 0x2cf   :  { %v4818_v51 = vor.u32 %v6382_v29, %v4817_v13  ;;  %v4794_v13 = vor.u32 %v6376_v45, %v4793_v3  ;;  %v4785_v29 = vld [vmem:[%s10417_s4 + $0x20] sm:$0xf]  ;;  %v6394_v3 = vld [vmem:[%s10417_s4 + $0xc4] sm:$0xf0]  ;;  %v4953_v45 = vld [vmem:[%s10417_s4 + $0x170] sm:$0xf] }
 0x2d0   :  { %v4866_v4 = vor.u32 %v6394_v3, %v4865_v56 }
 0x2d1   :  { %2894 = vmatpush.bf16.msrb.mxu2 %v4818_v51  ;;  %v4603_v51 = vld [vmem:[%s10416_s3 + $0xb8] sm:$0xf0] }
 0x2d2   :  { %1285 = vmatmul.bf16.gmra.mxu1 %v4574_v60  ;;  %1228 = vmatmul.bf16.gmra.mxu3 %v4698_v8  ;;  %v6398_v60 = vld [vmem:[%s10417_s4 + $0xe4] sm:$0xf0]  ;;  %v6377_v8 = vld [vmem:[%s10417_s4 + $0x44] sm:$0xf] }
 0x2d3   :  { %v4882_v52 = vor.u32 %v6398_v60, %v4881_v21  ;;  %v4954_v21 = vor.u32 %v6416_v62, %v4953_v45  ;;  %v6371_v60 = vld [vmem:[%s10417_s4 + $0x14] sm:$0xf]  ;;  %v4833_v45 = vld [vmem:[%s10417_s4 + $0x80] sm:$0xf]  ;;  %v6386_v62 = vld [vmem:[%s10417_s4 + $0x84] sm:$0xf0] }
 0x2d5   :  { %v1189_v38 = vpop.f32.mrf.mxu3  ;;  %2909 = vmatpush.bf16.msrb.mxu3 %v4882_v52 }
 0x2d6   :  { %v7655_v33 = vadd.f32 %v1189_v38, %v7460_v31  ;;  %v6356_v31 = vld [vmem:[%s10416_s3 + $0x194] sm:$0xf0]  ;;  %v6374_v38 = vld [vmem:[%s10417_s4 + $0x24] sm:$0xf0] }
 0x2d7   :  { %v4714_v55 = vor.u32 %v6356_v31, %v4713_v24  ;;  %v4806_v24 = vor.u32 %v6377_v8, %v4803_v10  ;;  %v4786_v31 = vor.u32 %v6374_v38, %v4785_v29  ;;  %v4779_v8 = vld [vmem:[%s10417_s4 + $0x18] sm:$0xf0]  ;;  %v4857_v10 = vld [vmem:[%s10417_s4 + $0xb0] sm:$0xf]  ;;  %v6414_v29 = vld [vmem:[%s10417_s4 + $0x164] sm:$0xf0] }
 0x2d8   :  { %v4782_v52 = vor.u32 %v6371_v60, %v4779_v8  ;;  %v6408_v60 = vld [vmem:[%s10417_s4 + $0x134] sm:$0xf0]  ;;  %v5017_v8 = vld [vmem:[%s10417_s4 + $0x1f0] sm:$0xf] }
 0x2d9   :  { %3136 = vmatpush.bf16.msrb.mxu0 %v4806_v24  ;;  %2910 = vmatpush.bf16.msrb.mxu3 %v4874_v46  ;;  %v4619_v24 = vld [vmem:[%s10416_s3 + $0xd8] sm:$0xf0] }
 0x2dd   :  { %v1191_v47 = vpop.f32.mrf.mxu3  ;;  %3137 = vmatpush.bf16.msrb.mxu0 %v4798_v32  ;;  %2911 = vmatpush.bf16.msrb.mxu3 %v4866_v4  ;;  %v4834_v4 = vor.u32 %v6386_v62, %v4833_v45  ;;  %v4985_v62 = vld [vmem:[%s10417_s4 + $0x1b0] sm:$0xf] }
 0x2de   :  { %v7672_v40 = vadd.f32 %v1191_v47, %v7482_v34  ;;  %v6380_v34 = vld [vmem:[%s10417_s4 + $0x54] sm:$0xf0]  ;;  %v4606_v47 = vor.u32 %v6326_v19, %v4603_v51  ;;  %v4945_v19 = vld [vmem:[%s10417_s4 + $0x160] sm:$0xf]  ;;  %v6330_v51 = vld [vmem:[%s10416_s3 + $0xcc] sm:$0xf] }
 0x2df   :  { %v4810_v35 = vor.u32 %v6380_v34, %v4809_v15  ;;  %v4777_v15 = vld [vmem:[%s10417_s4 + $0x10] sm:$0xf]  ;;  %v6372_v34 = vld [vmem:[%s10417_s4 + $0x14] sm:$0xf0]  ;;  %v4622_v32 = vor.u32 %v6330_v51, %v4619_v24  ;;  %v6406_v24 = vld [vmem:[%s10417_s4 + $0x124] sm:$0xf0] }
 0x2e0   :  { %v6368_v51 = vld [vmem:[%s10416_s3 + $0x1f4] sm:$0xf0] }
 0x2e1   :  { %2895 = vmatpush.bf16.msrb.mxu2 %v4810_v35  ;;  %v4778_v35 = vor.u32 %v6372_v34, %v4777_v15  ;;  %3138 = vmatpush.bf16.msrb.mxu0 %v4790_v54  ;;  %v4849_v34 = vld [vmem:[%s10417_s4 + $0xa0] sm:$0xf]  ;;  %v4841_v54 = vld [vmem:[%s10417_s4 + $0x90] sm:$0xf] }
 0x2e2   :  { %1290 = vmatmul.bf16.gmra.mxu1 %v4590_v26  ;;  %1233 = vmatmul.bf16.gmra.mxu3 %v4714_v55  ;;  %v4730_v26 = vor.u32 %v6360_v16, %v4729_v25  ;;  %v7748_v55 = vpop.f32.mrf.mxu1  ;;  %v4946_v16 = vor.u32 %v6414_v29, %v4945_v19  ;;  %v4635_v19 = vld [vmem:[%s10416_s3 + $0xf8] sm:$0xf0]  ;;  %v4761_v29 = vld [vmem:[%s10416_s3 + $0x1e8] sm:$0xf] }
 0x2e5   :  { %2896 = vmatpush.bf16.msrb.mxu2 %v4802_v1  ;;  %v6370_v1 = vld [vmem:[%s10417_s4 + $0x4] sm:$0xf0]  ;;  %3139 = vmatpush.bf16.msrb.mxu0 %v4782_v52 }
 0x2e6   :  { %v4770_v58 = vor.u32 %v6370_v1, %v4769_v14  ;;  %v6388_v14 = vld [vmem:[%s10417_s4 + $0x94] sm:$0xf0]  ;;  %v4929_v1 = vld [vmem:[%s10417_s4 + $0x140] sm:$0xf] }
 0x2e7   :  { %v4842_v56 = vor.u32 %v6388_v14, %v4841_v54  ;;  %v4897_v54 = vld [vmem:[%s10417_s4 + $0x100] sm:$0xf]  ;;  %v6402_v14 = vld [vmem:[%s10417_s4 + $0x104] sm:$0xf0] }
 0x2e9   :  { %2897 = vmatpush.bf16.msrb.mxu2 %v4794_v13  ;;  %v6392_v13 = vld [vmem:[%s10417_s4 + $0xb4] sm:$0xf0] }
 0x2ea   :  { %v7810_v38 = vpop.f32.mrf.mxu1  ;;  %v4858_v25 = vor.u32 %v6392_v13, %v4857_v10  ;;  %v6334_v10 = vld [vmem:[%s10416_s3 + $0xec] sm:$0xf]  ;;  %v6432_v13 = vld [vmem:[%s10417_s4 + $0x1f4] sm:$0xf0] }
 0x2ec   :  { %2912 = vmatpush.bf16.msrb.mxu3 %v4858_v25  ;;  %v5018_v25 = vor.u32 %v6432_v13, %v5017_v8  ;;  %v6422_v8 = vld [vmem:[%s10417_s4 + $0x1a4] sm:$0xf0]  ;;  %v5081_v13 = vld [vmem:[%s10417_s4 + $0x270] sm:$0xf] }
 0x2ed   :  { %2898 = vmatpush.bf16.msrb.mxu2 %v4786_v31  ;;  %v4745_v31 = vld [vmem:[%s10416_s3 + $0x1c8] sm:$0xf] }
 0x2f1   :  { %2899 = vmatpush.bf16.msrb.mxu2 %v4778_v35  ;;  %v4850_v35 = vor.u32 %v6390_v39, %v4849_v34  ;;  %v4905_v34 = vld [vmem:[%s10417_s4 + $0x110] sm:$0xf]  ;;  %v6404_v39 = vld [vmem:[%s10417_s4 + $0x114] sm:$0xf0] }
 0x2f2   :  { %1295 = vmatmul.bf16.gmra.mxu1 %v4606_v47  ;;  %1238 = vmatmul.bf16.gmra.mxu3 %v4730_v26  ;;  %v6364_v47 = vld [vmem:[%s10416_s3 + $0x1d4] sm:$0xf0]  ;;  %v6369_v26 = vld [vmem:[%s10417_s4 + $0x4] sm:$0xf]  ;;  %v7842_v46 = vpop.f32.mrf.mxu1  ;;  %v4906_v41 = vor.u32 %v6404_v39, %v4905_v34  ;;  %v5083_v34 = vld [vmem:[%s10417_s4 + $0x278] sm:$0xf0] }
 0x2f3   :  { %v4774_v27 = vor.u32 %v6369_v26, %v4771_v28  ;;  %v4746_v15 = vor.u32 %v6364_v47, %v4745_v31  ;;  %2913 = vmatpush.bf16.msrb.mxu3 %v4850_v35  ;;  %v5009_v31 = vld [vmem:[%s10417_s4 + $0x1e0] sm:$0xf]  ;;  %v6430_v26 = vld [vmem:[%s10417_s4 + $0x1e4] sm:$0xf0]  ;;  %v5001_v35 = vld [vmem:[%s10417_s4 + $0x1d0] sm:$0xf] }
 0x2f4   :  { %v4961_v39 = vld [vmem:[%s10417_s4 + $0x180] sm:$0xf] }
 0x2f5   :  { %2900 = vmatpush.bf16.msrb.mxu2 %v4770_v58  ;;  %3140 = vmatpush.bf16.msrb.mxu0 %v4774_v27  ;;  %v6410_v58 = vld [vmem:[%s10417_s4 + $0x144] sm:$0xf0]  ;;  %v5010_v27 = vor.u32 %v6430_v26, %v5009_v31 }
 0x2f6   :  { %v4930_v3 = vor.u32 %v6410_v58, %v4929_v1  ;;  %v4993_v1 = vld [vmem:[%s10417_s4 + $0x1c0] sm:$0xf]  ;;  %v4898_v58 = vor.u32 %v6402_v14, %v4897_v54  ;;  %v6446_v26 = vld [vmem:[%s10417_s4 + $0x264] sm:$0xf0]  ;;  %v6444_v54 = vld [vmem:[%s10417_s4 + $0x254] sm:$0xf0] }
 0x2f7   :  { %2914 = vmatpush.bf16.msrb.mxu3 %v4842_v56  ;;  %v6426_v56 = vld [vmem:[%s10417_s4 + $0x1c4] sm:$0xf0] }
 0x2f9   :  { %2923 = vmatpush.bf16.msra.mxu2 %v4954_v21  ;;  %v4921_v21 = vld [vmem:[%s10417_s4 + $0x130] sm:$0xf] }
 0x2fa   :  { %v4922_v52 = vor.u32 %v6408_v60, %v4921_v21  ;;  %v7898_v28 = vpop.f32.mrf.mxu1  ;;  %v4977_v60 = vld [vmem:[%s10417_s4 + $0x1a0] sm:$0xf] }
 0x2fb   :  { %2915 = vmatpush.bf16.msrb.mxu3 %v4834_v4  ;;  %v6424_v4 = vld [vmem:[%s10417_s4 + $0x1b4] sm:$0xf0] }
 0x2fc   :  { %v4986_v21 = vor.u32 %v6424_v4, %v4985_v62 }
 0x2fd   :  { %2924 = vmatpush.bf16.msra.mxu2 %v4946_v16  ;;  %v4913_v16 = vld [vmem:[%s10417_s4 + $0x120] sm:$0xf] }
 0x2fe   :  { %v4914_v47 = vor.u32 %v6406_v24, %v4913_v16  ;;  %v7950_v24 = vpop.f32.mrf.mxu2 }
 0x2ff   :  { %2938 = vmatpush.bf16.msra.mxu3 %v5018_v25 }
 0x301   :  { %2925 = vmatpush.bf16.msra.mxu2 %v4938_v44  ;;  %v5002_v44 = vor.u32 %v6428_v5, %v5001_v35 }
 0x302   :  { %1300 = vmatmul.bf16.gmra.mxu1 %v4622_v32  ;;  %1243 = vmatmul.bf16.gmra.mxu3 %v4746_v15  ;;  %v4638_v32 = vor.u32 %v6334_v10, %v4635_v19  ;;  %v4762_v15 = vor.u32 %v6368_v51, %v4761_v29  ;;  %v7924_v45 = vpop.f32.mrf.mxu1  ;;  %v6338_v10 = vld [vmem:[%s10416_s3 + $0x10c] sm:$0xf]  ;;  %v6448_v19 = vld [vmem:[%s10417_s4 + $0x274] sm:$0xf0]  ;;  %v4978_v29 = vor.u32 %v6422_v8, %v4977_v60  ;;  %v6442_v60 = vld [vmem:[%s10417_s4 + $0x244] sm:$0xf0]  ;;  %v7996_v8 = vpop.f32.mrf.mxu3 }
 0x303   :  { %2939 = vmatpush.bf16.msra.mxu3 %v5010_v27  ;;  %v5082_v16 = vor.u32 %v6448_v19, %v5081_v13  ;;  %v4969_v27 = vld [vmem:[%s10417_s4 + $0x190] sm:$0xf]  ;;  %v6342_v13 = vld [vmem:[%s10416_s3 + $0x12c] sm:$0xf]  ;;  %v4667_v19 = vld [vmem:[%s10416_s3 + $0x138] sm:$0xf0] }
 0x305   :  { %2926 = vmatpush.bf16.msra.mxu2 %v4930_v3  ;;  %v4994_v3 = vor.u32 %v6426_v56, %v4993_v1  ;;  %v6445_v1 = vld [vmem:[%s10417_s4 + $0x264] sm:$0xf]  ;;  %v5075_v56 = vld [vmem:[%s10417_s4 + $0x268] sm:$0xf0] }
 0x306   :  { %v5078_v62 = vor.u32 %v6445_v1, %v5075_v56 }
 0x307   :  { %2940 = vmatpush.bf16.msra.mxu3 %v5002_v44  ;;  %v5065_v44 = vld [vmem:[%s10417_s4 + $0x250] sm:$0xf] }
 0x309   :  { %2927 = vmatpush.bf16.msra.mxu2 %v4922_v52  ;;  %v4651_v52 = vld [vmem:[%s10416_s3 + $0x118] sm:$0xf0] }
 0x30a   :  { %v4654_v51 = vor.u32 %v6338_v10, %v4651_v52  ;;  %v7998_v10 = vpop.f32.mrf.mxu2  ;;  %v6443_v52 = vld [vmem:[%s10417_s4 + $0x254] sm:$0xf]  ;;  %v8052_v1 = vpop.f32.mrf.mxu3 }
 0x30b   :  { %2941 = vmatpush.bf16.msra.mxu3 %v4994_v3  ;;  %v5066_v3 = vor.u32 %v6444_v54, %v5065_v44  ;;  %v5137_v44 = vld [vmem:[%s10417_s4 + $0x2e0] sm:$0xf]  ;;  %v6462_v54 = vld [vmem:[%s10417_s4 + $0x2e4] sm:$0xf0] }
 0x30d   :  { %2928 = vmatpush.bf16.msra.mxu2 %v4914_v47  ;;  %v5073_v47 = vld [vmem:[%s10417_s4 + $0x260] sm:$0xf] }
 0x30e   :  { %v5074_v35 = vor.u32 %v6446_v26, %v5073_v47  ;;  %v6464_v47 = vld [vmem:[%s10417_s4 + $0x2f4] sm:$0xf0]  ;;  %v4670_v26 = vor.u32 %v6342_v13, %v4667_v19 }
 0x30f   :  { %2942 = vmatpush.bf16.msra.mxu3 %v4986_v21  ;;  %v5057_v21 = vld [vmem:[%s10417_s4 + $0x240] sm:$0xf] }
 0x311   :  { %2929 = vmatpush.bf16.msra.mxu2 %v4906_v41  ;;  %v6418_v41 = vld [vmem:[%s10417_s4 + $0x184] sm:$0xf0] }
 0x312   :  { %1305 = vmatmul.bf16.gmra.mxu1 %v4638_v32  ;;  %1248 = vmatmul.bf16.gmra.mxu3 %v4762_v15  ;;  %v6420_v32 = vld [vmem:[%s10417_s4 + $0x194] sm:$0xf0]  ;;  %v6447_v15 = vld [vmem:[%s10417_s4 + $0x274] sm:$0xf]  ;;  %v4962_v14 = vor.u32 %v6418_v41, %v4961_v39  ;;  %v5041_v39 = vld [vmem:[%s10417_s4 + $0x220] sm:$0xf]  ;;  %v8072_v13 = vpop.f32.mrf.mxu2 }
 0x313   :  { %2943 = vmatpush.bf16.msra.mxu3 %v4978_v29  ;;  %v5086_v5 = vor.u32 %v6447_v15, %v5083_v34  ;;  %v5058_v29 = vor.u32 %v6442_v60, %v5057_v21  ;;  %v6438_v41 = vld [vmem:[%s10417_s4 + $0x224] sm:$0xf0]  ;;  %v5129_v21 = vld [vmem:[%s10417_s4 + $0x2d0] sm:$0xf]  ;;  %v6460_v60 = vld [vmem:[%s10417_s4 + $0x2d4] sm:$0xf0] }
 0x314   :  { %v5042_v56 = vor.u32 %v6438_v41, %v5041_v39 }
 0x315   :  { %2930 = vmatpush.bf16.msra.mxu2 %v4898_v58  ;;  %3193 = vmatpush.bf16.msra.mxu0 %v5086_v5 }
 0x319   :  { %3194 = vmatpush.bf16.msra.mxu0 %v5078_v62 }
 0x31f   :  { %v1271_v25 = vpop.f32.mrf.mxu1 }
 0x320   :  { %v1272_v31 = vadd.f32 %v1271_v25, %v7579_v22  ;;  %v4970_v22 = vor.u32 %v6420_v32, %v4969_v27  ;;  %v6441_v27 = vld [vmem:[%s10417_s4 + $0x244] sm:$0xf]  ;;  %v5059_v32 = vld [vmem:[%s10417_s4 + $0x248] sm:$0xf0] }
 0x322   :  { %1310 = vmatmul.bf16.gmra.mxu1 %v4654_v51  ;;  %2901 = vmatmul.f32.vlgmr.msrb.gmra.mxu2 %v1272_v31  ;;  %v5049_v51 = vld [vmem:[%s10417_s4 + $0x230] sm:$0xf] }
 0x323   :  { %3141 = vmatmul.f32.vlgmr.msrb.gmra.mxu0 %v1272_v31  ;;  %2953 = vmatpush.bf16.msrb.mxu2 %v5082_v16  ;;  %v6440_v16 = vld [vmem:[%s10417_s4 + $0x234] sm:$0xf0]  ;;  %v5145_v31 = vld [vmem:[%s10417_s4 + $0x2f0] sm:$0xf] }
 0x324   :  { %2944 = vmatpush.bf16.msra.mxu3 %v4970_v22  ;;  %v5050_v15 = vor.u32 %v6440_v16, %v5049_v51  ;;  %v5146_v34 = vor.u32 %v6464_v47, %v5145_v31  ;;  %v5130_v51 = vor.u32 %v6460_v60, %v5129_v21  ;;  %v6434_v47 = vld [vmem:[%s10417_s4 + $0x204] sm:$0xf0]  ;;  %v5201_v60 = vld [vmem:[%s10417_s4 + $0x360] sm:$0xf] }
 0x327   :  { %v1273_v58 = vpop.f32.mrf.mxu1  ;;  %2954 = vmatpush.bf16.msrb.mxu2 %v5074_v35  ;;  %v5062_v35 = vor.u32 %v6441_v27, %v5059_v32  ;;  %v6458_v27 = vld [vmem:[%s10417_s4 + $0x2c4] sm:$0xf0]  ;;  %v6435_v32 = vld [vmem:[%s10417_s4 + $0x214] sm:$0xf] }
 0x328   :  { %v1274_v4 = vadd.f32 %v1273_v58, %v7596_v36  ;;  %2945 = vmatpush.bf16.msra.mxu3 %v4962_v14  ;;  %v5067_v36 = vld [vmem:[%s10417_s4 + $0x258] sm:$0xf0]  ;;  %v5138_v58 = vor.u32 %v6462_v54, %v5137_v44  ;;  %v6480_v44 = vld [vmem:[%s10417_s4 + $0x374] sm:$0xf0]  ;;  %v5113_v54 = vld [vmem:[%s10417_s4 + $0x2b0] sm:$0xf] }
 0x329   :  { %v5070_v25 = vor.u32 %v6443_v52, %v5067_v36  ;;  %v5051_v14 = vld [vmem:[%s10417_s4 + $0x238] sm:$0xf0]  ;;  %v6437_v52 = vld [vmem:[%s10417_s4 + $0x224] sm:$0xf]  ;;  %v5043_v36 = vld [vmem:[%s10417_s4 + $0x228] sm:$0xf0] }
 0x32a   :  { %2904 = vmatmul.f32.gmra.mxu2 %v1274_v4  ;;  %v5046_v16 = vor.u32 %v6437_v52, %v5043_v36 }
 0x32b   :  { %3144 = vmatmul.f32.gmra.mxu0 %v1274_v4  ;;  %2955 = vmatpush.bf16.msrb.mxu2 %v5066_v3  ;;  %v5033_v3 = vld [vmem:[%s10417_s4 + $0x210] sm:$0xf]  ;;  %v6436_v4 = vld [vmem:[%s10417_s4 + $0x214] sm:$0xf0] }
 0x32c   :  { %3195 = vmatpush.bf16.msra.mxu0 %v5070_v25  ;;  %v5025_v25 = vld [vmem:[%s10417_s4 + $0x200] sm:$0xf] }
 0x32f   :  { %v1276_v22 = vpop.f32.mrf.mxu1  ;;  %2956 = vmatpush.bf16.msrb.mxu2 %v5058_v29  ;;  %v5034_v29 = vor.u32 %v6436_v4, %v5033_v3  ;;  %v5027_v3 = vld [vmem:[%s10417_s4 + $0x208] sm:$0xf0] }
 0x330   :  { %v8034_v5 = vadd.f32 %v1276_v22, %v7601_v42  ;;  %3196 = vmatpush.bf16.msra.mxu0 %v5062_v35  ;;  %v6439_v42 = vld [vmem:[%s10417_s4 + $0x234] sm:$0xf]  ;;  %v6346_v22 = vld [vmem:[%s10416_s3 + $0x14c] sm:$0xf]  ;;  %v5209_v35 = vld [vmem:[%s10417_s4 + $0x370] sm:$0xf] }
 0x331   :  { %v5054_v62 = vor.u32 %v6439_v42, %v5051_v14  ;;  %v6456_v42 = vld [vmem:[%s10417_s4 + $0x2b4] sm:$0xf0]  ;;  %v8114_v14 = vpop.f32.mrf.mxu3  ;;  %v5210_v4 = vor.u32 %v6480_v44, %v5209_v35  ;;  %v6399_v35 = vld [vmem:[%s10417_s4 + $0xf4] sm:$0xf] }
 0x332   :  { %1315 = vmatmul.bf16.gmra.mxu1 %v4670_v26  ;;  %2916 = vmatmul.f32.vlgmr.msrb.gmra.mxu3 %v8034_v5  ;;  %v5121_v26 = vld [vmem:[%s10417_s4 + $0x2c0] sm:$0xf]  ;;  %v5114_v21 = vor.u32 %v6456_v42, %v5113_v54  ;;  %v6474_v54 = vld [vmem:[%s10417_s4 + $0x344] sm:$0xf0] }
 0x333   :  { %2957 = vmatpush.bf16.msrb.mxu2 %v5050_v15  ;;  %2968 = vmatpush.bf16.msrb.mxu3 %v5146_v34  ;;  %v4683_v15 = vld [vmem:[%s10416_s3 + $0x158] sm:$0xf0]  ;;  %v5026_v34 = vor.u32 %v6434_v47, %v5025_v25  ;;  %v5122_v39 = vor.u32 %v6458_v27, %v5121_v26  ;;  %v8137_v25 = vpop.f32.mrf.mxu2  ;;  %v5193_v47 = vld [vmem:[%s10417_s4 + $0x350] sm:$0xf]  ;;  %v6476_v26 = vld [vmem:[%s10417_s4 + $0x354] sm:$0xf0] }
 0x334   :  { %3197 = vmatpush.bf16.msra.mxu0 %v5054_v62  ;;  %v5097_v27 = vld [vmem:[%s10417_s4 + $0x290] sm:$0xf]  ;;  %v5089_v42 = vld [vmem:[%s10417_s4 + $0x280] sm:$0xf] }
 0x337   :  { %v1278_v19 = vpop.f32.mrf.mxu1  ;;  %2958 = vmatpush.bf16.msrb.mxu2 %v5042_v56  ;;  %2969 = vmatpush.bf16.msrb.mxu3 %v5138_v58  ;;  %v6433_v56 = vld [vmem:[%s10417_s4 + $0x204] sm:$0xf]  ;;  %v4686_v58 = vor.u32 %v6346_v22, %v4683_v15  ;;  %v5194_v15 = vor.u32 %v6476_v26, %v5193_v47 }
 0x338   :  { %v8078_v31 = vadd.f32 %v1278_v19, %v7618_v53  ;;  %3198 = vmatpush.bf16.msra.mxu0 %v5046_v16  ;;  %v5035_v53 = vld [vmem:[%s10417_s4 + $0x218] sm:$0xf0]  ;;  %v5030_v52 = vor.u32 %v6433_v56, %v5027_v3  ;;  %v6478_v19 = vld [vmem:[%s10417_s4 + $0x364] sm:$0xf0] }
 0x339   :  { %v5038_v41 = vor.u32 %v6435_v32, %v5035_v53  ;;  %v6452_v32 = vld [vmem:[%s10417_s4 + $0x294] sm:$0xf0]  ;;  %v8152_v53 = vpop.f32.mrf.mxu3  ;;  %v6450_v56 = vld [vmem:[%s10417_s4 + $0x284] sm:$0xf0]  ;;  %v4699_v3 = vld [vmem:[%s10416_s3 + $0x178] sm:$0xf0] }
 0x33a   :  { %2919 = vmatmul.f32.gmra.mxu3 %v8078_v31 }
 0x33b   :  { %2959 = vmatpush.bf16.msrb.mxu2 %v5034_v29  ;;  %2970 = vmatpush.bf16.msrb.mxu3 %v5130_v51  ;;  %v5105_v29 = vld [vmem:[%s10417_s4 + $0x2a0] sm:$0xf]  ;;  %v6454_v51 = vld [vmem:[%s10417_s4 + $0x2a4] sm:$0xf0] }
 0x33c   :  { %3199 = vmatpush.bf16.msra.mxu0 %v5038_v41  ;;  %v5106_v16 = vor.u32 %v6454_v51, %v5105_v29  ;;  %v4891_v41 = vld [vmem:[%s10417_s4 + $0xf8] sm:$0xf0]  ;;  %v6472_v29 = vld [vmem:[%s10417_s4 + $0x334] sm:$0xf0]  ;;  %v5273_v51 = vld [vmem:[%s10417_s4 + $0x3f0] sm:$0xf] }
 0x33f   :  { %v1281_v62 = vpop.f32.mrf.mxu1  ;;  %2960 = vmatpush.bf16.msrb.mxu2 %v5026_v34  ;;  %2971 = vmatpush.bf16.msrb.mxu3 %v5122_v39  ;;  %v5098_v34 = vor.u32 %v6452_v32, %v5097_v27  ;;  %v5185_v39 = vld [vmem:[%s10417_s4 + $0x340] sm:$0xf] }
 0x340   :  { %v8126_v36 = vadd.f32 %v1281_v62, %v7621_v61  ;;  %3200 = vmatpush.bf16.msra.mxu0 %v5030_v52  ;;  %v5202_v61 = vor.u32 %v6478_v19, %v5201_v60  ;;  %v8182_v62 = vpop.f32.mrf.mxu2  ;;  %v5177_v60 = vld [vmem:[%s10417_s4 + $0x330] sm:$0xf]  ;;  %v6397_v52 = vld [vmem:[%s10417_s4 + $0xe4] sm:$0xf]  ;;  %v4883_v19 = vld [vmem:[%s10417_s4 + $0xe8] sm:$0xf0] }
 0x341   :  { %v5178_v27 = vor.u32 %v6472_v29, %v5177_v60  ;;  %v5257_v60 = vld [vmem:[%s10417_s4 + $0x3d0] sm:$0xf] }
 0x342   :  { %1320 = vmatmul.bf16.gmra.mxu1 %v4686_v58  ;;  %2931 = vmatmul.f32.vlgmr.msra.gmra.mxu2 %v8126_v36  ;;  %v4894_v58 = vor.u32 %v6399_v35, %v4891_v41  ;;  %v6494_v35 = vld [vmem:[%s10417_s4 + $0x3e4] sm:$0xf0]  ;;  %v6395_v41 = vld [vmem:[%s10417_s4 + $0xd4] sm:$0xf] }
 0x343   :  { %2983 = vmatpush.bf16.msra.mxu2 %v5210_v4  ;;  %2972 = vmatpush.bf16.msrb.mxu3 %v5114_v21  ;;  %v5186_v4 = vor.u32 %v6474_v54, %v5185_v39  ;;  %v5090_v21 = vor.u32 %v6450_v56, %v5089_v42  ;;  %v4875_v54 = vld [vmem:[%s10417_s4 + $0xd8] sm:$0xf0]  ;;  %v8223_v42 = vpop.f32.mrf.mxu3 }
 0x344   :  { %3148 = vmatpush.bf16.msra.mxu1 %v4894_v58  ;;  %v4878_v56 = vor.u32 %v6395_v41, %v4875_v54  ;;  %v4715_v54 = vld [vmem:[%s10416_s3 + $0x198] sm:$0xf0] }
 0x347   :  { %v1283_v22 = vpop.f32.mrf.mxu1  ;;  %2984 = vmatpush.bf16.msra.mxu2 %v5202_v61  ;;  %2973 = vmatpush.bf16.msrb.mxu3 %v5106_v16  ;;  %v6496_v61 = vld [vmem:[%s10417_s4 + $0x3f4] sm:$0xf0]  ;;  %v4886_v16 = vor.u32 %v6397_v52, %v4883_v19 }
 0x348   :  { %v8164_v44 = vadd.f32 %v1283_v22, %v7638_v7  ;;  %v6350_v7 = vld [vmem:[%s10416_s3 + $0x16c] sm:$0xf]  ;;  %v5274_v32 = vor.u32 %v6496_v61, %v5273_v51  ;;  %v5169_v22 = vld [vmem:[%s10417_s4 + $0x320] sm:$0xf]  ;;  %v6492_v52 = vld [vmem:[%s10417_s4 + $0x3d4] sm:$0xf0]  ;;  %v8244_v29 = vpop.f32.mrf.mxu2 }
 0x349   :  { %v4702_v47 = vor.u32 %v6350_v7, %v4699_v3  ;;  %3149 = vmatpush.bf16.msra.mxu1 %v4886_v16  ;;  %v5161_v7 = vld [vmem:[%s10417_s4 + $0x310] sm:$0xf]  ;;  %v6393_v3 = vld [vmem:[%s10417_s4 + $0xc4] sm:$0xf]  ;;  %v5258_v16 = vor.u32 %v6492_v52, %v5257_v60 }
 0x34a   :  { %2934 = vmatmul.f32.gmra.mxu2 %v8164_v44  ;;  %v5241_v52 = vld [vmem:[%s10417_s4 + $0x3b0] sm:$0xf] }
 0x34b   :  { %2985 = vmatpush.bf16.msra.mxu2 %v5194_v15  ;;  %2974 = vmatpush.bf16.msrb.mxu3 %v5098_v34  ;;  %v6470_v15 = vld [vmem:[%s10417_s4 + $0x324] sm:$0xf0]  ;;  %v5265_v34 = vld [vmem:[%s10417_s4 + $0x3e0] sm:$0xf]  ;;  %v8271_v41 = vpop.f32.mrf.mxu3 }
 0x34c   :  { %v5266_v58 = vor.u32 %v6494_v35, %v5265_v34  ;;  %v4859_v34 = vld [vmem:[%s10417_s4 + $0xb8] sm:$0xf0] }
 0x34d   :  { %3150 = vmatpush.bf16.msra.mxu1 %v4878_v56 }
 0x34f   :  { %v1286_v26 = vpop.f32.mrf.mxu1  ;;  %2986 = vmatpush.bf16.msra.mxu2 %v5186_v4  ;;  %2975 = vmatpush.bf16.msrb.mxu3 %v5090_v21  ;;  %v4867_v4 = vld [vmem:[%s10417_s4 + $0xc8] sm:$0xf0]  ;;  %v6468_v21 = vld [vmem:[%s10417_s4 + $0x314] sm:$0xf0] }
 0x350   :  { %v8212_v39 = vadd.f32 %v1286_v26, %v7655_v33  ;;  %v5170_v33 = vor.u32 %v6470_v15, %v5169_v22  ;;  %v4870_v19 = vor.u32 %v6393_v3, %v4867_v4  ;;  %v5162_v61 = vor.u32 %v6468_v21, %v5161_v7  ;;  %v6466_v26 = vld [vmem:[%s10417_s4 + $0x304] sm:$0xf0]  ;;  %v5249_v22 = vld [vmem:[%s10417_s4 + $0x3c0] sm:$0xf]  ;;  %v4851_v7 = vld [vmem:[%s10417_s4 + $0xa8] sm:$0xf0] }
 0x351   :  { %v6490_v15 = vld [vmem:[%s10417_s4 + $0x3c4] sm:$0xf0]  ;;  %v1098_v3 = vadd.f32 %v7950_v24, %v7402_v2  ;;  %v5337_v4 = vld [vmem:[%s10417_s4 + $0x470] sm:$0xf]  ;;  %v6512_v21 = vld [vmem:[%s10417_s4 + $0x474] sm:$0xf0] }
 0x352   :  { %1325 = vmatmul.bf16.gmra.mxu1 %v4702_v47  ;;  %2946 = vmatmul.f32.vlgmr.msra.gmra.mxu3 %v8212_v39  ;;  %v5153_v47 = vld [vmem:[%s10417_s4 + $0x300] sm:$0xf] }
 0x353   :  { %2987 = vmatpush.bf16.msra.mxu2 %v5178_v27  ;;  %2998 = vmatpush.bf16.msra.mxu3 %v5274_v32  ;;  %v6391_v27 = vld [vmem:[%s10417_s4 + $0xb4] sm:$0xf]  ;;  %v5154_v56 = vor.u32 %v6466_v26, %v5153_v47  ;;  %v1195_v2 = vadd.f32 %v7996_v8, %v1098_v3  ;;  %v5329_v47 = vld [vmem:[%s10417_s4 + $0x460] sm:$0xf]  ;;  %v5225_v3 = vld [vmem:[%s10417_s4 + $0x390] sm:$0xf] }
 0x354   :  { %3151 = vmatpush.bf16.msra.mxu1 %v4870_v19  ;;  %v4862_v35 = vor.u32 %v6391_v27, %v4859_v34  ;;  %v6488_v19 = vld [vmem:[%s10417_s4 + $0x3b4] sm:$0xf0]  ;;  %v6387_v8 = vld [vmem:[%s10417_s4 + $0x94] sm:$0xf]  ;;  %v5233_v34 = vld [vmem:[%s10417_s4 + $0x3a0] sm:$0xf] }
 0x355   :  { %v5242_v27 = vor.u32 %v6488_v19, %v5241_v52  ;;  %v4835_v19 = vld [vmem:[%s10417_s4 + $0x88] sm:$0xf0] }
 0x357   :  { %v1288_v51 = vpop.f32.mrf.mxu1  ;;  %2988 = vmatpush.bf16.msra.mxu2 %v5170_v33  ;;  %2999 = vmatpush.bf16.msra.mxu3 %v5266_v58  ;;  %v5250_v33 = vor.u32 %v6490_v15, %v5249_v22  ;;  %v6389_v58 = vld [vmem:[%s10417_s4 + $0xa4] sm:$0xf]  ;;  %v6510_v22 = vld [vmem:[%s10417_s4 + $0x464] sm:$0xf0]  ;;  %v4843_v15 = vld [vmem:[%s10417_s4 + $0x98] sm:$0xf0] }
 0x358   :  { %v8256_v32 = vadd.f32 %v1288_v51, %v7672_v40  ;;  %v6354_v40 = vld [vmem:[%s10416_s3 + $0x18c] sm:$0xf]  ;;  %3152 = vmatpush.bf16.msra.mxu1 %v4862_v35  ;;  %v4854_v60 = vor.u32 %v6389_v58, %v4851_v7  ;;  %v8297_v51 = vpop.f32.mrf.mxu2  ;;  %v6486_v35 = vld [vmem:[%s10417_s4 + $0x3a4] sm:$0xf0]  ;;  %v5330_v58 = vor.u32 %v6510_v22, %v5329_v47  ;;  %v6508_v7 = vld [vmem:[%s10417_s4 + $0x454] sm:$0xf0] }
 0x359   :  { %v4718_v24 = vor.u32 %v6354_v40, %v4715_v54  ;;  %v4846_v40 = vor.u32 %v6387_v8, %v4843_v15  ;;  %v6511_v54 = vld [vmem:[%s10417_s4 + $0x474] sm:$0xf]  ;;  %v5234_v52 = vor.u32 %v6486_v35, %v5233_v34  ;;  %v6509_v47 = vld [vmem:[%s10417_s4 + $0x464] sm:$0xf]  ;;  %v5313_v34 = vld [vmem:[%s10417_s4 + $0x440] sm:$0xf] }
 0x35a   :  { %2949 = vmatmul.f32.gmra.mxu3 %v8256_v32  ;;  %v6506_v35 = vld [vmem:[%s10417_s4 + $0x444] sm:$0xf0] }
 0x35b   :  { %2989 = vmatpush.bf16.msra.mxu2 %v5162_v61  ;;  %3000 = vmatpush.bf16.msra.mxu3 %v5258_v16  ;;  %v5338_v16 = vor.u32 %v6512_v21, %v5337_v4  ;;  %v6385_v21 = vld [vmem:[%s10417_s4 + $0x84] sm:$0xf] }
 0x35c   :  { %3153 = vmatpush.bf16.msra.mxu1 %v4854_v60  ;;  %v1100_v60 = vadd.f32 %v7998_v10, %v7427_v17  ;;  %v6484_v17 = vld [vmem:[%s10417_s4 + $0x394] sm:$0xf0]  ;;  %v4838_v10 = vor.u32 %v6385_v21, %v4835_v19  ;;  %v5323_v21 = vld [vmem:[%s10417_s4 + $0x458] sm:$0xf0] }
 0x35f   :  { %v1291_v61 = vpop.f32.mrf.mxu1  ;;  %2990 = vmatpush.bf16.msra.mxu2 %v5154_v56  ;;  %3001 = vmatpush.bf16.msra.mxu3 %v5250_v33  ;;  %v5321_v56 = vld [vmem:[%s10417_s4 + $0x450] sm:$0xf]  ;;  %v5339_v33 = vld [vmem:[%s10417_s4 + $0x478] sm:$0xf0] }
 0x360   :  { %v1292_v26 = vadd.f32 %v1291_v61, %v1195_v2  ;;  %v5342_v4 = vor.u32 %v6511_v54, %v5339_v33  ;;  %3154 = vmatpush.bf16.msra.mxu1 %v4846_v40  ;;  %v6463_v2 = vld [vmem:[%s10417_s4 + $0x2f4] sm:$0xf]  ;;  %v8346_v61 = vpop.f32.mrf.mxu3  ;;  %v5322_v15 = vor.u32 %v6508_v7, %v5321_v56  ;;  %v5226_v54 = vor.u32 %v6484_v17, %v5225_v3  ;;  %v5217_v33 = vld [vmem:[%s10417_s4 + $0x380] sm:$0xf]  ;;  %v5139_v56 = vld [vmem:[%s10417_s4 + $0x2e8] sm:$0xf0] }
 0x361   :  { %v6482_v7 = vld [vmem:[%s10417_s4 + $0x384] sm:$0xf0]  ;;  %v6504_v17 = vld [vmem:[%s10417_s4 + $0x434] sm:$0xf0] }
 0x362   :  { %1330 = vmatmul.bf16.gmra.mxu1 %v4718_v24  ;;  %2961 = vmatmul.f32.vlgmr.msrb.gmra.mxu2 %v1292_v26  ;;  %v5147_v24 = vld [vmem:[%s10417_s4 + $0x2f8] sm:$0xf0] }
 0x363   :  { %3201 = vmatmul.f32.vlgmr.msra.gmra.mxu0 %v1292_v26  ;;  %3013 = vmatpush.bf16.msrb.mxu2 %v5338_v16  ;;  %v5150_v16 = vor.u32 %v6463_v2, %v5147_v24  ;;  %v5331_v26 = vld [vmem:[%s10417_s4 + $0x468] sm:$0xf0]  ;;  %v5314_v2 = vor.u32 %v6506_v35, %v5313_v34  ;;  %v5305_v24 = vld [vmem:[%s10417_s4 + $0x430] sm:$0xf] }
 0x364   :  { %3002 = vmatpush.bf16.msra.mxu3 %v5242_v27  ;;  %3253 = vmatpush.bf16.msrb.mxu0 %v5342_v4  ;;  %v1197_v27 = vadd.f32 %v8052_v1, %v1100_v60  ;;  %v5334_v22 = vor.u32 %v6509_v47, %v5331_v26  ;;  %v6461_v1 = vld [vmem:[%s10417_s4 + $0x2e4] sm:$0xf]  ;;  %v6507_v4 = vld [vmem:[%s10417_s4 + $0x454] sm:$0xf]  ;;  %v6358_v60 = vld [vmem:[%s10416_s3 + $0x1ac] sm:$0xf]  ;;  %v5218_v47 = vor.u32 %v6482_v7, %v5217_v33 }
 0x365   :  { %3155 = vmatpush.bf16.msra.mxu1 %v4838_v10  ;;  %v5142_v3 = vor.u32 %v6461_v1, %v5139_v56  ;;  %v5326_v19 = vor.u32 %v6507_v4, %v5323_v21  ;;  %v5401_v10 = vld [vmem:[%s10417_s4 + $0x4f0] sm:$0xf]  ;;  %v6528_v26 = vld [vmem:[%s10417_s4 + $0x4f4] sm:$0xf0]  ;;  %v5306_v33 = vor.u32 %v6504_v17, %v5305_v24  ;;  %v5297_v56 = vld [vmem:[%s10417_s4 + $0x420] sm:$0xf] }
 0x366   :  { %v5402_v1 = vor.u32 %v6528_v26, %v5401_v10  ;;  %v6526_v4 = vld [vmem:[%s10417_s4 + $0x4e4] sm:$0xf0]  ;;  %v6457_v21 = vld [vmem:[%s10417_s4 + $0x2c4] sm:$0xf]  ;;  %v5385_v26 = vld [vmem:[%s10417_s4 + $0x4d0] sm:$0xf] }
 0x367   :  { %v1293_v8 = vpop.f32.mrf.mxu1  ;;  %3014 = vmatpush.bf16.msrb.mxu2 %v5330_v58  ;;  %v8373_v58 = vpop.f32.mrf.mxu2 }
 0x368   :  { %v1294_v40 = vadd.f32 %v1293_v8, %v1197_v27  ;;  %3003 = vmatpush.bf16.msra.mxu3 %v5234_v52  ;;  %3254 = vmatpush.bf16.msrb.mxu0 %v5334_v22  ;;  %v4731_v52 = vld [vmem:[%s10416_s3 + $0x1b8] sm:$0xf0]  ;;  %v6459_v27 = vld [vmem:[%s10417_s4 + $0x2d4] sm:$0xf] }
 0x369   :  { %3208 = vmatpush.bf16.msrb.mxu1 %v5150_v16  ;;  %v1103_v16 = vadd.f32 %v8072_v13, %v7434_v23  ;;  %v5131_v22 = vld [vmem:[%s10417_s4 + $0x2d8] sm:$0xf0]  ;;  %v6505_v23 = vld [vmem:[%s10417_s4 + $0x444] sm:$0xf]  ;;  %v5315_v13 = vld [vmem:[%s10417_s4 + $0x448] sm:$0xf0]  ;;  %v4734_v34 = vor.u32 %v6358_v60, %v4731_v52 }
 0x36a   :  { %2964 = vmatmul.f32.gmra.mxu2 %v1294_v40  ;;  %v5134_v8 = vor.u32 %v6459_v27, %v5131_v22  ;;  %v5318_v35 = vor.u32 %v6505_v23, %v5315_v13  ;;  %v5123_v60 = vld [vmem:[%s10417_s4 + $0x2c8] sm:$0xf0]  ;;  %v1105_v22 = vadd.f32 %v8137_v25, %v7458_v20  ;;  %v6455_v23 = vld [vmem:[%s10417_s4 + $0x2b4] sm:$0xf]  ;;  %v5115_v13 = vld [vmem:[%s10417_s4 + $0x2b8] sm:$0xf0] }
 0x36b   :  { %3204 = vmatmul.f32.gmra.mxu0 %v1294_v40  ;;  %3015 = vmatpush.bf16.msrb.mxu2 %v5322_v15  ;;  %v1200_v15 = vadd.f32 %v8114_v14, %v1103_v16  ;;  %v8417_v40 = vpop.f32.mrf.mxu3  ;;  %v5393_v14 = vld [vmem:[%s10417_s4 + $0x4e0] sm:$0xf]  ;;  %v5126_v52 = vor.u32 %v6457_v21, %v5123_v60  ;;  %v5289_v16 = vld [vmem:[%s10417_s4 + $0x410] sm:$0xf]  ;;  %v5299_v20 = vld [vmem:[%s10417_s4 + $0x428] sm:$0xf0] }
 0x36c   :  { %3004 = vmatpush.bf16.msra.mxu3 %v5226_v54  ;;  %3255 = vmatpush.bf16.msrb.mxu0 %v5326_v19  ;;  %v6503_v19 = vld [vmem:[%s10417_s4 + $0x434] sm:$0xf]  ;;  %v5394_v10 = vor.u32 %v6526_v4, %v5393_v14  ;;  %v1202_v25 = vadd.f32 %v8152_v53, %v1105_v22  ;;  %v5377_v53 = vld [vmem:[%s10417_s4 + $0x4c0] sm:$0xf]  ;;  %v6522_v4 = vld [vmem:[%s10417_s4 + $0x4c4] sm:$0xf0] }
 0x36d   :  { %3209 = vmatpush.bf16.msrb.mxu1 %v5142_v3  ;;  %v6502_v3 = vld [vmem:[%s10417_s4 + $0x424] sm:$0xf0]  ;;  %v6453_v21 = vld [vmem:[%s10417_s4 + $0x2a4] sm:$0xf]  ;;  %v5465_v22 = vld [vmem:[%s10417_s4 + $0x570] sm:$0xf] }
 0x36e   :  { %v5298_v17 = vor.u32 %v6502_v3, %v5297_v56  ;;  %v5281_v56 = vld [vmem:[%s10417_s4 + $0x400] sm:$0xf]  ;;  %v6498_v3 = vld [vmem:[%s10417_s4 + $0x404] sm:$0xf0] }
 0x36f   :  { %v1296_v54 = vpop.f32.mrf.mxu1  ;;  %3016 = vmatpush.bf16.msrb.mxu2 %v5314_v2  ;;  %v5307_v2 = vld [vmem:[%s10417_s4 + $0x438] sm:$0xf0]  ;;  %v8446_v24 = vpop.f32.mrf.mxu2 }
 0x370   :  { %v8422_v7 = vadd.f32 %v1296_v54, %v1200_v15  ;;  %3005 = vmatpush.bf16.msra.mxu3 %v5218_v47  ;;  %3256 = vmatpush.bf16.msrb.mxu0 %v5318_v35  ;;  %v6500_v47 = vld [vmem:[%s10417_s4 + $0x414] sm:$0xf0]  ;;  %v5310_v27 = vor.u32 %v6503_v19, %v5307_v2  ;;  %v5118_v15 = vor.u32 %v6455_v23, %v5115_v13  ;;  %v6499_v19 = vld [vmem:[%s10417_s4 + $0x414] sm:$0xf]  ;;  %v5291_v2 = vld [vmem:[%s10417_s4 + $0x418] sm:$0xf0] }
 0x371   :  { %3210 = vmatpush.bf16.msrb.mxu1 %v5134_v8  ;;  %v6524_v8 = vld [vmem:[%s10417_s4 + $0x4d4] sm:$0xf0]  ;;  %v5369_v23 = vld [vmem:[%s10417_s4 + $0x4b0] sm:$0xf]  ;;  %v1108_v13 = vadd.f32 %v8182_v62, %v7468_v0  ;;  %v6497_v0 = vld [vmem:[%s10417_s4 + $0x404] sm:$0xf] }
 0x372   :  { %1335 = vmatmul.bf16.gmra.mxu1 %v4734_v34  ;;  %2976 = vmatmul.f32.vlgmr.msrb.gmra.mxu3 %v8422_v7  ;;  %v6501_v34 = vld [vmem:[%s10417_s4 + $0x424] sm:$0xf]  ;;  %v5283_v62 = vld [vmem:[%s10417_s4 + $0x408] sm:$0xf0] }
 0x373   :  { %3017 = vmatpush.bf16.msrb.mxu2 %v5306_v33  ;;  %v5302_v35 = vor.u32 %v6501_v34, %v5299_v20  ;;  %v5290_v33 = vor.u32 %v6500_v47, %v5289_v16  ;;  %v8492_v60 = vpop.f32.mrf.mxu3  ;;  %v5294_v47 = vor.u32 %v6499_v19, %v5291_v2  ;;  %v6451_v34 = vld [vmem:[%s10417_s4 + $0x294] sm:$0xf]  ;;  %v5099_v20 = vld [vmem:[%s10417_s4 + $0x298] sm:$0xf0]  ;;  %v6518_v19 = vld [vmem:[%s10417_s4 + $0x4a4] sm:$0xf0] }
 0x374   :  { %3028 = vmatpush.bf16.msrb.mxu3 %v5402_v1  ;;  %3257 = vmatpush.bf16.msrb.mxu0 %v5310_v27  ;;  %v5386_v1 = vor.u32 %v6524_v8, %v5385_v26  ;;  %v5282_v26 = vor.u32 %v6498_v3, %v5281_v56  ;;  %v5378_v27 = vor.u32 %v6522_v4, %v5377_v53  ;;  %v6544_v8 = vld [vmem:[%s10417_s4 + $0x574] sm:$0xf0]  ;;  %v5457_v4 = vld [vmem:[%s10417_s4 + $0x560] sm:$0xf]  ;;  %v6449_v2 = vld [vmem:[%s10417_s4 + $0x284] sm:$0xf] }
 0x375   :  { %3211 = vmatpush.bf16.msrb.mxu1 %v5126_v52  ;;  %v5107_v52 = vld [vmem:[%s10417_s4 + $0x2a8] sm:$0xf0]  ;;  %v5466_v3 = vor.u32 %v6544_v8, %v5465_v22  ;;  %v1110_v22 = vadd.f32 %v8244_v29, %v7484_v49  ;;  %v6540_v8 = vld [vmem:[%s10417_s4 + $0x554] sm:$0xf0] }
 0x376   :  { %v5110_v16 = vor.u32 %v6453_v21, %v5107_v52  ;;  %v6542_v52 = vld [vmem:[%s10417_s4 + $0x564] sm:$0xf0] }
 0x377   :  { %v1298_v54 = vpop.f32.mrf.mxu1  ;;  %3018 = vmatpush.bf16.msrb.mxu2 %v5298_v17  ;;  %v6362_v17 = vld [vmem:[%s10416_s3 + $0x1cc] sm:$0xf] }
 0x378   :  { %3029 = vmatpush.bf16.msrb.mxu3 %v5394_v10  ;;  %v8481_v14 = vadd.f32 %v1298_v54, %v1202_v25  ;;  %3258 = vmatpush.bf16.msrb.mxu0 %v5302_v35  ;;  %v4747_v10 = vld [vmem:[%s10416_s3 + $0x1d8] sm:$0xf0]  ;;  %v8530_v25 = vpop.f32.mrf.mxu2  ;;  %v5102_v35 = vor.u32 %v6451_v34, %v5099_v20  ;;  %v1205_v54 = vadd.f32 %v8223_v42, %v1108_v13  ;;  %v5361_v42 = vld [vmem:[%s10417_s4 + $0x4a0] sm:$0xf]  ;;  %v6516_v13 = vld [vmem:[%s10417_s4 + $0x494] sm:$0xf0] }
 0x379   :  { %3212 = vmatpush.bf16.msrb.mxu1 %v5118_v15  ;;  %v6520_v15 = vld [vmem:[%s10417_s4 + $0x4b4] sm:$0xf0] }
 0x37a   :  { %2979 = vmatmul.f32.gmra.mxu3 %v8481_v14  ;;  %v5370_v53 = vor.u32 %v6520_v15, %v5369_v23  ;;  %v5353_v23 = vld [vmem:[%s10417_s4 + $0x490] sm:$0xf]  ;;  %v1207_v15 = vadd.f32 %v8271_v41, %v1110_v22  ;;  %v5345_v41 = vld [vmem:[%s10417_s4 + $0x480] sm:$0xf]  ;;  %v6534_v22 = vld [vmem:[%s10417_s4 + $0x524] sm:$0xf0] }
 0x37b   :  { %3019 = vmatpush.bf16.msrb.mxu2 %v5290_v33  ;;  %v4750_v33 = vor.u32 %v6362_v17, %v4747_v10  ;;  %v5091_v17 = vld [vmem:[%s10417_s4 + $0x288] sm:$0xf0]  ;;  %v5354_v29 = vor.u32 %v6516_v13, %v5353_v23 }
 0x37c   :  { %3030 = vmatpush.bf16.msrb.mxu3 %v5386_v1  ;;  %3259 = vmatpush.bf16.msrb.mxu0 %v5294_v47  ;;  %v5286_v1 = vor.u32 %v6497_v0, %v5283_v62  ;;  %v5094_v10 = vor.u32 %v6449_v2, %v5091_v17  ;;  %v5458_v47 = vor.u32 %v6542_v52, %v5457_v4  ;;  %v6538_v62 = vld [vmem:[%s10417_s4 + $0x544] sm:$0xf0]  ;;  %v6536_v52 = vld [vmem:[%s10417_s4 + $0x534] sm:$0xf0] }
 0x37d   :  { %3213 = vmatpush.bf16.msrb.mxu1 %v5110_v16  ;;  %v8560_v16 = vpop.f32.mrf.mxu3  ;;  %v1113_v4 = vadd.f32 %v8297_v51, %v7504_v6 }
 0x37f   :  { %v1301_v56 = vpop.f32.mrf.mxu1  ;;  %3020 = vmatpush.bf16.msrb.mxu2 %v5282_v26  ;;  %v5362_v26 = vor.u32 %v6518_v19, %v5361_v42  ;;  %v5529_v42 = vld [vmem:[%s10417_s4 + $0x5f0] sm:$0xf]  ;;  %v6560_v19 = vld [vmem:[%s10417_s4 + $0x5f4] sm:$0xf0]  ;;  %v1210_v17 = vadd.f32 %v8346_v61, %v1113_v4  ;;  %v5521_v61 = vld [vmem:[%s10417_s4 + $0x5e0] sm:$0xf] }
 0x380   :  { %3031 = vmatpush.bf16.msrb.mxu3 %v5378_v27  ;;  %v8542_v21 = vadd.f32 %v1301_v56, %v1205_v54  ;;  %3260 = vmatpush.bf16.msrb.mxu0 %v5286_v1  ;;  %v5449_v27 = vld [vmem:[%s10417_s4 + $0x550] sm:$0xf]  ;;  %v8577_v34 = vpop.f32.mrf.mxu2  ;;  %v6514_v54 = vld [vmem:[%s10417_s4 + $0x484] sm:$0xf0]  ;;  %v4763_v1 = vld [vmem:[%s10416_s3 + $0x1f8] sm:$0xf0]  ;;  %v5530_v51 = vor.u32 %v6560_v19, %v5529_v42  ;;  %v1118_v19 = vadd.f32 %v8446_v24, %v7523_v30 }
 0x381   :  { %3214 = vmatpush.bf16.msrb.mxu1 %v5102_v35  ;;  %v5450_v49 = vor.u32 %v6540_v8, %v5449_v27  ;;  %v5441_v35 = vld [vmem:[%s10417_s4 + $0x540] sm:$0xf]  ;;  %v6558_v8 = vld [vmem:[%s10417_s4 + $0x5e4] sm:$0xf0]  ;;  %v5497_v30 = vld [vmem:[%s10417_s4 + $0x5b0] sm:$0xf] }
 0x382   :  { %1340 = vmatmul.bf16.gmra.mxu1 %v4750_v33  ;;  %2991 = vmatmul.f32.vlgmr.msra.gmra.mxu2 %v8542_v21  ;;  %v6366_v33 = vld [vmem:[%s10416_s3 + $0x1ec] sm:$0xf]  ;;  %v5442_v56 = vor.u32 %v6538_v62, %v5441_v35  ;;  %v5513_v35 = vld [vmem:[%s10417_s4 + $0x5d0] sm:$0xf]  ;;  %v6556_v62 = vld [vmem:[%s10417_s4 + $0x5d4] sm:$0xf0] }
 0x383   :  { %3043 = vmatpush.bf16.msra.mxu2 %v5466_v3  ;;  %v5346_v3 = vor.u32 %v6514_v54, %v5345_v41  ;;  %v6552_v24 = vld [vmem:[%s10417_s4 + $0x5b4] sm:$0xf0] }
 0x384   :  { %3032 = vmatpush.bf16.msrb.mxu3 %v5370_v53  ;;  %v5433_v53 = vld [vmem:[%s10417_s4 + $0x530] sm:$0xf] }
 0x385   :  { %3215 = vmatpush.bf16.msrb.mxu1 %v5094_v10  ;;  %v8614_v2 = vpop.f32.mrf.mxu3  ;;  %v4766_v10 = vor.u32 %v6366_v33, %v4763_v1  ;;  %v5434_v6 = vor.u32 %v6536_v52, %v5433_v53  ;;  %v5409_v1 = vld [vmem:[%s10417_s4 + $0x500] sm:$0xf]  ;;  %v6554_v53 = vld [vmem:[%s10417_s4 + $0x5c4] sm:$0xf0] }
 0x387   :  { %v1303_v20 = vpop.f32.mrf.mxu1  ;;  %3044 = vmatpush.bf16.msra.mxu2 %v5458_v47 }
 0x388   :  { %3033 = vmatpush.bf16.msrb.mxu3 %v5362_v26  ;;  %v8582_v0 = vadd.f32 %v1303_v20, %v1207_v15  ;;  %v5425_v26 = vld [vmem:[%s10417_s4 + $0x520] sm:$0xf]  ;;  %v8631_v23 = vpop.f32.mrf.mxu2  ;;  %v5522_v15 = vor.u32 %v6558_v8, %v5521_v61  ;;  %v5417_v20 = vld [vmem:[%s10417_s4 + $0x510] sm:$0xf]  ;;  %v6525_v8 = vld [vmem:[%s10417_s4 + $0x4e4] sm:$0xf] }
 0x389   :  { %v5426_v13 = vor.u32 %v6534_v22, %v5425_v26 }
 0x38a   :  { %2994 = vmatmul.f32.gmra.mxu2 %v8582_v0 }
 0x38b   :  { %3045 = vmatpush.bf16.msra.mxu2 %v5450_v49  ;;  %v1115_v49 = vadd.f32 %v8373_v58, %v7506_v12  ;;  %v5514_v58 = vor.u32 %v6556_v62, %v5513_v35  ;;  %v5489_v35 = vld [vmem:[%s10417_s4 + $0x5a0] sm:$0xf]  ;;  %v6550_v62 = vld [vmem:[%s10417_s4 + $0x5a4] sm:$0xf0] }
 0x38c   :  { %3034 = vmatpush.bf16.msrb.mxu3 %v5354_v29  ;;  %v6532_v29 = vld [vmem:[%s10417_s4 + $0x514] sm:$0xf0] }
 0x38d   :  { %v1212_v41 = vadd.f32 %v8417_v40, %v1115_v49  ;;  %v8649_v54 = vpop.f32.mrf.mxu3  ;;  %v5418_v12 = vor.u32 %v6532_v29, %v5417_v20  ;;  %v5505_v40 = vld [vmem:[%s10417_s4 + $0x5c0] sm:$0xf]  ;;  %v5498_v20 = vor.u32 %v6552_v24, %v5497_v30  ;;  %v6574_v29 = vld [vmem:[%s10417_s4 + $0x664] sm:$0xf0]  ;;  %v6521_v24 = vld [vmem:[%s10417_s4 + $0x4c4] sm:$0xf] }
 0x38e   :  { %v5506_v42 = vor.u32 %v6554_v53, %v5505_v40  ;;  %v5585_v49 = vld [vmem:[%s10417_s4 + $0x660] sm:$0xf]  ;;  %v5490_v53 = vor.u32 %v6550_v62, %v5489_v35 }
 0x38f   :  { %v1306_v47 = vpop.f32.mrf.mxu1  ;;  %3046 = vmatpush.bf16.msra.mxu2 %v5442_v56  ;;  %v5586_v40 = vor.u32 %v6574_v29, %v5585_v49  ;;  %v6571_v49 = vld [vmem:[%s10417_s4 + $0x654] sm:$0xf]  ;;  %v5579_v29 = vld [vmem:[%s10417_s4 + $0x658] sm:$0xf0] }
 0x390   :  { %3035 = vmatpush.bf16.msrb.mxu3 %v5346_v3  ;;  %v8620_v27 = vadd.f32 %v1306_v47, %v1210_v17  ;;  %v6530_v3 = vld [vmem:[%s10417_s4 + $0x504] sm:$0xf0]  ;;  %v8666_v4 = vpop.f32.mrf.mxu2  ;;  %v6527_v17 = vld [vmem:[%s10417_s4 + $0x4f4] sm:$0xf]  ;;  %v5593_v47 = vld [vmem:[%s10417_s4 + $0x670] sm:$0xf] }
 0x391   :  { %v5410_v52 = vor.u32 %v6530_v3, %v5409_v1  ;;  %v1120_v1 = vadd.f32 %v8530_v25, %v7538_v43  ;;  %v5387_v3 = vld [vmem:[%s10417_s4 + $0x4d8] sm:$0xf0]  ;;  %v6572_v43 = vld [vmem:[%s10417_s4 + $0x654] sm:$0xf0]  ;;  %v5481_v25 = vld [vmem:[%s10417_s4 + $0x590] sm:$0xf] }
 0x392   :  { %1345 = vmatmul.bf16.gmra.mxu1 %v4766_v10  ;;  %3006 = vmatmul.f32.vlgmr.msra.gmra.mxu3 %v8620_v27  ;;  %v5403_v10 = vld [vmem:[%s10417_s4 + $0x4f8] sm:$0xf0] }
 0x393   :  { %3047 = vmatpush.bf16.msra.mxu2 %v5434_v6  ;;  %v6576_v6 = vld [vmem:[%s10417_s4 + $0x674] sm:$0xf0]  ;;  %v5406_v22 = vor.u32 %v6527_v17, %v5403_v10  ;;  %v1217_v17 = vadd.f32 %v8560_v16, %v1120_v1  ;;  %v6573_v10 = vld [vmem:[%s10417_s4 + $0x664] sm:$0xf]  ;;  %v5379_v16 = vld [vmem:[%s10417_s4 + $0x4c8] sm:$0xf0] }
 0x394   :  { %3058 = vmatpush.bf16.msra.mxu3 %v5530_v51  ;;  %v1215_v51 = vadd.f32 %v8492_v60, %v1118_v19  ;;  %v6548_v19 = vld [vmem:[%s10417_s4 + $0x594] sm:$0xf0]  ;;  %v5382_v62 = vor.u32 %v6521_v24, %v5379_v16  ;;  %v5649_v24 = vld [vmem:[%s10417_s4 + $0x6e0] sm:$0xf]  ;;  %v6566_v16 = vld [vmem:[%s10417_s4 + $0x624] sm:$0xf0] }
 0x395   :  { %v8698_v60 = vpop.f32.mrf.mxu3 }
 0x397   :  { %v1308_v33 = vpop.f32.mrf.mxu1  ;;  %3048 = vmatpush.bf16.msra.mxu2 %v5426_v13  ;;  %v5395_v13 = vld [vmem:[%s10417_s4 + $0x4e8] sm:$0xf0] }
 0x398   :  { %3059 = vmatpush.bf16.msra.mxu3 %v5522_v15  ;;  %v8654_v56 = vadd.f32 %v1308_v33, %v1212_v41  ;;  %v5594_v15 = vor.u32 %v6576_v6, %v5593_v47  ;;  %v6575_v41 = vld [vmem:[%s10417_s4 + $0x674] sm:$0xf]  ;;  %v5595_v33 = vld [vmem:[%s10417_s4 + $0x678] sm:$0xf0]  ;;  %v5587_v47 = vld [vmem:[%s10417_s4 + $0x668] sm:$0xf0] }
 0x39a   :  { %3009 = vmatmul.f32.gmra.mxu3 %v8654_v56 }
 0x39b   :  { %3049 = vmatpush.bf16.msra.mxu2 %v5418_v12  ;;  %v5398_v12 = vor.u32 %v6525_v8, %v5395_v13  ;;  %v5569_v8 = vld [vmem:[%s10417_s4 + $0x640] sm:$0xf]  ;;  %v6570_v13 = vld [vmem:[%s10417_s4 + $0x644] sm:$0xf0] }
 0x39c   :  { %3060 = vmatpush.bf16.msra.mxu3 %v5514_v58  ;;  %v5598_v58 = vor.u32 %v6575_v41, %v5595_v33  ;;  %v6519_v41 = vld [vmem:[%s10417_s4 + $0x4b4] sm:$0xf]  ;;  %v5582_v33 = vor.u32 %v6571_v49, %v5579_v29  ;;  %v1125_v49 = vadd.f32 %v8631_v23, %v7576_v48  ;;  %v5545_v48 = vld [vmem:[%s10417_s4 + $0x610] sm:$0xf]  ;;  %v6564_v23 = vld [vmem:[%s10417_s4 + $0x614] sm:$0xf0] }
 0x39d   :  { %v8770_v35 = vpop.f32.mrf.mxu3 }
 0x39e   :  { %3313 = vmatpush.bf16.msra.mxu0 %v5598_v58  ;;  %v5570_v58 = vor.u32 %v6570_v13, %v5569_v8  ;;  %v6515_v13 = vld [vmem:[%s10417_s4 + $0x494] sm:$0xf] }
 0x39f   :  { %v1311_v26 = vpop.f32.mrf.mxu1  ;;  %3050 = vmatpush.bf16.msra.mxu2 %v5410_v52  ;;  %v5577_v52 = vld [vmem:[%s10417_s4 + $0x650] sm:$0xf] }
 0x3a0   :  { %3061 = vmatpush.bf16.msra.mxu3 %v5506_v42  ;;  %v1312_v61 = vadd.f32 %v1311_v26, %v1215_v51  ;;  %v8727_v42 = vpop.f32.mrf.mxu2  ;;  %v5590_v51 = vor.u32 %v6573_v10, %v5587_v47 }
 0x3a2   :  { %3021 = vmatmul.f32.vlgmr.msrb.gmra.mxu2 %v1312_v61  ;;  %3156 = vmatmul.f32.vlgmr.msra.gmra.mxu1 %v8034_v5  ;;  %v6523_v5 = vld [vmem:[%s10417_s4 + $0x4d4] sm:$0xf] }
 0x3a3   :  { %3261 = vmatmul.f32.vlgmr.msrb.gmra.mxu0 %v1312_v61  ;;  %3268 = vmatpush.bf16.msra.mxu1 %v5406_v22  ;;  %v5390_v30 = vor.u32 %v6523_v5, %v5387_v3  ;;  %v5578_v22 = vor.u32 %v6572_v43, %v5577_v52  ;;  %v5482_v61 = vor.u32 %v6548_v19, %v5481_v25  ;;  %v5657_v5 = vld [vmem:[%s10417_s4 + $0x6f0] sm:$0xf]  ;;  %v6592_v3 = vld [vmem:[%s10417_s4 + $0x6f4] sm:$0xf0]  ;;  %v5571_v52 = vld [vmem:[%s10417_s4 + $0x648] sm:$0xf0] }
 0x3a4   :  { %3073 = vmatpush.bf16.msrb.mxu2 %v5594_v15  ;;  %3062 = vmatpush.bf16.msra.mxu3 %v5498_v20  ;;  %v5473_v15 = vld [vmem:[%s10417_s4 + $0x580] sm:$0xf]  ;;  %v6546_v20 = vld [vmem:[%s10417_s4 + $0x584] sm:$0xf0]  ;;  %v5658_v10 = vor.u32 %v6592_v3, %v5657_v5 }
 0x3a5   :  { %3314 = vmatpush.bf16.msra.mxu0 %v5590_v51  ;;  %v5474_v1 = vor.u32 %v6546_v20, %v5473_v15  ;;  %v6590_v51 = vld [vmem:[%s10417_s4 + $0x6e4] sm:$0xf0] }
 0x3a6   :  { %v5650_v15 = vor.u32 %v6590_v51, %v5649_v24  ;;  %v5547_v24 = vld [vmem:[%s10417_s4 + $0x618] sm:$0xf0] }
 0x3a7   :  { %v1313_v6 = vpop.f32.mrf.mxu1  ;;  %3269 = vmatpush.bf16.msra.mxu1 %v5398_v12  ;;  %v1123_v12 = vadd.f32 %v8577_v34, %v7556_v63  ;;  %v5561_v63 = vld [vmem:[%s10417_s4 + $0x630] sm:$0xf]  ;;  %v6568_v34 = vld [vmem:[%s10417_s4 + $0x634] sm:$0xf0] }
 0x3a8   :  { %v1314_v26 = vadd.f32 %v1313_v6, %v1217_v17  ;;  %3074 = vmatpush.bf16.msrb.mxu2 %v5586_v40  ;;  %3063 = vmatpush.bf16.msra.mxu3 %v5490_v53  ;;  %v6569_v40 = vld [vmem:[%s10417_s4 + $0x644] sm:$0xf]  ;;  %v8799_v43 = vpop.f32.mrf.mxu2 }
 0x3a9   :  { %3315 = vmatpush.bf16.msra.mxu0 %v5582_v33  ;;  %v1220_v53 = vadd.f32 %v8614_v2, %v1123_v12  ;;  %v6517_v17 = vld [vmem:[%s10417_s4 + $0x4a4] sm:$0xf]  ;;  %v5574_v47 = vor.u32 %v6569_v40, %v5571_v52  ;;  %v5363_v2 = vld [vmem:[%s10417_s4 + $0x4a8] sm:$0xf0]  ;;  %v8843_v33 = vpop.f32.mrf.mxu3  ;;  %v6562_v40 = vld [vmem:[%s10417_s4 + $0x604] sm:$0xf0] }
 0x3aa   :  { %3024 = vmatmul.f32.gmra.mxu2 %v1314_v26  ;;  %3159 = vmatmul.f32.gmra.mxu1 %v8078_v31  ;;  %v5371_v31 = vld [vmem:[%s10417_s4 + $0x4b8] sm:$0xf0]  ;;  %v5366_v8 = vor.u32 %v6517_v17, %v5363_v2  ;;  %v6565_v12 = vld [vmem:[%s10417_s4 + $0x624] sm:$0xf]  ;;  %v6586_v17 = vld [vmem:[%s10417_s4 + $0x6c4] sm:$0xf0] }
 0x3ab   :  { %3264 = vmatmul.f32.gmra.mxu0 %v1314_v26  ;;  %3270 = vmatpush.bf16.msra.mxu1 %v5390_v30  ;;  %v5374_v19 = vor.u32 %v6519_v41, %v5371_v31  ;;  %v5562_v30 = vor.u32 %v6568_v34, %v5561_v63  ;;  %v5553_v26 = vld [vmem:[%s10417_s4 + $0x620] sm:$0xf]  ;;  %v6588_v41 = vld [vmem:[%s10417_s4 + $0x6d4] sm:$0xf0]  ;;  %v1222_v31 = vadd.f32 %v8649_v54, %v1125_v49  ;;  %v5347_v63 = vld [vmem:[%s10417_s4 + $0x488] sm:$0xf0] }
 0x3ac   :  { %3075 = vmatpush.bf16.msrb.mxu2 %v5578_v22  ;;  %3064 = vmatpush.bf16.msra.mxu3 %v5482_v61  ;;  %v6567_v22 = vld [vmem:[%s10417_s4 + $0x634] sm:$0xf]  ;;  %v5563_v61 = vld [vmem:[%s10417_s4 + $0x638] sm:$0xf0]  ;;  %v5554_v29 = vor.u32 %v6566_v16, %v5553_v26  ;;  %v5537_v54 = vld [vmem:[%s10417_s4 + $0x600] sm:$0xf] }
 0x3ad   :  { %3316 = vmatpush.bf16.msra.mxu0 %v5574_v47  ;;  %v5566_v20 = vor.u32 %v6567_v22, %v5563_v61  ;;  %v5659_v2 = vld [vmem:[%s10417_s4 + $0x6f8] sm:$0xf0]  ;;  %v5721_v22 = vld [vmem:[%s10417_s4 + $0x770] sm:$0xf]  ;;  %v6608_v61 = vld [vmem:[%s10417_s4 + $0x774] sm:$0xf0] }
 0x3ae   :  { %v6589_v49 = vld [vmem:[%s10417_s4 + $0x6e4] sm:$0xf] }
 0x3af   :  { %v1316_v25 = vpop.f32.mrf.mxu1  ;;  %3271 = vmatpush.bf16.msra.mxu1 %v5382_v62  ;;  %v5641_v62 = vld [vmem:[%s10417_s4 + $0x6d0] sm:$0xf] }
 0x3b0   :  { %v8804_v6 = vadd.f32 %v1316_v25, %v1220_v53  ;;  %3076 = vmatpush.bf16.msrb.mxu2 %v5570_v58  ;;  %3065 = vmatpush.bf16.msra.mxu3 %v5474_v1  ;;  %v6513_v58 = vld [vmem:[%s10417_s4 + $0x484] sm:$0xf]  ;;  %v5555_v1 = vld [vmem:[%s10417_s4 + $0x628] sm:$0xf0]  ;;  %v5642_v34 = vor.u32 %v6588_v41, %v5641_v62  ;;  %v5546_v25 = vor.u32 %v6564_v23, %v5545_v48  ;;  %v8881_v47 = vpop.f32.mrf.mxu2 }
 0x3b1   :  { %3317 = vmatpush.bf16.msra.mxu0 %v5566_v20  ;;  %v5558_v53 = vor.u32 %v6565_v12, %v5555_v1  ;;  %v5350_v26 = vor.u32 %v6513_v58, %v5347_v63  ;;  %v8921_v41 = vpop.f32.mrf.mxu3  ;;  %v5722_v23 = vor.u32 %v6608_v61, %v5721_v22  ;;  %v6606_v1 = vld [vmem:[%s10417_s4 + $0x764] sm:$0xf0]  ;;  %v6587_v63 = vld [vmem:[%s10417_s4 + $0x6d4] sm:$0xf] }
 0x3b2   :  { %3036 = vmatmul.f32.vlgmr.msrb.gmra.mxu3 %v8804_v6  ;;  %3216 = vmatmul.f32.vlgmr.msrb.gmra.mxu1 %v8422_v7  ;;  %v5355_v7 = vld [vmem:[%s10417_s4 + $0x498] sm:$0xf0]  ;;  %v6602_v61 = vld [vmem:[%s10417_s4 + $0x744] sm:$0xf0] }
 0x3b3   :  { %3272 = vmatpush.bf16.msra.mxu1 %v5374_v19  ;;  %v5358_v3 = vor.u32 %v6515_v13, %v5355_v7  ;;  %v5633_v19 = vld [vmem:[%s10417_s4 + $0x6c0] sm:$0xf]  ;;  %v5538_v13 = vor.u32 %v6562_v40, %v5537_v54  ;;  %v5651_v7 = vld [vmem:[%s10417_s4 + $0x6e8] sm:$0xf0] }
 0x3b4   :  { %3088 = vmatpush.bf16.msrb.mxu3 %v5658_v10  ;;  %3077 = vmatpush.bf16.msrb.mxu2 %v5562_v30  ;;  %v6591_v10 = vld [vmem:[%s10417_s4 + $0x6f4] sm:$0xf]  ;;  %v5634_v16 = vor.u32 %v6586_v17, %v5633_v19  ;;  %v1130_v19 = vadd.f32 %v8727_v42, %v7598_v59  ;;  %v6604_v17 = vld [vmem:[%s10417_s4 + $0x754] sm:$0xf0]  ;;  %v5635_v59 = vld [vmem:[%s10417_s4 + $0x6c8] sm:$0xf0] }
 0x3b5   :  { %3318 = vmatpush.bf16.msra.mxu0 %v5558_v53  ;;  %v6563_v30 = vld [vmem:[%s10417_s4 + $0x614] sm:$0xf]  ;;  %v5662_v20 = vor.u32 %v6591_v10, %v5659_v2  ;;  %v6580_v10 = vld [vmem:[%s10417_s4 + $0x694] sm:$0xf0] }
 0x3b6   :  { %v5550_v51 = vor.u32 %v6563_v30, %v5547_v24  ;;  %v6585_v30 = vld [vmem:[%s10417_s4 + $0x6c4] sm:$0xf]  ;;  %v1227_v42 = vadd.f32 %v8770_v35, %v1130_v19  ;;  %v6578_v35 = vld [vmem:[%s10417_s4 + $0x684] sm:$0xf0] }
 0x3b7   :  { %v1318_v5 = vpop.f32.mrf.mxu1  ;;  %3273 = vmatpush.bf16.msra.mxu1 %v5366_v8  ;;  %v1128_v8 = vadd.f32 %v8666_v4, %v7581_v37  ;;  %v6561_v37 = vld [vmem:[%s10417_s4 + $0x604] sm:$0xf]  ;;  %v5539_v4 = vld [vmem:[%s10417_s4 + $0x608] sm:$0xf0] }
 0x3b8   :  { %3089 = vmatpush.bf16.msrb.mxu3 %v5650_v15  ;;  %v8870_v52 = vadd.f32 %v1318_v5, %v1222_v31  ;;  %3078 = vmatpush.bf16.msrb.mxu2 %v5554_v29  ;;  %v6584_v15 = vld [vmem:[%s10417_s4 + $0x6b4] sm:$0xf0]  ;;  %v5542_v62 = vor.u32 %v6561_v37, %v5539_v4  ;;  %v5713_v31 = vld [vmem:[%s10417_s4 + $0x760] sm:$0xf]  ;;  %v6582_v5 = vld [vmem:[%s10417_s4 + $0x6a4] sm:$0xf0]  ;;  %v8945_v54 = vpop.f32.mrf.mxu2  ;;  %v1133_v4 = vadd.f32 %v8799_v43, %v7615_v50 }
 0x3b9   :  { %3319 = vmatpush.bf16.msra.mxu0 %v5550_v51  ;;  %v1225_v29 = vadd.f32 %v8698_v60, %v1128_v8  ;;  %v5617_v60 = vld [vmem:[%s10417_s4 + $0x6a0] sm:$0xf]  ;;  %v5714_v40 = vor.u32 %v6606_v1, %v5713_v31  ;;  %v5689_v37 = vld [vmem:[%s10417_s4 + $0x730] sm:$0xf]  ;;  %v6581_v50 = vld [vmem:[%s10417_s4 + $0x6a4] sm:$0xf] }
 0x3ba   :  { %3039 = vmatmul.f32.gmra.mxu3 %v8870_v52  ;;  %3219 = vmatmul.f32.gmra.mxu1 %v8481_v14  ;;  %v5625_v14 = vld [vmem:[%s10417_s4 + $0x6b0] sm:$0xf]  ;;  %v5618_v53 = vor.u32 %v6582_v5, %v5617_v60  ;;  %v5601_v8 = vld [vmem:[%s10417_s4 + $0x680] sm:$0xf]  ;;  %v5619_v43 = vld [vmem:[%s10417_s4 + $0x6a8] sm:$0xf0] }
 0x3bb   :  { %3274 = vmatpush.bf16.msra.mxu1 %v5358_v3  ;;  %v5626_v12 = vor.u32 %v6584_v15, %v5625_v14  ;;  %v5654_v3 = vor.u32 %v6589_v49, %v5651_v7  ;;  %v8982_v14 = vpop.f32.mrf.mxu3  ;;  %v6583_v15 = vld [vmem:[%s10417_s4 + $0x6b4] sm:$0xf]  ;;  %v5602_v7 = vor.u32 %v6578_v35, %v5601_v8  ;;  %v5681_v5 = vld [vmem:[%s10417_s4 + $0x720] sm:$0xf] }
 0x3bc   :  { %3090 = vmatpush.bf16.msrb.mxu3 %v5642_v34  ;;  %3079 = vmatpush.bf16.msrb.mxu2 %v5546_v25  ;;  %v5643_v34 = vld [vmem:[%s10417_s4 + $0x6d8] sm:$0xf0]  ;;  %v5705_v25 = vld [vmem:[%s10417_s4 + $0x750] sm:$0xf]  ;;  %v5665_v35 = vld [vmem:[%s10417_s4 + $0x700] sm:$0xf] }
 0x3bd   :  { %3320 = vmatpush.bf16.msra.mxu0 %v5542_v62  ;;  %v5646_v2 = vor.u32 %v6587_v63, %v5643_v34  ;;  %v5706_v51 = vor.u32 %v6604_v17, %v5705_v25  ;;  %v5785_v62 = vld [vmem:[%s10417_s4 + $0x7f0] sm:$0xf]  ;;  %v6598_v63 = vld [vmem:[%s10417_s4 + $0x724] sm:$0xf0]  ;;  %v5777_v34 = vld [vmem:[%s10417_s4 + $0x7e0] sm:$0xf] }
 0x3be   :  { %v5611_v25 = vld [vmem:[%s10417_s4 + $0x698] sm:$0xf0]  ;;  %v5682_v17 = vor.u32 %v6598_v63, %v5681_v5  ;;  %v5745_v5 = vld [vmem:[%s10417_s4 + $0x7a0] sm:$0xf] }
 0x3bf   :  { %v1321_v48 = vpop.f32.mrf.mxu1  ;;  %3275 = vmatpush.bf16.msra.mxu1 %v5350_v26 }
 0x3c0   :  { %3091 = vmatpush.bf16.msrb.mxu3 %v5634_v16  ;;  %v8926_v58 = vadd.f32 %v1321_v48, %v1225_v29  ;;  %3080 = vmatpush.bf16.msrb.mxu2 %v5538_v13  ;;  %v5697_v16 = vld [vmem:[%s10417_s4 + $0x740] sm:$0xf]  ;;  %v5638_v13 = vor.u32 %v6585_v30, %v5635_v59  ;;  %v6600_v29 = vld [vmem:[%s10417_s4 + $0x734] sm:$0xf0]  ;;  %v5769_v59 = vld [vmem:[%s10417_s4 + $0x7d0] sm:$0xf] }
 0x3c1   :  { %v5698_v49 = vor.u32 %v6602_v61, %v5697_v16  ;;  %v5690_v1 = vor.u32 %v6600_v29, %v5689_v37  ;;  %v6596_v30 = vld [vmem:[%s10417_s4 + $0x714] sm:$0xf0]  ;;  %v1138_v29 = vadd.f32 %v8945_v54, %v7640_v9 }
 0x3c2   :  { %3051 = vmatmul.f32.vlgmr.msra.gmra.mxu2 %v8926_v58  ;;  %3276 = vmatmul.f32.vlgmr.msra.gmra.mxu1 %v8804_v6  ;;  %v5609_v6 = vld [vmem:[%s10417_s4 + $0x690] sm:$0xf] }
 0x3c3   :  { %3328 = vmatpush.bf16.msrb.mxu1 %v5662_v20  ;;  %v5610_v26 = vor.u32 %v6580_v10, %v5609_v6  ;;  %v5627_v20 = vld [vmem:[%s10417_s4 + $0x6b8] sm:$0xf0]  ;;  %v9036_v19 = vpop.f32.mrf.mxu3  ;;  %v5673_v10 = vld [vmem:[%s10417_s4 + $0x710] sm:$0xf] }
 0x3c4   :  { %3103 = vmatpush.bf16.msra.mxu2 %v5722_v23  ;;  %3092 = vmatpush.bf16.msrb.mxu3 %v5626_v12  ;;  %v5630_v48 = vor.u32 %v6583_v15, %v5627_v20  ;;  %v9006_v23 = vpop.f32.mrf.mxu2  ;;  %v1230_v12 = vadd.f32 %v8843_v33, %v1133_v4  ;;  %v6622_v33 = vld [vmem:[%s10417_s4 + $0x7e4] sm:$0xf0]  ;;  %v5674_v61 = vor.u32 %v6596_v30, %v5673_v10  ;;  %v6415_v4 = vld [vmem:[%s10417_s4 + $0x174] sm:$0xf] }
 0x3c5   :  { %v5778_v6 = vor.u32 %v6622_v33, %v5777_v34  ;;  %v6594_v15 = vld [vmem:[%s10417_s4 + $0x704] sm:$0xf0] }
 0x3c6   :  { %v6618_v20 = vld [vmem:[%s10417_s4 + $0x7c4] sm:$0xf0] }
 0x3c7   :  { %3329 = vmatpush.bf16.msrb.mxu1 %v5654_v3  ;;  %v1323_v24 = vpop.f32.mrf.mxu1 }
 0x3c8   :  { %3104 = vmatpush.bf16.msra.mxu2 %v5714_v40  ;;  %3093 = vmatpush.bf16.msrb.mxu3 %v5618_v53  ;;  %v8971_v22 = vadd.f32 %v1323_v24, %v1227_v42  ;;  %v5622_v40 = vor.u32 %v6581_v50, %v5619_v43  ;;  %v6579_v53 = vld [vmem:[%s10417_s4 + $0x694] sm:$0xf]  ;;  %v6620_v42 = vld [vmem:[%s10417_s4 + $0x7d4] sm:$0xf0]  ;;  %v1235_v43 = vadd.f32 %v8982_v14, %v1138_v29  ;;  %v6614_v14 = vld [vmem:[%s10417_s4 + $0x7a4] sm:$0xf0] }
 0x3c9   :  { %v5614_v24 = vor.u32 %v6579_v53, %v5611_v25  ;;  %v5770_v8 = vor.u32 %v6620_v42, %v5769_v59  ;;  %v5746_v33 = vor.u32 %v6614_v14, %v5745_v5  ;;  %v1140_v53 = vadd.f32 %v9006_v23, %v7663_v11  ;;  %v4939_v25 = vld [vmem:[%s10417_s4 + $0x158] sm:$0xf0]  ;;  %v6409_v23 = vld [vmem:[%s10417_s4 + $0x144] sm:$0xf] }
 0x3ca   :  { %3054 = vmatmul.f32.gmra.mxu2 %v8971_v22  ;;  %3279 = vmatmul.f32.gmra.mxu1 %v8870_v52  ;;  %v6624_v52 = vld [vmem:[%s10417_s4 + $0x7f4] sm:$0xf0]  ;;  %v6429_v29 = vld [vmem:[%s10417_s4 + $0x1e4] sm:$0xf] }
 0x3cb   :  { %3330 = vmatpush.bf16.msrb.mxu1 %v5646_v2  ;;  %v5786_v60 = vor.u32 %v6624_v52, %v5785_v62  ;;  %v1135_v2 = vadd.f32 %v8881_v47, %v7623_v57  ;;  %v5603_v57 = vld [vmem:[%s10417_s4 + $0x688] sm:$0xf0]  ;;  %v4955_v62 = vld [vmem:[%s10417_s4 + $0x178] sm:$0xf0]  ;;  %v5753_v52 = vld [vmem:[%s10417_s4 + $0x7b0] sm:$0xf]  ;;  %v1239_v50 = vpop.f32.mrf.mxu3  ;;  %v1237_v10 = vadd.f32 %v9036_v19, %v1140_v53 }
 0x3cc   :  { %3105 = vmatpush.bf16.msra.mxu2 %v5706_v51  ;;  %3094 = vmatpush.bf16.msrb.mxu3 %v5610_v26  ;;  %v6577_v51 = vld [vmem:[%s10417_s4 + $0x684] sm:$0xf]  ;;  %v9059_v26 = vpop.f32.mrf.mxu2  ;;  %v4958_v9 = vor.u32 %v6415_v4, %v4955_v62  ;;  %v6610_v19 = vld [vmem:[%s10417_s4 + $0x784] sm:$0xf0]  ;;  %v4915_v4 = vld [vmem:[%s10417_s4 + $0x128] sm:$0xf0] }
 0x3cd   :  { %v1232_v47 = vadd.f32 %v8921_v41, %v1135_v2  ;;  %v5761_v41 = vld [vmem:[%s10417_s4 + $0x7c0] sm:$0xf]  ;;  %v5011_v62 = vld [vmem:[%s10417_s4 + $0x1e8] sm:$0xf0] }
 0x3ce   :  { %v5762_v37 = vor.u32 %v6618_v20, %v5761_v41  ;;  %v5019_v41 = vld [vmem:[%s10417_s4 + $0x1f8] sm:$0xf0]  ;;  %v4995_v53 = vld [vmem:[%s10417_s4 + $0x1c8] sm:$0xf0] }
 0x3cf   :  { %3331 = vmatpush.bf16.msrb.mxu1 %v5638_v13  ;;  %v1326_v31 = vpop.f32.mrf.mxu1 }
 0x3d0   :  { %3106 = vmatpush.bf16.msra.mxu2 %v5698_v49  ;;  %3095 = vmatpush.bf16.msrb.mxu3 %v5602_v7  ;;  %v9018_v3 = vadd.f32 %v1326_v31, %v1230_v12  ;;  %v5606_v49 = vor.u32 %v6577_v51, %v5603_v57  ;;  %v5666_v7 = vor.u32 %v6594_v15, %v5665_v35  ;;  %v6413_v31 = vld [vmem:[%s10417_s4 + $0x164] sm:$0xf]  ;;  %v5729_v51 = vld [vmem:[%s10417_s4 + $0x780] sm:$0xf]  ;;  %v4923_v35 = vld [vmem:[%s10417_s4 + $0x138] sm:$0xf0] }
 0x3d1   :  { %v6431_v15 = vld [vmem:[%s10417_s4 + $0x1f4] sm:$0xf] }
 0x3d2   :  { %3066 = vmatmul.f32.vlgmr.msra.gmra.mxu3 %v9018_v3 }
 0x3d3   :  { %3332 = vmatpush.bf16.msrb.mxu1 %v5630_v48  ;;  %v6616_v48 = vld [vmem:[%s10417_s4 + $0x7b4] sm:$0xf0]  ;;  %v1241_v2 = vpop.f32.mrf.mxu3 }
 0x3d4   :  { %3107 = vmatpush.bf16.msra.mxu2 %v5690_v1  ;;  %3118 = vmatpush.bf16.msra.mxu3 %v5786_v60  ;;  %v5754_v54 = vor.u32 %v6616_v48, %v5753_v52  ;;  %v4947_v60 = vld [vmem:[%s10417_s4 + $0x168] sm:$0xf0]  ;;  %v1144_v63 = vpop.f32.mrf.mxu2 }
 0x3d5   :  { %v4950_v34 = vor.u32 %v6413_v31, %v4947_v60  ;;  %v5003_v31 = vld [vmem:[%s10417_s4 + $0x1d8] sm:$0xf0] }
 0x3d7   :  { %3333 = vmatpush.bf16.msrb.mxu1 %v5622_v40  ;;  %v1328_v16 = vpop.f32.mrf.mxu1  ;;  %v6411_v40 = vld [vmem:[%s10417_s4 + $0x154] sm:$0xf] }
 0x3d8   :  { %3108 = vmatpush.bf16.msra.mxu2 %v5682_v17  ;;  %3119 = vmatpush.bf16.msra.mxu3 %v5778_v6  ;;  %v9064_v13 = vadd.f32 %v1328_v16, %v1232_v47  ;;  %v5737_v17 = vld [vmem:[%s10417_s4 + $0x790] sm:$0xf]  ;;  %v6612_v6 = vld [vmem:[%s10417_s4 + $0x794] sm:$0xf0]  ;;  %v4942_v59 = vor.u32 %v6411_v40, %v4939_v25  ;;  %v5730_v16 = vor.u32 %v6610_v19, %v5729_v51  ;;  %v6425_v40 = vld [vmem:[%s10417_s4 + $0x1c4] sm:$0xf] }
 0x3d9   :  { %v5738_v11 = vor.u32 %v6612_v6, %v5737_v17  ;;  %v4998_v6 = vor.u32 %v6425_v40, %v4995_v53  ;;  %v5171_v53 = vld [vmem:[%s10417_s4 + $0x328] sm:$0xf0] }
 0x3da   :  { %3069 = vmatmul.f32.gmra.mxu3 %v9064_v13 }
 0x3db   :  { %3334 = vmatpush.bf16.msrb.mxu1 %v5614_v24  ;;  %v4931_v24 = vld [vmem:[%s10417_s4 + $0x148] sm:$0xf0]  ;;  %v1244_v52 = vpop.f32.mrf.mxu3 }
 0x3dc   :  { %3109 = vmatpush.bf16.msra.mxu2 %v5674_v61  ;;  %3120 = vmatpush.bf16.msra.mxu3 %v5770_v8  ;;  %v1147_v57 = vpop.f32.mrf.mxu2  ;;  %v4934_v47 = vor.u32 %v6409_v23, %v4931_v24  ;;  %v6407_v61 = vld [vmem:[%s10417_s4 + $0x134] sm:$0xf]  ;;  %v1143_v8 = vadd.f32 %v9059_v26, %v7704_v18  ;;  %v6405_v18 = vld [vmem:[%s10417_s4 + $0x124] sm:$0xf] }
 0x3dd   :  { %v4918_v48 = vor.u32 %v6405_v18, %v4915_v4 }
 0x3de   :  { %v1240_v20 = vadd.f32 %v1239_v50, %v1143_v8  ;;  %v5014_v50 = vor.u32 %v6429_v29, %v5011_v62 }
 0x3df   :  { %3335 = vmatpush.bf16.msrb.mxu1 %v5606_v49  ;;  %v1331_v12 = vpop.f32.mrf.mxu1 }
 0x3e0   :  { %3110 = vmatpush.bf16.msra.mxu2 %v5666_v7  ;;  %3121 = vmatpush.bf16.msra.mxu3 %v5762_v37  ;;  %v1332_v1 = vadd.f32 %v1331_v12, %v1235_v43  ;;  %v4926_v7 = vor.u32 %v6407_v61, %v4923_v35  ;;  %v5022_v37 = vor.u32 %v6431_v15, %v5019_v41  ;;  %v6403_v43 = vld [vmem:[%s10417_s4 + $0x114] sm:$0xf]  ;;  %v4979_v61 = vld [vmem:[%s10417_s4 + $0x1a8] sm:$0xf0] }
 0x3e1   :  { %v1145_v12 = vadd.f32 %v1144_v63, %v7748_v55  ;;  %v6401_v55 = vld [vmem:[%s10417_s4 + $0x104] sm:$0xf]  ;;  %v6475_v15 = vld [vmem:[%s10417_s4 + $0x354] sm:$0xf] }
 0x3e2   :  { %3081 = vmatmul.f32.vlgmr.msrb.gmra.mxu2 %v1332_v1  ;;  %3321 = vmatmul.f32.vlgmr.msra.gmra.mxu0 %v1332_v1 }
 0x3e3   :  { %v1242_v60 = vadd.f32 %v1241_v2, %v1145_v12  ;;  %v1246_v25 = vpop.f32.mrf.mxu3  ;;  %v1148_v2 = vadd.f32 %v1147_v57, %v7810_v38  ;;  %v6477_v38 = vld [vmem:[%s10417_s4 + $0x364] sm:$0xf] }
 0x3e4   :  { %3163 = vmatpush.bf16.msrb.mxu2 %v4958_v9  ;;  %3122 = vmatpush.bf16.msra.mxu3 %v5754_v54  ;;  %v4907_v9 = vld [vmem:[%s10417_s4 + $0x118] sm:$0xf0]  ;;  %v6427_v54 = vld [vmem:[%s10417_s4 + $0x1d4] sm:$0xf]  ;;  %v1149_v1 = vpop.f32.mrf.mxu2 }
 0x3e5   :  { %v4910_v14 = vor.u32 %v6403_v43, %v4907_v9  ;;  %v1245_v23 = vadd.f32 %v1244_v52, %v1148_v2  ;;  %v1150_v41 = vadd.f32 %v1149_v1, %v7842_v46  ;;  %v6473_v46 = vld [vmem:[%s10417_s4 + $0x344] sm:$0xf]  ;;  %v5187_v52 = vld [vmem:[%s10417_s4 + $0x348] sm:$0xf0]  ;;  %v5179_v1 = vld [vmem:[%s10417_s4 + $0x338] sm:$0xf0] }
 0x3e6   :  { %v5190_v12 = vor.u32 %v6473_v46, %v5187_v52  ;;  %v6485_v46 = vld [vmem:[%s10417_s4 + $0x3a4] sm:$0xf]  ;;  %v5235_v52 = vld [vmem:[%s10417_s4 + $0x3a8] sm:$0xf0] }
 0x3e7   :  { %v1333_v30 = vpop.f32.mrf.mxu1  ;;  %v1247_v18 = vadd.f32 %v1246_v25, %v1150_v41  ;;  %v6493_v25 = vld [vmem:[%s10417_s4 + $0x3e4] sm:$0xf] }
 0x3e8   :  { %3164 = vmatpush.bf16.msrb.mxu2 %v4950_v34  ;;  %3123 = vmatpush.bf16.msra.mxu3 %v5746_v33  ;;  %v1334_v42 = vadd.f32 %v1333_v30, %v1237_v10  ;;  %v5006_v34 = vor.u32 %v6427_v54, %v5003_v31  ;;  %v4899_v33 = vld [vmem:[%s10417_s4 + $0x108] sm:$0xf0]  ;;  %v6479_v10 = vld [vmem:[%s10417_s4 + $0x374] sm:$0xf]  ;;  %v5211_v30 = vld [vmem:[%s10417_s4 + $0x378] sm:$0xf0] }
 0x3e9   :  { %v4902_v17 = vor.u32 %v6401_v55, %v4899_v33  ;;  %v5214_v51 = vor.u32 %v6479_v10, %v5211_v30  ;;  %v6471_v54 = vld [vmem:[%s10417_s4 + $0x334] sm:$0xf] }
 0x3ea   :  { %3084 = vmatmul.f32.gmra.mxu2 %v1334_v42  ;;  %3324 = vmatmul.f32.gmra.mxu0 %v1334_v42  ;;  %v6467_v30 = vld [vmem:[%s10417_s4 + $0x314] sm:$0xf] }
 0x3ec   :  { %3165 = vmatpush.bf16.msrb.mxu2 %v4942_v59  ;;  %3124 = vmatpush.bf16.msra.mxu3 %v5738_v11  ;;  %v6423_v59 = vld [vmem:[%s10417_s4 + $0x1b4] sm:$0xf]  ;;  %v4987_v11 = vld [vmem:[%s10417_s4 + $0x1b8] sm:$0xf0]  ;;  %v1152_v42 = vpop.f32.mrf.mxu2 }
 0x3ed   :  { %v4990_v19 = vor.u32 %v6423_v59, %v4987_v11  ;;  %v1153_v31 = vadd.f32 %v1152_v42, %v7898_v28  ;;  %v6469_v28 = vld [vmem:[%s10417_s4 + $0x324] sm:$0xf]  ;;  %v5163_v11 = vld [vmem:[%s10417_s4 + $0x318] sm:$0xf0] }
 0x3ee   :  { %v5174_v10 = vor.u32 %v6469_v28, %v5171_v53  ;;  %v6559_v28 = vld [vmem:[%s10417_s4 + $0x5f4] sm:$0xf]  ;;  %v5531_v53 = vld [vmem:[%s10417_s4 + $0x5f8] sm:$0xf0] }
 0x3ef   :  { %v1336_v49 = vpop.f32.mrf.mxu1 }
 0x3f0   :  { %3166 = vmatpush.bf16.msrb.mxu2 %v4934_v47  ;;  %3125 = vmatpush.bf16.msra.mxu3 %v5730_v16  ;;  %v1337_v26 = vadd.f32 %v1336_v49, %v1240_v20  ;;  %v5203_v47 = vld [vmem:[%s10417_s4 + $0x368] sm:$0xf0]  ;;  %v6421_v16 = vld [vmem:[%s10417_s4 + $0x1a4] sm:$0xf]  ;;  %v5195_v20 = vld [vmem:[%s10417_s4 + $0x358] sm:$0xf0] }
 0x3f1   :  { %v5206_v8 = vor.u32 %v6477_v38, %v5203_v47  ;;  %v4982_v35 = vor.u32 %v6421_v16, %v4979_v61  ;;  %v6419_v49 = vld [vmem:[%s10417_s4 + $0x194] sm:$0xf]  ;;  %v5198_v4 = vor.u32 %v6475_v15, %v5195_v20  ;;  %v6465_v38 = vld [vmem:[%s10417_s4 + $0x304] sm:$0xf]  ;;  %v5155_v16 = vld [vmem:[%s10417_s4 + $0x308] sm:$0xf0] }
 0x3f2   :  { %3096 = vmatmul.f32.vlgmr.msrb.gmra.mxu3 %v1337_v26  ;;  %3336 = vmatmul.f32.vlgmr.msrb.gmra.mxu1 %v1337_v26  ;;  %v6489_v61 = vld [vmem:[%s10417_s4 + $0x3c4] sm:$0xf]  ;;  %v5467_v15 = vld [vmem:[%s10417_s4 + $0x578] sm:$0xf0]  ;;  %v5158_v20 = vor.u32 %v6465_v38, %v5155_v16 }
 0x3f4   :  { %3167 = vmatpush.bf16.msrb.mxu2 %v4926_v7  ;;  %3178 = vmatpush.bf16.msrb.mxu3 %v5022_v37  ;;  %v4971_v7 = vld [vmem:[%s10417_s4 + $0x198] sm:$0xf0]  ;;  %v1249_v37 = vpop.f32.mrf.mxu3  ;;  %v1154_v43 = vpop.f32.mrf.mxu2 }
 0x3f5   :  { %v4974_v29 = vor.u32 %v6419_v49, %v4971_v7  ;;  %v1155_v59 = vadd.f32 %v1154_v43, %v7924_v45  ;;  %v5451_v43 = vld [vmem:[%s10417_s4 + $0x558] sm:$0xf0] }
 0x3f7   :  { %v1338_v5 = vpop.f32.mrf.mxu1 }
 0x3f8   :  { %3168 = vmatpush.bf16.msrb.mxu2 %v4918_v48  ;;  %3179 = vmatpush.bf16.msrb.mxu3 %v5014_v50  ;;  %v1339_v63 = vadd.f32 %v1338_v5, %v1242_v60  ;;  %v6417_v48 = vld [vmem:[%s10417_s4 + $0x184] sm:$0xf]  ;;  %v4963_v50 = vld [vmem:[%s10417_s4 + $0x188] sm:$0xf0]  ;;  %v6495_v60 = vld [vmem:[%s10417_s4 + $0x3f4] sm:$0xf] }
 0x3f9   :  { %v4966_v9 = vor.u32 %v6417_v48, %v4963_v50  ;;  %v5275_v5 = vld [vmem:[%s10417_s4 + $0x3f8] sm:$0xf0]  ;;  %v6539_v50 = vld [vmem:[%s10417_s4 + $0x554] sm:$0xf] }
 0x3fa   :  { %3099 = vmatmul.f32.gmra.mxu3 %v1339_v63  ;;  %3339 = vmatmul.f32.gmra.mxu1 %v1339_v63  ;;  %v5182_v63 = vor.u32 %v6471_v54, %v5179_v1  ;;  %v5278_v33 = vor.u32 %v6495_v60, %v5275_v5  ;;  %v5454_v54 = vor.u32 %v6539_v50, %v5451_v43  ;;  %v5227_v1 = vld [vmem:[%s10417_s4 + $0x398] sm:$0xf0]  ;;  %v6549_v43 = vld [vmem:[%s10417_s4 + $0x5a4] sm:$0xf] }
 0x3fc   :  { %3169 = vmatpush.bf16.msrb.mxu2 %v4910_v14  ;;  %3180 = vmatpush.bf16.msrb.mxu3 %v5006_v34  ;;  %v1250_v14 = vadd.f32 %v1249_v37, %v1153_v31  ;;  %v1251_v34 = vpop.f32.mrf.mxu3  ;;  %v6487_v37 = vld [vmem:[%s10417_s4 + $0x3b4] sm:$0xf] }
 0x3fd   :  { %v1252_v42 = vadd.f32 %v1251_v34, %v1155_v59  ;;  %v6483_v31 = vld [vmem:[%s10417_s4 + $0x394] sm:$0xf]  ;;  %v5219_v34 = vld [vmem:[%s10417_s4 + $0x388] sm:$0xf0] }
 0x3fe   :  { %v5230_v60 = vor.u32 %v6483_v31, %v5227_v1  ;;  %v5427_v59 = vld [vmem:[%s10417_s4 + $0x528] sm:$0xf0] }
 0x3ff   :  { %v1341_v24 = vpop.f32.mrf.mxu1 }
 0x400   :  { %3170 = vmatpush.bf16.msrb.mxu2 %v4902_v17  ;;  %3181 = vmatpush.bf16.msrb.mxu3 %v4998_v6  ;;  %v9197_v57 = vadd.f32 %v1341_v24, %v1245_v23  ;;  %v5267_v17 = vld [vmem:[%s10417_s4 + $0x3e8] sm:$0xf0]  ;;  %v9264_v6 = vpop.f32.mrf.mxu2  ;;  %v6491_v23 = vld [vmem:[%s10417_s4 + $0x3d4] sm:$0xf] }
 0x401   :  { %v5270_v2 = vor.u32 %v6493_v25, %v5267_v17 }
 0x402   :  { %3111 = vmatmul.f32.vlgmr.msra.gmra.mxu2 %v9197_v57 }
 0x404   :  { %3223 = vmatpush.bf16.msra.mxu2 %v5214_v51  ;;  %3182 = vmatpush.bf16.msrb.mxu3 %v4990_v19  ;;  %v9281_v24 = vpop.f32.mrf.mxu3  ;;  %v5166_v19 = vor.u32 %v6467_v30, %v5163_v11 }
 0x407   :  { %v1343_v26 = vpop.f32.mrf.mxu1 }
 0x408   :  { %3224 = vmatpush.bf16.msra.mxu2 %v5206_v8  ;;  %3183 = vmatpush.bf16.msrb.mxu3 %v4982_v35  ;;  %v9225_v62 = vadd.f32 %v1343_v26, %v1247_v18  ;;  %v5251_v8 = vld [vmem:[%s10417_s4 + $0x3c8] sm:$0xf0]  ;;  %v6543_v35 = vld [vmem:[%s10417_s4 + $0x574] sm:$0xf]  ;;  %v9305_v41 = vpop.f32.mrf.mxu2  ;;  %v5243_v18 = vld [vmem:[%s10417_s4 + $0x3b8] sm:$0xf0] }
 0x409   :  { %v5254_v49 = vor.u32 %v6489_v61, %v5251_v8  ;;  %v5470_v7 = vor.u32 %v6543_v35, %v5467_v15  ;;  %v6541_v26 = vld [vmem:[%s10417_s4 + $0x564] sm:$0xf]  ;;  %v5411_v35 = vld [vmem:[%s10417_s4 + $0x508] sm:$0xf0] }
 0x40a   :  { %3114 = vmatmul.f32.gmra.mxu2 %v9225_v62  ;;  %v6529_v61 = vld [vmem:[%s10417_s4 + $0x504] sm:$0xf]  ;;  %v5507_v15 = vld [vmem:[%s10417_s4 + $0x5c8] sm:$0xf0] }
 0x40c   :  { %3225 = vmatpush.bf16.msra.mxu2 %v5198_v4  ;;  %3184 = vmatpush.bf16.msrb.mxu3 %v4974_v29  ;;  %v5246_v4 = vor.u32 %v6487_v37, %v5243_v18  ;;  %v9325_v48 = vpop.f32.mrf.mxu3 }
 0x40f   :  { %v1346_v55 = vpop.f32.mrf.mxu1 }
 0x410   :  { %3226 = vmatpush.bf16.msra.mxu2 %v5190_v12  ;;  %3185 = vmatpush.bf16.msrb.mxu3 %v4966_v9  ;;  %v9253_v40 = vadd.f32 %v1346_v55, %v1250_v14  ;;  %v9335_v12 = vpop.f32.mrf.mxu2  ;;  %v5238_v9 = vor.u32 %v6485_v46, %v5235_v52  ;;  %v6481_v14 = vld [vmem:[%s10417_s4 + $0x384] sm:$0xf]  ;;  %v6535_v55 = vld [vmem:[%s10417_s4 + $0x534] sm:$0xf] }
 0x411   :  { %v5222_v25 = vor.u32 %v6481_v14, %v5219_v34 }
 0x412   :  { %3126 = vmatmul.f32.vlgmr.msra.gmra.mxu3 %v9253_v40  ;;  %3171 = vmatmul.f32.vlgmr.msrb.gmra.mxu2 %v8126_v36  ;;  %v5259_v36 = vld [vmem:[%s10417_s4 + $0x3d8] sm:$0xf0] }
 0x413   :  { %v5262_v45 = vor.u32 %v6491_v23, %v5259_v36  ;;  %v6531_v36 = vld [vmem:[%s10417_s4 + $0x514] sm:$0xf] }
 0x414   :  { %3227 = vmatpush.bf16.msra.mxu2 %v5182_v63  ;;  %3238 = vmatpush.bf16.msra.mxu3 %v5278_v33  ;;  %v9358_v63 = vpop.f32.mrf.mxu3  ;;  %v5435_v33 = vld [vmem:[%s10417_s4 + $0x538] sm:$0xf0] }
 0x415   :  { %v5438_v17 = vor.u32 %v6535_v55, %v5435_v33  ;;  %v6545_v33 = vld [vmem:[%s10417_s4 + $0x584] sm:$0xf] }
 0x417   :  { %v1348_v51 = vpop.f32.mrf.mxu1 }
 0x418   :  { %3228 = vmatpush.bf16.msra.mxu2 %v5174_v10  ;;  %3239 = vmatpush.bf16.msra.mxu3 %v5270_v2  ;;  %v9286_v47 = vadd.f32 %v1348_v51, %v1252_v42  ;;  %v5534_v10 = vor.u32 %v6559_v28, %v5531_v53  ;;  %v6533_v2 = vld [vmem:[%s10417_s4 + $0x524] sm:$0xf]  ;;  %v9374_v30 = vpop.f32.mrf.mxu2  ;;  %v5419_v42 = vld [vmem:[%s10417_s4 + $0x518] sm:$0xf0]  ;;  %v6555_v51 = vld [vmem:[%s10417_s4 + $0x5d4] sm:$0xf] }
 0x419   :  { %v5430_v11 = vor.u32 %v6533_v2, %v5427_v59  ;;  %v5422_v38 = vor.u32 %v6531_v36, %v5419_v42  ;;  %v5475_v28 = vld [vmem:[%s10417_s4 + $0x588] sm:$0xf0]  ;;  %v6599_v53 = vld [vmem:[%s10417_s4 + $0x734] sm:$0xf]  ;;  %v6621_v36 = vld [vmem:[%s10417_s4 + $0x7e4] sm:$0xf] }
 0x41a   :  { %3129 = vmatmul.f32.gmra.mxu3 %v9286_v47  ;;  %3174 = vmatmul.f32.gmra.mxu2 %v8164_v44  ;;  %v5459_v44 = vld [vmem:[%s10417_s4 + $0x568] sm:$0xf0]  ;;  %v5478_v59 = vor.u32 %v6545_v33, %v5475_v28 }
 0x41b   :  { %v5462_v29 = vor.u32 %v6541_v26, %v5459_v44  ;;  %v6551_v26 = vld [vmem:[%s10417_s4 + $0x5b4] sm:$0xf]  ;;  %v5499_v44 = vld [vmem:[%s10417_s4 + $0x5b8] sm:$0xf0]  ;;  %v5843_v28 = vld [vmem:[%s10419_s6 + $0x68] sm:$0xf0] }
 0x41c   :  { %3229 = vmatpush.bf16.msra.mxu2 %v5166_v19  ;;  %3240 = vmatpush.bf16.msra.mxu3 %v5262_v45  ;;  %v5515_v19 = vld [vmem:[%s10417_s4 + $0x5d8] sm:$0xf0]  ;;  %v9398_v45 = vpop.f32.mrf.mxu3  ;;  %v5502_v52 = vor.u32 %v6551_v26, %v5499_v44  ;;  %v6615_v44 = vld [vmem:[%s10417_s4 + $0x7b4] sm:$0xf] }
 0x41d   :  { %v5518_v16 = vor.u32 %v6555_v51, %v5515_v19 }
 0x420   :  { %3230 = vmatpush.bf16.msra.mxu2 %v5158_v20  ;;  %3241 = vmatpush.bf16.msra.mxu3 %v5254_v49  ;;  %v9403_v8 = vpop.f32.mrf.mxu2  ;;  %v6607_v20 = vld [vmem:[%s10417_s4 + $0x774] sm:$0xf]  ;;  %v5723_v49 = vld [vmem:[%s10417_s4 + $0x778] sm:$0xf0] }
 0x421   :  { %v5726_v18 = vor.u32 %v6607_v20, %v5723_v49  ;;  %v6593_v49 = vld [vmem:[%s10417_s4 + $0x704] sm:$0xf] }
 0x422   :  { %3186 = vmatmul.f32.vlgmr.msrb.gmra.mxu3 %v8212_v39  ;;  %v6537_v39 = vld [vmem:[%s10417_s4 + $0x544] sm:$0xf] }
 0x423   :  { %3231 = vmatmul.f32.vlgmr.msra.gmra.mxu2 %v8542_v21  ;;  %v5443_v21 = vld [vmem:[%s10417_s4 + $0x548] sm:$0xf0] }
 0x424   :  { %3283 = vmatpush.bf16.msrb.mxu2 %v5470_v7  ;;  %3242 = vmatpush.bf16.msra.mxu3 %v5246_v4  ;;  %v5446_v5 = vor.u32 %v6537_v39, %v5443_v21  ;;  %v5414_v7 = vor.u32 %v6529_v61, %v5411_v35  ;;  %v6605_v4 = vld [vmem:[%s10417_s4 + $0x764] sm:$0xf]  ;;  %v9433_v46 = vpop.f32.mrf.mxu3  ;;  %v6547_v21 = vld [vmem:[%s10417_s4 + $0x594] sm:$0xf]  ;;  %v5771_v35 = vld [vmem:[%s10417_s4 + $0x7d8] sm:$0xf0] }
 0x425   :  { %v6619_v61 = vld [vmem:[%s10417_s4 + $0x7d4] sm:$0xf] }
 0x426   :  { %v5774_v20 = vor.u32 %v6619_v61, %v5771_v35  ;;  %v6633_v61 = vld [vmem:[%s10419_s6 + $0x44] sm:$0xf] }
 0x428   :  { %3284 = vmatpush.bf16.msrb.mxu2 %v5462_v29  ;;  %3243 = vmatpush.bf16.msra.mxu3 %v5238_v9  ;;  %v5715_v29 = vld [vmem:[%s10417_s4 + $0x768] sm:$0xf0]  ;;  %v6603_v9 = vld [vmem:[%s10417_s4 + $0x754] sm:$0xf]  ;;  %v9447_v31 = vpop.f32.mrf.mxu2 }
 0x429   :  { %v5718_v50 = vor.u32 %v6605_v4, %v5715_v29  ;;  %v5755_v4 = vld [vmem:[%s10417_s4 + $0x7b8] sm:$0xf0] }
 0x42a   :  { %3189 = vmatmul.f32.gmra.mxu3 %v8256_v32  ;;  %v6557_v32 = vld [vmem:[%s10417_s4 + $0x5e4] sm:$0xf] }
 0x42b   :  { %3234 = vmatmul.f32.gmra.mxu2 %v8582_v0  ;;  %v5523_v0 = vld [vmem:[%s10417_s4 + $0x5e8] sm:$0xf0] }
 0x42c   :  { %3285 = vmatpush.bf16.msrb.mxu2 %v5454_v54  ;;  %3244 = vmatpush.bf16.msra.mxu3 %v5230_v60  ;;  %v5526_v23 = vor.u32 %v6557_v32, %v5523_v0  ;;  %v5707_v54 = vld [vmem:[%s10417_s4 + $0x758] sm:$0xf0]  ;;  %v9462_v34 = vpop.f32.mrf.mxu3 }
 0x42d   :  { %v5710_v39 = vor.u32 %v6603_v9, %v5707_v54  ;;  %v5483_v60 = vld [vmem:[%s10417_s4 + $0x598] sm:$0xf0] }
 0x42e   :  { %v5486_v14 = vor.u32 %v6547_v21, %v5483_v60  ;;  %v5851_v9 = vld [vmem:[%s10419_s6 + $0x78] sm:$0xf0]  ;;  %v5747_v21 = vld [vmem:[%s10417_s4 + $0x7a8] sm:$0xf0]  ;;  %v6611_v60 = vld [vmem:[%s10417_s4 + $0x794] sm:$0xf] }
 0x430   :  { %3286 = vmatpush.bf16.msrb.mxu2 %v5446_v5  ;;  %3245 = vmatpush.bf16.msra.mxu3 %v5222_v25  ;;  %v6601_v5 = vld [vmem:[%s10417_s4 + $0x744] sm:$0xf]  ;;  %v5691_v25 = vld [vmem:[%s10417_s4 + $0x738] sm:$0xf0]  ;;  %v9482_v2 = vpop.f32.mrf.mxu2 }
 0x431   :  { %v5694_v32 = vor.u32 %v6599_v53, %v5691_v25  ;;  %v5833_v53 = vld [vmem:[%s10419_s6 + $0x50] sm:$0xf]  ;;  %v6636_v25 = vld [vmem:[%s10419_s6 + $0x54] sm:$0xf0] }
 0x433   :  { %3246 = vmatmul.f32.vlgmr.msra.gmra.mxu3 %v8620_v27  ;;  %v6553_v27 = vld [vmem:[%s10417_s4 + $0x5c4] sm:$0xf] }
 0x434   :  { %3287 = vmatpush.bf16.msrb.mxu2 %v5438_v17  ;;  %3298 = vmatpush.bf16.msrb.mxu3 %v5534_v10  ;;  %v5510_v37 = vor.u32 %v6553_v27, %v5507_v15  ;;  %v6623_v17 = vld [vmem:[%s10417_s4 + $0x7f4] sm:$0xf]  ;;  %v5787_v10 = vld [vmem:[%s10417_s4 + $0x7f8] sm:$0xf0]  ;;  %v9497_v42 = vpop.f32.mrf.mxu3 }
 0x435   :  { %v5790_v0 = vor.u32 %v6623_v17, %v5787_v10 }
 0x438   :  { %3288 = vmatpush.bf16.msrb.mxu2 %v5430_v11  ;;  %3299 = vmatpush.bf16.msrb.mxu3 %v5526_v23  ;;  %v6597_v11 = vld [vmem:[%s10417_s4 + $0x724] sm:$0xf]  ;;  %v5683_v23 = vld [vmem:[%s10417_s4 + $0x728] sm:$0xf0]  ;;  %v9512_v27 = vpop.f32.mrf.mxu2 }
 0x439   :  { %v5686_v51 = vor.u32 %v6597_v11, %v5683_v23 }
 0x43b   :  { %3249 = vmatmul.f32.gmra.mxu3 %v8654_v56  ;;  %v5491_v56 = vld [vmem:[%s10417_s4 + $0x5a8] sm:$0xf0] }
 0x43c   :  { %3289 = vmatpush.bf16.msrb.mxu2 %v5422_v38  ;;  %3300 = vmatpush.bf16.msrb.mxu3 %v5518_v16  ;;  %v5494_v1 = vor.u32 %v6549_v43, %v5491_v56  ;;  %v6595_v38 = vld [vmem:[%s10417_s4 + $0x714] sm:$0xf]  ;;  %v5675_v16 = vld [vmem:[%s10417_s4 + $0x718] sm:$0xf0]  ;;  %v9532_v29 = vpop.f32.mrf.mxu3 }
 0x43d   :  { %v5678_v15 = vor.u32 %v6595_v38, %v5675_v16  ;;  %v6639_v43 = vld [vmem:[%s10419_s6 + $0x74] sm:$0xf]  ;;  %v5825_v38 = vld [vmem:[%s10419_s6 + $0x40] sm:$0xf]  ;;  %v6634_v16 = vld [vmem:[%s10419_s6 + $0x44] sm:$0xf0] }
 0x43e   :  { %v5826_v35 = vor.u32 %v6634_v16, %v5825_v38 }
 0x440   :  { %3290 = vmatpush.bf16.msrb.mxu2 %v5414_v7  ;;  %3301 = vmatpush.bf16.msrb.mxu3 %v5510_v37  ;;  %v5667_v7 = vld [vmem:[%s10417_s4 + $0x708] sm:$0xf0]  ;;  %v6617_v37 = vld [vmem:[%s10417_s4 + $0x7c4] sm:$0xf]  ;;  %v9547_v54 = vpop.f32.mrf.mxu2 }
 0x443   :  { %3291 = vmatmul.f32.vlgmr.msrb.gmra.mxu2 %v8926_v58  ;;  %v5699_v58 = vld [vmem:[%s10417_s4 + $0x748] sm:$0xf0] }
 0x444   :  { %3343 = vmatpush.bf16.msra.mxu2 %v5726_v18  ;;  %3302 = vmatpush.bf16.msrb.mxu3 %v5502_v52  ;;  %v5702_v55 = vor.u32 %v6601_v5, %v5699_v58  ;;  %v5670_v18 = vor.u32 %v6593_v49, %v5667_v7  ;;  %v5849_v52 = vld [vmem:[%s10419_s6 + $0x70] sm:$0xf]  ;;  %v5739_v5 = vld [vmem:[%s10417_s4 + $0x798] sm:$0xf0]  ;;  %v9580_v17 = vpop.f32.mrf.mxu3  ;;  %v6631_v7 = vld [vmem:[%s10419_s6 + $0x34] sm:$0xf] }
 0x445   :  { %v5742_v11 = vor.u32 %v6611_v60, %v5739_v5 }
 0x448   :  { %3344 = vmatpush.bf16.msra.mxu2 %v5718_v50  ;;  %3303 = vmatpush.bf16.msrb.mxu3 %v5494_v1  ;;  %v6640_v50 = vld [vmem:[%s10419_s6 + $0x74] sm:$0xf0]  ;;  %v5854_v1 = vor.u32 %v6639_v43, %v5851_v9 }
 0x449   :  { %v5850_v56 = vor.u32 %v6640_v50, %v5849_v52  ;;  %v6630_v52 = vld [vmem:[%s10419_s6 + $0x24] sm:$0xf0]  ;;  %v6629_v50 = vld [vmem:[%s10419_s6 + $0x24] sm:$0xf]  ;;  %v6628_v9 = vld [vmem:[%s10419_s6 + $0x14] sm:$0xf0] }
 0x44b   :  { %3294 = vmatmul.f32.gmra.mxu2 %v8971_v22  ;;  %v5779_v22 = vld [vmem:[%s10417_s4 + $0x7e8] sm:$0xf0]  ;;  %3575 = vmatpush.bf16.msrb.mxu0 %v5850_v56 }
 0x44c   :  { %3345 = vmatpush.bf16.msra.mxu2 %v5710_v39  ;;  %3304 = vmatpush.bf16.msrb.mxu3 %v5486_v14  ;;  %v5782_v19 = vor.u32 %v6621_v36, %v5779_v22  ;;  %v6613_v39 = vld [vmem:[%s10417_s4 + $0x7a4] sm:$0xf]  ;;  %v5841_v14 = vld [vmem:[%s10419_s6 + $0x60] sm:$0xf]  ;;  %v5731_v22 = vld [vmem:[%s10417_s4 + $0x788] sm:$0xf0] }
 0x44d   :  { %v5750_v58 = vor.u32 %v6613_v39, %v5747_v21  ;;  %v6609_v36 = vld [vmem:[%s10417_s4 + $0x784] sm:$0xf]  ;;  %v5811_v56 = vld [vmem:[%s10419_s6 + $0x28] sm:$0xf0]  ;;  %v5803_v39 = vld [vmem:[%s10419_s6 + $0x18] sm:$0xf0] }
 0x450   :  { %3346 = vmatpush.bf16.msra.mxu2 %v5702_v55  ;;  %3305 = vmatpush.bf16.msrb.mxu3 %v5478_v59  ;;  %v6638_v55 = vld [vmem:[%s10419_s6 + $0x64] sm:$0xf0]  ;;  %v6635_v59 = vld [vmem:[%s10419_s6 + $0x54] sm:$0xf] }
 0x451   :  { %v5842_v33 = vor.u32 %v6638_v55, %v5841_v14 }
 0x453   :  { %3306 = vmatmul.f32.vlgmr.msrb.gmra.mxu3 %v9018_v3  ;;  %v5763_v3 = vld [vmem:[%s10417_s4 + $0x7c8] sm:$0xf0]  ;;  %3576 = vmatpush.bf16.msrb.mxu0 %v5842_v33  ;;  %v6626_v33 = vld [vmem:[%s10419_s6 + $0x4] sm:$0xf0] }
 0x454   :  { %3347 = vmatpush.bf16.msra.mxu2 %v5694_v32  ;;  %3358 = vmatpush.bf16.msra.mxu3 %v5790_v0  ;;  %v5766_v26 = vor.u32 %v6617_v37, %v5763_v3  ;;  %v5835_v32 = vld [vmem:[%s10419_s6 + $0x58] sm:$0xf0]  ;;  %v5834_v0 = vor.u32 %v6636_v25, %v5833_v53 }
 0x455   :  { %v5838_v23 = vor.u32 %v6635_v59, %v5835_v32  ;;  %v5819_v37 = vld [vmem:[%s10419_s6 + $0x38] sm:$0xf0] }
 0x457   :  { %3577 = vmatpush.bf16.msrb.mxu0 %v5834_v0 }
 0x458   :  { %3348 = vmatpush.bf16.msra.mxu2 %v5686_v51  ;;  %3359 = vmatpush.bf16.msra.mxu3 %v5782_v19  ;;  %v9594_v51 = vpop.f32.mrf.mxu2  ;;  %v5734_v19 = vor.u32 %v6609_v36, %v5731_v22 }
 0x45b   :  { %3309 = vmatmul.f32.gmra.mxu3 %v9064_v13  ;;  %v5758_v13 = vor.u32 %v6615_v44, %v5755_v4  ;;  %3578 = vmatpush.bf16.msrb.mxu0 %v5826_v35  ;;  %v5809_v4 = vld [vmem:[%s10419_s6 + $0x20] sm:$0xf] }
 0x45c   :  { %3349 = vmatpush.bf16.msra.mxu2 %v5678_v15  ;;  %3360 = vmatpush.bf16.msra.mxu3 %v5774_v20  ;;  %v5817_v15 = vld [vmem:[%s10419_s6 + $0x30] sm:$0xf]  ;;  %v6632_v20 = vld [vmem:[%s10419_s6 + $0x34] sm:$0xf0]  ;;  %v5810_v43 = vor.u32 %v6630_v52, %v5809_v4 }
 0x45d   :  { %v5818_v3 = vor.u32 %v6632_v20, %v5817_v15 }
 0x45f   :  { %3579 = vmatpush.bf16.msrb.mxu0 %v5818_v3 }
 0x460   :  { %3350 = vmatpush.bf16.msra.mxu2 %v5670_v18  ;;  %3361 = vmatpush.bf16.msra.mxu3 %v5766_v26  ;;  %v9621_v18 = vpop.f32.mrf.mxu3  ;;  %v5822_v26 = vor.u32 %v6631_v7, %v5819_v37  ;;  %v3052_v44 = vpop.f32.mrf.mxu2 }
 0x463   :  { %3351 = vmatmul.f32.vlgmr.msra.gmra.mxu2 %v9197_v57  ;;  %v6637_v57 = vld [vmem:[%s10419_s6 + $0x64] sm:$0xf]  ;;  %3580 = vmatpush.bf16.msrb.mxu0 %v5810_v43 }
 0x464   :  { %3605 = vmatpush.bf16.msrb.mxu2 %v5854_v1  ;;  %3362 = vmatpush.bf16.msra.mxu3 %v5758_v13  ;;  %v5846_v10 = vor.u32 %v6637_v57, %v5843_v28  ;;  %v5814_v13 = vor.u32 %v6629_v50, %v5811_v56  ;;  %v6627_v1 = vld [vmem:[%s10419_s6 + $0x14] sm:$0xf]  ;;  %v5793_v57 = vld [vmem:[%s10419_s6] sm:$0xf]  ;;  %v6625_v28 = vld [vmem:[%s10419_s6 + $0x4] sm:$0xf] }
 0x465   :  { %v5806_v5 = vor.u32 %v6627_v1, %v5803_v39  ;;  %v5794_v53 = vor.u32 %v6626_v33, %v5793_v57  ;;  %v5913_v56 = vld [vmem:[%s10419_s6 + $0xf0] sm:$0xf]  ;;  %v5915_v1 = vld [vmem:[%s10419_s6 + $0xf8] sm:$0xf0] }
 0x468   :  { %3363 = vmatpush.bf16.msra.mxu3 %v5750_v58  ;;  %3606 = vmatpush.bf16.msrb.mxu2 %v5846_v10  ;;  %v3067_v60 = vpop.f32.mrf.mxu3  ;;  %v9651_v58 = vld [vmem:[%s10418_s5] sm:$0x3]  ;;  %v3055_v55 = vpop.f32.mrf.mxu2 }
 0x469   :  { %v1609_v14 = vperm.slane %v9651_v58, 0 }
 0x46b   :  { %3354 = vmatmul.f32.gmra.mxu2 %v9225_v62  ;;  %v5827_v62 = vld [vmem:[%s10419_s6 + $0x48] sm:$0xf0]  ;;  %v2903_v10 = vadd.f32 %v9264_v6, %v1609_v14  ;;  %v2906_v36 = vadd.f32 %v9305_v41, %v1609_v14 }
 0x46c   :  { %3364 = vmatpush.bf16.msra.mxu3 %v5742_v11  ;;  %3607 = vmatpush.bf16.msrb.mxu2 %v5838_v23  ;;  %v5830_v49 = vor.u32 %v6633_v61, %v5827_v62 }
 0x46d   :  { %v2918_v59 = vadd.f32 %v9281_v24, %v2903_v10  ;;  %v6651_v10 = vld [vmem:[%s10419_s6 + $0xd4] sm:$0xf] }
 0x46f   :  { %v2933_v0 = vadd.f32 %v9335_v12, %v2918_v59 }
 0x470   :  { %3365 = vmatpush.bf16.msra.mxu3 %v5734_v19  ;;  %3608 = vmatpush.bf16.msrb.mxu2 %v5830_v49  ;;  %v3070_v32 = vpop.f32.mrf.mxu3  ;;  %v3082_v11 = vpop.f32.mrf.mxu2  ;;  %v2921_v19 = vadd.f32 %v9325_v48, %v2906_v36  ;;  %v6650_v36 = vld [vmem:[%s10419_s6 + $0xc4] sm:$0xf0] }
 0x471   :  { %v2948_v23 = vadd.f32 %v9358_v63, %v2933_v0  ;;  %v5899_v0 = vld [vmem:[%s10419_s6 + $0xd8] sm:$0xf0] }
 0x472   :  { %v2936_v6 = vadd.f32 %v9374_v30, %v2921_v19  ;;  %v1610_v19 = vperm.slane %v9651_v58, 1 }
 0x473   :  { %3366 = vmatmul.f32.vlgmr.msra.gmra.mxu3 %v9253_v40  ;;  %v5801_v40 = vld [vmem:[%s10419_s6 + $0x10] sm:$0xf]  ;;  %v2963_v22 = vadd.f32 %v9403_v8, %v2948_v23  ;;  %v5889_v23 = vld [vmem:[%s10419_s6 + $0xc0] sm:$0xf] }
 0x474   :  { %3609 = vmatpush.bf16.msrb.mxu2 %v5822_v26  ;;  %v5802_v21 = vor.u32 %v6628_v9, %v5801_v40  ;;  %v2951_v24 = vadd.f32 %v9398_v45, %v2936_v6  ;;  %v6656_v40 = vld [vmem:[%s10419_s6 + $0xf4] sm:$0xf0]  ;;  %v6655_v9 = vld [vmem:[%s10419_s6 + $0xf4] sm:$0xf] }
 0x475   :  { %v2978_v38 = vadd.f32 %v9433_v46, %v2963_v22  ;;  %v5918_v39 = vor.u32 %v6655_v9, %v5915_v1  ;;  %v6649_v22 = vld [vmem:[%s10419_s6 + $0xc4] sm:$0xf]  ;;  %v5859_v9 = vld [vmem:[%s10419_s6 + $0x88] sm:$0xf0] }
 0x476   :  { %3581 = vmatpush.bf16.msrb.mxu0 %v5802_v21  ;;  %v2966_v63 = vadd.f32 %v9447_v31, %v2951_v24  ;;  %v5905_v21 = vld [vmem:[%s10419_s6 + $0xe0] sm:$0xf]  ;;  %v6648_v24 = vld [vmem:[%s10419_s6 + $0xb4] sm:$0xf0] }
 0x477   :  { %v2993_v61 = vadd.f32 %v9482_v2, %v2978_v38  ;;  %3620 = vmatpush.bf16.msrb.mxu3 %v5918_v39  ;;  %v5890_v38 = vor.u32 %v6650_v36, %v5889_v23 }
 0x478   :  { %3610 = vmatpush.bf16.msrb.mxu2 %v5814_v13  ;;  %v3097_v16 = vpop.f32.mrf.mxu3  ;;  %v3085_v35 = vpop.f32.mrf.mxu2  ;;  %v2981_v8 = vadd.f32 %v9462_v34, %v2966_v63  ;;  %v5914_v13 = vor.u32 %v6656_v40, %v5913_v56 }
 0x479   :  { %v3008_v12 = vadd.f32 %v9497_v42, %v2993_v61  ;;  %v5881_v61 = vld [vmem:[%s10419_s6 + $0xb0] sm:$0xf] }
 0x47a   :  { %3582 = vmatpush.bf16.msrb.mxu0 %v5794_v53  ;;  %v2996_v46 = vadd.f32 %v9512_v27, %v2981_v8  ;;  %3590 = vmatpush.bf16.msra.mxu1 %v5914_v13  ;;  %v5882_v63 = vor.u32 %v6648_v24, %v5881_v61 }
 0x47b   :  { %3369 = vmatmul.f32.gmra.mxu3 %v9286_v47  ;;  %v5795_v47 = vld [vmem:[%s10419_s6 + $0x8] sm:$0xf0]  ;;  %v3023_v41 = vadd.f32 %v9547_v54, %v3008_v12  ;;  %v6647_v12 = vld [vmem:[%s10419_s6 + $0xb4] sm:$0xf] }
 0x47c   :  { %3611 = vmatpush.bf16.msrb.mxu2 %v5806_v5  ;;  %v5798_v25 = vor.u32 %v6625_v28, %v5795_v47  ;;  %v3011_v30 = vadd.f32 %v9532_v29, %v2996_v46  ;;  %v6653_v5 = vld [vmem:[%s10419_s6 + $0xe4] sm:$0xf]  ;;  %v5897_v47 = vld [vmem:[%s10419_s6 + $0xd0] sm:$0xf] }
 0x47d   :  { %v3038_v48 = vadd.f32 %v9580_v17, %v3023_v41  ;;  %v5883_v41 = vld [vmem:[%s10419_s6 + $0xb8] sm:$0xf0] }
 0x47e   :  { %v3026_v45 = vadd.f32 %v9594_v51, %v3011_v30  ;;  %v3142_v51 = vpop.f32.mrf.mxu0  ;;  %v5886_v8 = vor.u32 %v6647_v12, %v5883_v41  ;;  %v5873_v30 = vld [vmem:[%s10419_s6 + $0xa0] sm:$0xf] }
 0x47f   :  { %v3053_v62 = vadd.f32 %v3052_v44, %v3038_v48  ;;  %v3143_v46 = vadd.f32 %v3142_v51, %v1610_v19  ;;  %v5857_v51 = vld [vmem:[%s10419_s6 + $0x80] sm:$0xf] }
 0x480   :  { %3612 = vmatpush.bf16.msrb.mxu2 %v5798_v25  ;;  %v3100_v15 = vpop.f32.mrf.mxu3  ;;  %v3041_v49 = vadd.f32 %v9621_v18, %v3026_v45  ;;  %v3157_v18 = vpop.f32.mrf.mxu1  ;;  %v6652_v25 = vld [vmem:[%s10419_s6 + $0xd4] sm:$0xf0] }
 0x481   :  { %v3068_v2 = vadd.f32 %v3067_v60, %v3053_v62  ;;  %v6654_v60 = vld [vmem:[%s10419_s6 + $0xe4] sm:$0xf0] }
 0x482   :  { %v3056_v7 = vadd.f32 %v3055_v55, %v3041_v49  ;;  %v5906_v14 = vor.u32 %v6654_v60, %v5905_v21  ;;  %v5907_v55 = vld [vmem:[%s10419_s6 + $0xe8] sm:$0xf0] }
 0x483   :  { %v3083_v42 = vadd.f32 %v3082_v11, %v3068_v2  ;;  %v5910_v33 = vor.u32 %v6653_v5, %v5907_v55  ;;  %v5902_v11 = vor.u32 %v6651_v10, %v5899_v0  ;;  %v6646_v2 = vld [vmem:[%s10419_s6 + $0xa4] sm:$0xf0] }
 0x484   :  { %v3071_v34 = vadd.f32 %v3070_v32, %v3056_v7  ;;  %3591 = vmatpush.bf16.msra.mxu1 %v5906_v14  ;;  %v5898_v32 = vor.u32 %v6652_v25, %v5897_v47  ;;  %v5874_v45 = vor.u32 %v6646_v2, %v5873_v30  ;;  %v5865_v7 = vld [vmem:[%s10419_s6 + $0x90] sm:$0xf] }
 0x485   :  { %v3112_v20 = vpop.f32.mrf.mxu2  ;;  %v3098_v31 = vadd.f32 %v3097_v16, %v3083_v42  ;;  %3621 = vmatpush.bf16.msrb.mxu3 %v5910_v33  ;;  %v5891_v16 = vld [vmem:[%s10419_s6 + $0xc8] sm:$0xf0] }
 0x486   :  { %v3086_v17 = vadd.f32 %v3085_v35, %v3071_v34  ;;  %v3145_v28 = vpop.f32.mrf.mxu0  ;;  %v5894_v6 = vor.u32 %v6649_v22, %v5891_v16  ;;  %v5875_v42 = vld [vmem:[%s10419_s6 + $0xa8] sm:$0xf0] }
 0x487   :  { %v3113_v54 = vadd.f32 %v3112_v20, %v3098_v31  ;;  %v6645_v20 = vld [vmem:[%s10419_s6 + $0xa4] sm:$0xf] }
 0x488   :  { %v3101_v44 = vadd.f32 %v3100_v15, %v3086_v17  ;;  %v3160_v53 = vpop.f32.mrf.mxu1  ;;  %3592 = vmatpush.bf16.msra.mxu1 %v5898_v32  ;;  %v3158_v15 = vadd.f32 %v3157_v18, %v3143_v46  ;;  %v5878_v31 = vor.u32 %v6645_v20, %v5875_v42  ;;  %v6642_v18 = vld [vmem:[%s10419_s6 + $0x84] sm:$0xf0] }
 0x489   :  { %3622 = vmatpush.bf16.msrb.mxu3 %v5902_v11  ;;  %v5858_v40 = vor.u32 %v6642_v18, %v5857_v51  ;;  %v6747_v51 = vld [vmem:[%s10421_s8 + $0x2d4] sm:$0xf]  ;;  %v6283_v18 = vld [vmem:[%s10421_s8 + $0x2e8] sm:$0xf0] }
 0x48c   :  { %3593 = vmatpush.bf16.msra.mxu1 %v5890_v38 }
 0x48d   :  { %v3115_v27 = vpop.f32.mrf.mxu2  ;;  %3623 = vmatpush.bf16.msrb.mxu3 %v5894_v6 }
 0x48e   :  { %v3116_v29 = vadd.f32 %v3115_v27, %v3101_v44  ;;  %v3202_v35 = vpop.f32.mrf.mxu0 }
 0x490   :  { %v3217_v48 = vpop.f32.mrf.mxu1  ;;  %3594 = vmatpush.bf16.msra.mxu1 %v5882_v63 }
 0x491   :  { %3624 = vmatpush.bf16.msrb.mxu3 %v5886_v8 }
 0x494   :  { %3595 = vmatpush.bf16.msra.mxu1 %v5874_v45 }
 0x495   :  { %v3127_v37 = vpop.f32.mrf.mxu3  ;;  %v3172_v43 = vpop.f32.mrf.mxu2  ;;  %3625 = vmatpush.bf16.msrb.mxu3 %v5878_v31 }
 0x496   :  { %v3128_v3 = vadd.f32 %v3127_v37, %v3113_v54  ;;  %v3173_v49 = vadd.f32 %v3172_v43, %v3158_v15  ;;  %v6644_v54 = vld [vmem:[%s10419_s6 + $0x94] sm:$0xf0]  ;;  %v6643_v37 = vld [vmem:[%s10419_s6 + $0x94] sm:$0xf]  ;;  %v3205_v27 = vpop.f32.mrf.mxu0  ;;  %v6641_v43 = vld [vmem:[%s10419_s6 + $0x84] sm:$0xf] }
 0x497   :  { %v5866_v34 = vor.u32 %v6644_v54, %v5865_v7  ;;  %v5862_v1 = vor.u32 %v6641_v43, %v5859_v9  ;;  %v6089_v7 = vld [vmem:[%s10421_s8 + $0x150] sm:$0xf]  ;;  %v6702_v54 = vld [vmem:[%s10421_s8 + $0x164] sm:$0xf0] }
 0x498   :  { %v3373_v26 = vmax.f32 %v3128_v3, 0.0  ;;  %v5867_v3 = vld [vmem:[%s10419_s6 + $0x98] sm:$0xf0]  ;;  %v6041_v9 = vld [vmem:[%s10421_s8 + $0xf0] sm:$0xf] }
 0x499   :  { %3596 = vmatpush.bf16.msra.mxu1 %v5866_v34  ;;  %v6090_v34 = vor.u32 %v6702_v54, %v6089_v7  ;;  %v6161_v7 = vld [vmem:[%s10421_s8 + $0x1e0] sm:$0xf] }
 0x49a   :  { %3583 = vmatmul.f32.vlgmr.msrb.gmra.mxu0 %v3373_v26  ;;  %3613 = vmatmul.f32.vlgmr.msrb.gmra.mxu2 %v3373_v26  ;;  %v5870_v26 = vor.u32 %v6643_v37, %v5867_v3  ;;  %v6699_v37 = vld [vmem:[%s10421_s8 + $0x154] sm:$0xf]  ;;  %v6091_v3 = vld [vmem:[%s10421_s8 + $0x168] sm:$0xf0] }
 0x49b   :  { %4229 = vmatpush.bf16.msra.mxu0 %v6090_v34  ;;  %v6717_v34 = vld [vmem:[%s10421_s8 + $0x1e4] sm:$0xf] }
 0x49c   :  { %3626 = vmatpush.bf16.msrb.mxu3 %v5870_v26  ;;  %v6696_v26 = vld [vmem:[%s10421_s8 + $0x134] sm:$0xf0] }
 0x49d   :  { %v3130_v4 = vpop.f32.mrf.mxu3  ;;  %v3175_v59 = vpop.f32.mrf.mxu2  ;;  %3597 = vmatpush.bf16.msra.mxu1 %v5858_v40  ;;  %v6286_v40 = vor.u32 %v6747_v51, %v6283_v18  ;;  %v6137_v51 = vld [vmem:[%s10421_s8 + $0x1b0] sm:$0xf] }
 0x49e   :  { %v3131_v52 = vadd.f32 %v3130_v4, %v3116_v29  ;;  %v3146_v29 = vadd.f32 %v3145_v28, %v1610_v19  ;;  %v3220_v4 = vpop.f32.mrf.mxu1  ;;  %v3262_v60 = vpop.f32.mrf.mxu0 }
 0x4a0   :  { %v3375_v50 = vmax.f32 %v3131_v52, 0.0  ;;  %v3161_v52 = vadd.f32 %v3160_v53, %v3146_v29  ;;  %3627 = vmatpush.bf16.msrb.mxu3 %v5862_v1  ;;  %v6067_v29 = vld [vmem:[%s10421_s8 + $0x138] sm:$0xf0]  ;;  %v6687_v1 = vld [vmem:[%s10421_s8 + $0xf4] sm:$0xf] }
 0x4a2   :  { %3586 = vmatmul.f32.gmra.mxu0 %v3375_v50  ;;  %3616 = vmatmul.f32.gmra.mxu2 %v3375_v50  ;;  %v3176_v13 = vadd.f32 %v3175_v59, %v3161_v52 }
 0x4a4   :  { %4274 = vmatpush.bf16.msra.mxu3 %v6286_v40  ;;  %v6139_v40 = vld [vmem:[%s10421_s8 + $0x1c8] sm:$0xf0] }
 0x4a5   :  { %v3187_v57 = vpop.f32.mrf.mxu3 }
 0x4a6   :  { %v3232_v62 = vpop.f32.mrf.mxu2  ;;  %v3188_v17 = vadd.f32 %v3187_v57, %v3173_v49  ;;  %v3277_v57 = vpop.f32.mrf.mxu1 }
 0x4a7   :  { %v3265_v25 = vpop.f32.mrf.mxu0 }
 0x4a8   :  { %v3203_v50 = vadd.f32 %v3202_v35, %v3188_v17  ;;  %v6065_v17 = vld [vmem:[%s10421_s8 + $0x120] sm:$0xf] }
 0x4a9   :  { %v6066_v52 = vor.u32 %v6696_v26, %v6065_v17  ;;  %v5945_v26 = vld [vmem:[%s10421_s8 + $0x30] sm:$0xf] }
 0x4aa   :  { %v3218_v39 = vadd.f32 %v3217_v48, %v3203_v50  ;;  %v6750_v50 = vld [vmem:[%s10421_s8 + $0x2e4] sm:$0xf0] }
 0x4ab   :  { %4230 = vmatpush.bf16.msra.mxu0 %v6066_v52 }
 0x4ac   :  { %v3233_v14 = vadd.f32 %v3232_v62, %v3218_v39  ;;  %v6043_v39 = vld [vmem:[%s10421_s8 + $0x108] sm:$0xf0] }
 0x4ad   :  { %v3190_v58 = vpop.f32.mrf.mxu3 }
 0x4ae   :  { %v3235_v56 = vpop.f32.mrf.mxu2  ;;  %v3191_v21 = vadd.f32 %v3190_v58, %v3176_v13  ;;  %v3280_v59 = vpop.f32.mrf.mxu1  ;;  %v6690_v13 = vld [vmem:[%s10421_s8 + $0x104] sm:$0xf0] }
 0x4af   :  { %v3322_v38 = vpop.f32.mrf.mxu0 }
 0x4b0   :  { %v3206_v55 = vadd.f32 %v3205_v27, %v3191_v21  ;;  %v6094_v27 = vor.u32 %v6699_v37, %v6091_v3  ;;  %v6257_v21 = vld [vmem:[%s10421_s8 + $0x2a0] sm:$0xf]  ;;  %v6720_v37 = vld [vmem:[%s10421_s8 + $0x1f4] sm:$0xf0]  ;;  %v6163_v3 = vld [vmem:[%s10421_s8 + $0x1f8] sm:$0xf0] }
 0x4b1   :  { %v6166_v52 = vor.u32 %v6717_v34, %v6163_v3  ;;  %v6685_v34 = vld [vmem:[%s10421_s8 + $0xdc] sm:$0xf0]  ;;  %v6682_v3 = vld [vmem:[%s10421_s8 + $0xcc] sm:$0xf] }
 0x4b2   :  { %v3221_v53 = vadd.f32 %v3220_v4, %v3206_v55  ;;  %v6281_v4 = vld [vmem:[%s10421_s8 + $0x2d0] sm:$0xf]  ;;  %4259 = vmatpush.bf16.msra.mxu2 %v6094_v27  ;;  %v6259_v55 = vld [vmem:[%s10421_s8 + $0x2b8] sm:$0xf0]  ;;  %v6666_v27 = vld [vmem:[%s10421_s8 + $0x44] sm:$0xf0] }
 0x4b3   :  { %v5946_v18 = vor.u32 %v6666_v27, %v5945_v26 }
 0x4b4   :  { %v3236_v32 = vadd.f32 %v3235_v56, %v3221_v53  ;;  %v6282_v56 = vor.u32 %v6750_v50, %v6281_v4  ;;  %v6684_v53 = vld [vmem:[%s10421_s8 + $0xd4] sm:$0xf0]  ;;  %v6162_v4 = vor.u32 %v6720_v37, %v6161_v7  ;;  %v5921_v50 = vld [vmem:[%s10421_s8] sm:$0xf]  ;;  %v6243_v7 = vld [vmem:[%s10421_s8 + $0x290] sm:$0xf0] }
 0x4b5   :  { %v6025_v37 = vld [vmem:[%s10421_s8 + $0xc8] sm:$0xf] }
 0x4b6   :  { %v3247_v44 = vpop.f32.mrf.mxu3  ;;  %v3337_v24 = vpop.f32.mrf.mxu1  ;;  %4244 = vmatpush.bf16.msrb.mxu1 %v6282_v56  ;;  %v6711_v56 = vld [vmem:[%s10421_s8 + $0x1b4] sm:$0xf] }
 0x4b7   :  { %v3248_v28 = vadd.f32 %v3247_v44, %v3233_v14  ;;  %v3325_v8 = vpop.f32.mrf.mxu0  ;;  %v6693_v44 = vld [vmem:[%s10421_s8 + $0x124] sm:$0xf] }
 0x4b8   :  { %v6070_v43 = vor.u32 %v6693_v44, %v6067_v29  ;;  %v6741_v14 = vld [vmem:[%s10421_s8 + $0x2a4] sm:$0xf]  ;;  %v6663_v44 = vld [vmem:[%s10421_s8 + $0x34] sm:$0xf]  ;;  %v5947_v29 = vld [vmem:[%s10421_s8 + $0x48] sm:$0xf0] }
 0x4b9   :  { %v3263_v47 = vadd.f32 %v3262_v60, %v3248_v28  ;;  %v6744_v60 = vld [vmem:[%s10421_s8 + $0x2b4] sm:$0xf0]  ;;  %v6017_v28 = vld [vmem:[%s10421_s8 + $0xc0] sm:$0xf] }
 0x4ba   :  { %4260 = vmatpush.bf16.msra.mxu2 %v6070_v43  ;;  %v6714_v43 = vld [vmem:[%s10421_s8 + $0x1c4] sm:$0xf0] }
 0x4bb   :  { %v3278_v11 = vadd.f32 %v3277_v57, %v3263_v47  ;;  %v6042_v57 = vor.u32 %v6690_v13, %v6041_v9  ;;  %v6046_v47 = vor.u32 %v6687_v1, %v6043_v39  ;;  %v5950_v9 = vor.u32 %v6663_v44, %v5947_v29  ;;  %v6660_v13 = vld [vmem:[%s10421_s8 + $0x14] sm:$0xf0]  ;;  %v6657_v1 = vld [vmem:[%s10421_s8 + $0x4] sm:$0xf]  ;;  %v5923_v39 = vld [vmem:[%s10421_s8 + $0x18] sm:$0xf0] }
 0x4bc   :  { %v6217_v44 = vld [vmem:[%s10421_s8 + $0x248] sm:$0xf]  ;;  %v6026_v29 = vor.u32 %v6685_v34, %v6025_v37  ;;  %v6105_v34 = vld [vmem:[%s10421_s8 + $0x160] sm:$0xf] }
 0x4bd   :  { %4231 = vmatpush.bf16.msra.mxu0 %v6042_v57  ;;  %v6142_v57 = vor.u32 %v6711_v56, %v6139_v40  ;;  %v6676_v56 = vld [vmem:[%s10421_s8 + $0x9c] sm:$0xf]  ;;  %v6003_v40 = vld [vmem:[%s10421_s8 + $0xb0] sm:$0xf0] }
 0x4be   :  { %v3250_v5 = vpop.f32.mrf.mxu3  ;;  %v3340_v30 = vpop.f32.mrf.mxu1  ;;  %4261 = vmatpush.bf16.msra.mxu2 %v6046_v47  ;;  %v6705_v47 = vld [vmem:[%s10421_s8 + $0x184] sm:$0xf] }
 0x4bf   :  { %v3251_v0 = vadd.f32 %v3250_v5, %v3236_v32  ;;  %v6258_v5 = vor.u32 %v6744_v60, %v6257_v21  ;;  %v6735_v32 = vld [vmem:[%s10421_s8 + $0x274] sm:$0xf]  ;;  %v6097_v21 = vld [vmem:[%s10421_s8 + $0x158] sm:$0xf]  ;;  %v6703_v60 = vld [vmem:[%s10421_s8 + $0x16c] sm:$0xf0] }
 0x4c1   :  { %v3266_v22 = vadd.f32 %v3265_v25, %v3251_v0  ;;  %v6233_v25 = vld [vmem:[%s10421_s8 + $0x270] sm:$0xf]  ;;  %v6681_v0 = vld [vmem:[%s10421_s8 + $0xc4] sm:$0xf]  ;;  %4245 = vmatpush.bf16.msrb.mxu1 %v6258_v5  ;;  %v6700_v5 = vld [vmem:[%s10421_s8 + $0x15c] sm:$0xf] }
 0x4c3   :  { %v3281_v6 = vadd.f32 %v3280_v59, %v3266_v22  ;;  %v6235_v59 = vld [vmem:[%s10421_s8 + $0x288] sm:$0xf0]  ;;  %v6209_v22 = vld [vmem:[%s10421_s8 + $0x240] sm:$0xf] }
 0x4c6   :  { %v3292_v33 = vpop.f32.mrf.mxu2 }
 0x4c7   :  { %v3293_v36 = vadd.f32 %v3292_v33, %v3278_v11  ;;  %v6262_v33 = vor.u32 %v6741_v14, %v6259_v55  ;;  %v6019_v11 = vld [vmem:[%s10421_s8 + $0xd8] sm:$0xf0]  ;;  %v6099_v14 = vld [vmem:[%s10421_s8 + $0x170] sm:$0xf0]  ;;  %v6138_v55 = vor.u32 %v6714_v43, %v6137_v51  ;;  %v6679_v43 = vld [vmem:[%s10421_s8 + $0xac] sm:$0xf0] }
 0x4c9   :  { %4275 = vmatpush.bf16.msra.mxu3 %v6262_v33  ;;  %v6113_v33 = vld [vmem:[%s10421_s8 + $0x180] sm:$0xf] }
 0x4ce   :  { %v3295_v23 = vpop.f32.mrf.mxu2 }
 0x4cf   :  { %v3296_v35 = vadd.f32 %v3295_v23, %v3281_v6  ;;  %v6211_v6 = vld [vmem:[%s10421_s8 + $0x258] sm:$0xf0] }
 0x4d6   :  { %v3307_v10 = vpop.f32.mrf.mxu3 }
 0x4d7   :  { %v3308_v19 = vadd.f32 %v3307_v10, %v3293_v36  ;;  %v6738_v10 = vld [vmem:[%s10421_s8 + $0x284] sm:$0xf0]  ;;  %v6238_v36 = vor.u32 %v6735_v32, %v6235_v59  ;;  %v5926_v32 = vor.u32 %v6657_v1, %v5923_v39  ;;  %v6748_v59 = vld [vmem:[%s10421_s8 + $0x2dc] sm:$0xf]  ;;  %v6193_v1 = vld [vmem:[%s10421_s8 + $0x218] sm:$0xf] }
 0x4d8   :  { %v6234_v23 = vor.u32 %v6738_v10, %v6233_v25  ;;  %v6115_v25 = vld [vmem:[%s10421_s8 + $0x198] sm:$0xf0]  ;;  %v6289_v10 = vld [vmem:[%s10421_s8 + $0x2d8] sm:$0xf] }
 0x4d9   :  { %v3323_v61 = vadd.f32 %v3322_v38, %v3308_v19  ;;  %v6018_v19 = vor.u32 %v6684_v53, %v6017_v28  ;;  %v6732_v38 = vld [vmem:[%s10421_s8 + $0x254] sm:$0xf0]  ;;  %4276 = vmatpush.bf16.msra.mxu3 %v6238_v36  ;;  %v5922_v53 = vor.u32 %v6660_v13, %v5921_v50  ;;  %v6102_v36 = vor.u32 %v6700_v5, %v6099_v14  ;;  %v6219_v50 = vld [vmem:[%s10421_s8 + $0x260] sm:$0xf0]  ;;  %v6195_v5 = vld [vmem:[%s10421_s8 + $0x230] sm:$0xf0] }
 0x4da   :  { %4246 = vmatpush.bf16.msrb.mxu1 %v6234_v23  ;;  %v6708_v28 = vld [vmem:[%s10421_s8 + $0x194] sm:$0xf0]  ;;  %v6291_v23 = vld [vmem:[%s10421_s8 + $0x2f0] sm:$0xf0]  ;;  %v6006_v14 = vor.u32 %v6676_v56, %v6003_v40 }
 0x4db   :  { %v3338_v63 = vadd.f32 %v3337_v24, %v3323_v61  ;;  %v6022_v61 = vor.u32 %v6681_v0, %v6019_v11  ;;  %v5993_v24 = vld [vmem:[%s10421_s8 + $0x90] sm:$0xf]  ;;  %4232 = vmatpush.bf16.msra.mxu0 %v6018_v19  ;;  %v6098_v0 = vor.u32 %v6703_v60, %v6097_v21  ;;  %v6697_v19 = vld [vmem:[%s10421_s8 + $0x13c] sm:$0xf0]  ;;  %v6724_v60 = vld [vmem:[%s10421_s8 + $0x21c] sm:$0xf] }
 0x4dc   :  { %v6751_v11 = vld [vmem:[%s10421_s8 + $0x2ec] sm:$0xf0]  ;;  %v6695_v40 = vld [vmem:[%s10421_s8 + $0x134] sm:$0xf] }
 0x4dd   :  { %4262 = vmatpush.bf16.msra.mxu2 %v6022_v61  ;;  %v6118_v61 = vor.u32 %v6705_v47, %v6115_v25  ;;  %v6727_v21 = vld [vmem:[%s10421_s8 + $0x22c] sm:$0xf0]  ;;  %v6198_v47 = vor.u32 %v6724_v60, %v6195_v5  ;;  %v6749_v60 = vld [vmem:[%s10421_s8 + $0x2e4] sm:$0xf]  ;;  %v6299_v5 = vld [vmem:[%s10421_s8 + $0x2f8] sm:$0xf0] }
 0x4de   :  { %v3310_v16 = vpop.f32.mrf.mxu3 }
 0x4df   :  { %v3311_v58 = vadd.f32 %v3310_v16, %v3296_v35  ;;  %v6729_v16 = vld [vmem:[%s10421_s8 + $0x244] sm:$0xf]  ;;  %v6675_v35 = vld [vmem:[%s10421_s8 + $0x94] sm:$0xf] }
 0x4e1   :  { %v3326_v46 = vadd.f32 %v3325_v8, %v3311_v58  ;;  %v5995_v58 = vld [vmem:[%s10421_s8 + $0xa8] sm:$0xf0]  ;;  %v6185_v8 = vld [vmem:[%s10421_s8 + $0x210] sm:$0xf] }
 0x4e3   :  { %v3341_v20 = vadd.f32 %v3340_v30, %v3326_v46  ;;  %v6726_v46 = vld [vmem:[%s10421_s8 + $0x224] sm:$0xf0]  ;;  %v5998_v30 = vor.u32 %v6675_v35, %v5995_v58 }
 0x4e4   :  { %v6265_v35 = vld [vmem:[%s10421_s8 + $0x2a8] sm:$0xf] }
 0x4e5   :  { %4263 = vmatpush.bf16.msra.mxu2 %v5998_v30  ;;  %v6051_v30 = vld [vmem:[%s10421_s8 + $0x110] sm:$0xf0] }
 0x4e6   :  { %v3352_v12 = vpop.f32.mrf.mxu2 }
 0x4e7   :  { %v3353_v41 = vadd.f32 %v3352_v12, %v3338_v63  ;;  %v6678_v12 = vld [vmem:[%s10421_s8 + $0xa4] sm:$0xf0]  ;;  %v6210_v63 = vor.u32 %v6732_v38, %v6209_v22  ;;  %v6694_v38 = vld [vmem:[%s10421_s8 + $0x12c] sm:$0xf] }
 0x4e8   :  { %v6073_v22 = vld [vmem:[%s10421_s8 + $0x128] sm:$0xf] }
 0x4e9   :  { %4247 = vmatpush.bf16.msrb.mxu1 %v6210_v63  ;;  %v6074_v58 = vor.u32 %v6697_v19, %v6073_v22  ;;  %v6745_v63 = vld [vmem:[%s10421_s8 + $0x2bc] sm:$0xf0]  ;;  %v6169_v22 = vld [vmem:[%s10421_s8 + $0x1e8] sm:$0xf] }
 0x4ea   :  { %v6721_v19 = vld [vmem:[%s10421_s8 + $0x1fc] sm:$0xf0] }
 0x4ee   :  { %v3355_v2 = vpop.f32.mrf.mxu2 }
 0x4ef   :  { %v3356_v45 = vadd.f32 %v3355_v2, %v3341_v20  ;;  %v5969_v2 = vld [vmem:[%s10421_s8 + $0x60] sm:$0xf]  ;;  %v6672_v20 = vld [vmem:[%s10421_s8 + $0x74] sm:$0xf0] }
 0x4f0   :  { %v5970_v54 = vor.u32 %v6672_v20, %v5969_v2  ;;  %v6266_v2 = vor.u32 %v6745_v63, %v6265_v35  ;;  %v6658_v35 = vld [vmem:[%s10421_s8 + $0xc] sm:$0xf]  ;;  %v5931_v63 = vld [vmem:[%s10421_s8 + $0x20] sm:$0xf0] }
 0x4f6   :  { %v3367_v48 = vpop.f32.mrf.mxu3 }
 0x4f7   :  { %v3368_v62 = vadd.f32 %v3367_v48, %v3353_v41  ;;  %v6214_v41 = vor.u32 %v6729_v16, %v6211_v6  ;;  %v5994_v48 = vor.u32 %v6678_v12, %v5993_v24  ;;  %v6075_v16 = vld [vmem:[%s10421_s8 + $0x140] sm:$0xf0]  ;;  %v6114_v6 = vor.u32 %v6708_v28, %v6113_v33  ;;  %v6670_v33 = vld [vmem:[%s10421_s8 + $0x6c] sm:$0xf] }
 0x4f8   :  { %v6290_v24 = vor.u32 %v6751_v11, %v6289_v10  ;;  %v6294_v12 = vor.u32 %v6748_v59, %v6291_v23  ;;  %v5979_v28 = vld [vmem:[%s10421_s8 + $0x80] sm:$0xf0]  ;;  %v6664_v11 = vld [vmem:[%s10421_s8 + $0x3c] sm:$0xf]  ;;  %v5955_v23 = vld [vmem:[%s10421_s8 + $0x50] sm:$0xf0] }
 0x4f9   :  { %v3374_v15 = vmax.f32 %v3368_v62, 0.0  ;;  %v6723_v62 = vld [vmem:[%s10421_s8 + $0x214] sm:$0xf]  ;;  %4277 = vmatpush.bf16.msra.mxu3 %v6214_v41  ;;  %4233 = vmatpush.bf16.msra.mxu0 %v5994_v48  ;;  %v6742_v41 = vld [vmem:[%s10421_s8 + $0x2ac] sm:$0xf]  ;;  %v6078_v48 = vor.u32 %v6694_v38, %v6075_v16  ;;  %v5982_v10 = vor.u32 %v6670_v33, %v5979_v28  ;;  %v6170_v16 = vor.u32 %v6721_v19, %v6169_v22 }
 0x4fa   :  { %v6718_v38 = vld [vmem:[%s10421_s8 + $0x1ec] sm:$0xf]  ;;  %v6057_v33 = vld [vmem:[%s10421_s8 + $0x100] sm:$0xf]  ;;  %v6743_v19 = vld [vmem:[%s10421_s8 + $0x2b4] sm:$0xf] }
 0x4fb   :  { %3598 = vmatmul.f32.vlgmr.msra.gmra.mxu1 %v3374_v15  ;;  %3628 = vmatmul.f32.vlgmr.msrb.gmra.mxu3 %v3374_v15  ;;  %v6187_v15 = vld [vmem:[%s10421_s8 + $0x228] sm:$0xf0] }
 0x4fd   :  { %4234 = vmatpush.bf16.msra.mxu0 %v5970_v54 }
 0x4fe   :  { %v3370_v42 = vpop.f32.mrf.mxu3 }
 0x4ff   :  { %v3371_v49 = vadd.f32 %v3370_v42, %v3356_v45  ;;  %v6669_v45 = vld [vmem:[%s10421_s8 + $0x64] sm:$0xf]  ;;  %v5971_v42 = vld [vmem:[%s10421_s8 + $0x78] sm:$0xf0] }
 0x500   :  { %v5974_v17 = vor.u32 %v6669_v45, %v5971_v42  ;;  %v6241_v45 = vld [vmem:[%s10421_s8 + $0x278] sm:$0xf] }
 0x501   :  { %v3376_v31 = vmax.f32 %v3371_v49, 0.0  ;;  %v6186_v49 = vor.u32 %v6726_v46, %v6185_v8  ;;  %4235 = vmatpush.bf16.msra.mxu0 %v5946_v18  ;;  %v6267_v8 = vld [vmem:[%s10421_s8 + $0x2c0] sm:$0xf0]  ;;  %v6049_v46 = vld [vmem:[%s10421_s8 + $0xf8] sm:$0xf] }
 0x502   :  { %4264 = vmatpush.bf16.msra.mxu2 %v5974_v17  ;;  %v6270_v20 = vor.u32 %v6742_v41, %v6267_v8  ;;  %v6027_v17 = vld [vmem:[%s10421_s8 + $0xe0] sm:$0xf0]  ;;  %v6001_v18 = vld [vmem:[%s10421_s8 + $0x98] sm:$0xf]  ;;  %v5934_v41 = vor.u32 %v6658_v35, %v5931_v63  ;;  %v6035_v63 = vld [vmem:[%s10421_s8 + $0xe8] sm:$0xf0] }
 0x503   :  { %3601 = vmatmul.f32.gmra.mxu1 %v3376_v31  ;;  %3631 = vmatmul.f32.gmra.mxu3 %v3376_v31  ;;  %v6190_v31 = vor.u32 %v6723_v62, %v6187_v15  ;;  %v6691_v62 = vld [vmem:[%s10421_s8 + $0x10c] sm:$0xf0]  ;;  %v6688_v15 = vld [vmem:[%s10421_s8 + $0xfc] sm:$0xf]  ;;  %v6030_v51 = vor.u32 %v6682_v3, %v6027_v17  ;;  %v6002_v39 = vor.u32 %v6679_v43, %v6001_v18  ;;  %v6145_v8 = vld [vmem:[%s10421_s8 + $0x1b8] sm:$0xf] }
 0x504   :  { %4248 = vmatpush.bf16.msrb.mxu1 %v6186_v49  ;;  %v6050_v42 = vor.u32 %v6691_v62, %v6049_v46  ;;  %v6739_v49 = vld [vmem:[%s10421_s8 + $0x28c] sm:$0xf0]  ;;  %v6054_v54 = vor.u32 %v6688_v15, %v6051_v30  ;;  %v6712_v46 = vld [vmem:[%s10421_s8 + $0x1bc] sm:$0xf]  ;;  %v6147_v62 = vld [vmem:[%s10421_s8 + $0x1d0] sm:$0xf0] }
 0x505   :  { %4278 = vmatpush.bf16.msra.mxu3 %v6190_v31  ;;  %4236 = vmatpush.bf16.msra.mxu0 %v5922_v53  ;;  %v6736_v31 = vld [vmem:[%s10421_s8 + $0x27c] sm:$0xf]  ;;  %v6242_v26 = vor.u32 %v6739_v49, %v6241_v45  ;;  %v6194_v53 = vor.u32 %v6727_v21, %v6193_v1  ;;  %v6150_v30 = vor.u32 %v6712_v46, %v6147_v62  ;;  %v6123_v49 = vld [vmem:[%s10421_s8 + $0x1a0] sm:$0xf0]  ;;  %v6704_v17 = vld [vmem:[%s10421_s8 + $0x174] sm:$0xf0] }
 0x506   :  { %4265 = vmatpush.bf16.msra.mxu2 %v5950_v9  ;;  %v6246_v27 = vor.u32 %v6736_v31, %v6243_v7  ;;  %v10171_v7 = vld [vmem:[%s10420_s7] sm:$0x3]  ;;  %v6081_v18 = vld [vmem:[%s10421_s8 + $0x130] sm:$0xf]  ;;  %v6698_v43 = vld [vmem:[%s10421_s8 + $0x144] sm:$0xf0] }
 0x507   :  { %v3411_v37 = vperm.slane %v10171_v7, 0  ;;  %v6297_v1 = vld [vmem:[%s10421_s8 + $0x2e0] sm:$0xf]  ;;  %v6752_v21 = vld [vmem:[%s10421_s8 + $0x2f4] sm:$0xf0] }
 0x508   :  { %4249 = vmatpush.bf16.msrb.mxu1 %v6162_v4  ;;  %v6733_v4 = vld [vmem:[%s10421_s8 + $0x25c] sm:$0xf0]  ;;  %v6740_v62 = vld [vmem:[%s10421_s8 + $0x294] sm:$0xf0] }
 0x509   :  { %4279 = vmatpush.bf16.msra.mxu3 %v6166_v52  ;;  %4289 = vmatpush.bf16.msrb.mxu0 %v6098_v0  ;;  %v6730_v52 = vld [vmem:[%s10421_s8 + $0x24c] sm:$0xf]  ;;  %v6218_v9 = vor.u32 %v6733_v4, %v6217_v44  ;;  %v6667_v0 = vld [vmem:[%s10421_s8 + $0x4c] sm:$0xf0]  ;;  %v3412_v4 = vperm.slane %v10171_v7, 1 }
 0x50a   :  { %4266 = vmatpush.bf16.msra.mxu2 %v5926_v32  ;;  %v6222_v13 = vor.u32 %v6730_v52, %v6219_v50  ;;  %v5953_v32 = vld [vmem:[%s10421_s8 + $0x38] sm:$0xf]  ;;  %v6106_v50 = vor.u32 %v6704_v17, %v6105_v34  ;;  %v6677_v7 = vld [vmem:[%s10421_s8 + $0xa4] sm:$0xf]  ;;  %v6734_v17 = vld [vmem:[%s10421_s8 + $0x264] sm:$0xf0] }
 0x50b   :  { %v5954_v59 = vor.u32 %v6667_v0, %v5953_v32  ;;  %v6298_v0 = vor.u32 %v6752_v21, %v6297_v1  ;;  %v6725_v1 = vld [vmem:[%s10421_s8 + $0x224] sm:$0xf] }
 0x50c   :  { %4250 = vmatpush.bf16.msrb.mxu1 %v6138_v55  ;;  %v5977_v55 = vld [vmem:[%s10421_s8 + $0x68] sm:$0xf] }
 0x50d   :  { %4280 = vmatpush.bf16.msra.mxu3 %v6142_v57  ;;  %4290 = vmatpush.bf16.msrb.mxu0 %v6074_v58  ;;  %v6673_v57 = vld [vmem:[%s10421_s8 + $0x7c] sm:$0xf0] }
 0x50e   :  { %4319 = vmatpush.bf16.msrb.mxu2 %v6102_v36  ;;  %v5978_v25 = vor.u32 %v6673_v57, %v5977_v55  ;;  %v5958_v36 = vor.u32 %v6664_v11, %v5955_v23  ;;  %v6082_v55 = vor.u32 %v6698_v43, %v6081_v18  ;;  %v6302_v11 = vor.u32 %v6749_v60, %v6299_v5  ;;  %v6746_v23 = vld [vmem:[%s10421_s8 + $0x2c4] sm:$0xf0]  ;;  %v5987_v18 = vld [vmem:[%s10421_s8 + $0x88] sm:$0xf0]  ;;  %v5961_v5 = vld [vmem:[%s10421_s8 + $0x40] sm:$0xf] }
 0x510   :  { %4251 = vmatpush.bf16.msrb.mxu1 %v6114_v6  ;;  %v6171_v6 = vld [vmem:[%s10421_s8 + $0x200] sm:$0xf0] }
 0x511   :  { %4281 = vmatpush.bf16.msra.mxu3 %v6118_v61  ;;  %4291 = vmatpush.bf16.msrb.mxu0 %v6050_v42  ;;  %v6174_v61 = vor.u32 %v6718_v38, %v6171_v6  ;;  %v6706_v42 = vld [vmem:[%s10421_s8 + $0x18c] sm:$0xf] }
 0x512   :  { %4320 = vmatpush.bf16.msrb.mxu2 %v6078_v48  ;;  %v6715_v48 = vld [vmem:[%s10421_s8 + $0x1cc] sm:$0xf0]  ;;  %v6126_v31 = vor.u32 %v6706_v42, %v6123_v49  ;;  %v6275_v38 = vld [vmem:[%s10421_s8 + $0x2c8] sm:$0xf0]  ;;  %v6009_v42 = vld [vmem:[%s10421_s8 + $0xa0] sm:$0xf] }
 0x513   :  { %v6146_v15 = vor.u32 %v6715_v48, %v6145_v8  ;;  %v6278_v8 = vor.u32 %v6743_v19, %v6275_v38  ;;  %v6249_v48 = vld [vmem:[%s10421_s8 + $0x280] sm:$0xf] }
 0x514   :  { %4304 = vmatpush.bf16.msra.mxu1 %v6290_v24  ;;  %v5929_v24 = vld [vmem:[%s10421_s8 + $0x8] sm:$0xf] }
 0x515   :  { %4334 = vmatpush.bf16.msrb.mxu3 %v6294_v12  ;;  %4292 = vmatpush.bf16.msrb.mxu0 %v6026_v29  ;;  %v6661_v12 = vld [vmem:[%s10421_s8 + $0x1c] sm:$0xf0] }
 0x516   :  { %4321 = vmatpush.bf16.msrb.mxu2 %v6054_v54  ;;  %v5930_v58 = vor.u32 %v6661_v12, %v5929_v24  ;;  %v6033_v24 = vld [vmem:[%s10421_s8 + $0xd0] sm:$0xf]  ;;  %v6686_v12 = vld [vmem:[%s10421_s8 + $0xe4] sm:$0xf0] }
 0x517   :  { %v3584_v54 = vpop.f32.mrf.mxu0 }
 0x518   :  { %4305 = vmatpush.bf16.msra.mxu1 %v6266_v2  ;;  %v6121_v2 = vld [vmem:[%s10421_s8 + $0x188] sm:$0xf]  ;;  %v3585_v3 = vadd.f32 %v3584_v54, %v3411_v37  ;;  %v6011_v54 = vld [vmem:[%s10421_s8 + $0xb8] sm:$0xf0] }
 0x519   :  { %4335 = vmatpush.bf16.msrb.mxu3 %v6270_v20  ;;  %4293 = vmatpush.bf16.msrb.mxu0 %v6002_v39  ;;  %v6709_v20 = vld [vmem:[%s10421_s8 + $0x19c] sm:$0xf0] }
 0x51a   :  { %4322 = vmatpush.bf16.msrb.mxu2 %v6030_v51  ;;  %v6122_v45 = vor.u32 %v6709_v20, %v6121_v2  ;;  %v6034_v20 = vor.u32 %v6686_v12, %v6033_v24  ;;  %v6155_v24 = vld [vmem:[%s10421_s8 + $0x1d8] sm:$0xf0] }
 0x51c   :  { %4306 = vmatpush.bf16.msra.mxu1 %v6242_v26  ;;  %v6701_v26 = vld [vmem:[%s10421_s8 + $0x164] sm:$0xf] }
 0x51d   :  { %4336 = vmatpush.bf16.msrb.mxu3 %v6246_v27  ;;  %4294 = vmatpush.bf16.msrb.mxu0 %v5978_v25  ;;  %v6107_v27 = vld [vmem:[%s10421_s8 + $0x178] sm:$0xf0]  ;;  %v3614_v44 = vpop.f32.mrf.mxu2  ;;  %v6689_v25 = vld [vmem:[%s10421_s8 + $0x104] sm:$0xf] }
 0x51e   :  { %4323 = vmatpush.bf16.msrb.mxu2 %v6006_v14  ;;  %v6110_v51 = vor.u32 %v6701_v26, %v6107_v27  ;;  %v3615_v39 = vadd.f32 %v3614_v44, %v3412_v4  ;;  %v6731_v27 = vld [vmem:[%s10421_s8 + $0x254] sm:$0xf]  ;;  %v6227_v44 = vld [vmem:[%s10421_s8 + $0x268] sm:$0xf0] }
 0x520   :  { %4307 = vmatpush.bf16.msra.mxu1 %v6218_v9  ;;  %v6083_v9 = vld [vmem:[%s10421_s8 + $0x148] sm:$0xf0] }
 0x521   :  { %4337 = vmatpush.bf16.msrb.mxu3 %v6222_v13  ;;  %4295 = vmatpush.bf16.msrb.mxu0 %v5954_v59  ;;  %v3587_v13 = vpop.f32.mrf.mxu0  ;;  %v6086_v57 = vor.u32 %v6695_v40, %v6083_v9  ;;  %v6273_v59 = vld [vmem:[%s10421_s8 + $0x2b0] sm:$0xf]  ;;  %v6230_v40 = vor.u32 %v6731_v27, %v6227_v44  ;;  %v6201_v9 = vld [vmem:[%s10421_s8 + $0x220] sm:$0xf] }
 0x522   :  { %4324 = vmatpush.bf16.msrb.mxu2 %v5982_v10  ;;  %v3588_v28 = vadd.f32 %v3587_v13, %v3411_v37  ;;  %v6059_v10 = vld [vmem:[%s10421_s8 + $0x118] sm:$0xf0]  ;;  %v6250_v37 = vor.u32 %v6740_v62, %v6249_v48  ;;  %v6728_v13 = vld [vmem:[%s10421_s8 + $0x234] sm:$0xf0]  ;;  %v6710_v48 = vld [vmem:[%s10421_s8 + $0x1a4] sm:$0xf0] }
 0x523   :  { %v6131_v62 = vld [vmem:[%s10421_s8 + $0x1a8] sm:$0xf0] }
 0x524   :  { %4308 = vmatpush.bf16.msra.mxu1 %v6194_v53 }
 0x525   :  { %4338 = vmatpush.bf16.msrb.mxu3 %v6198_v47  ;;  %4296 = vmatpush.bf16.msrb.mxu0 %v5930_v58  ;;  %v6692_v47 = vld [vmem:[%s10421_s8 + $0x114] sm:$0xf0]  ;;  %v6683_v58 = vld [vmem:[%s10421_s8 + $0xd4] sm:$0xf] }
 0x526   :  { %4325 = vmatpush.bf16.msrb.mxu2 %v5958_v36  ;;  %v6058_v6 = vor.u32 %v6692_v47, %v6057_v33  ;;  %v6202_v33 = vor.u32 %v6728_v13, %v6201_v9  ;;  %v6722_v47 = vld [vmem:[%s10421_s8 + $0x204] sm:$0xf0] }
 0x528   :  { %4309 = vmatpush.bf16.msra.mxu1 %v6170_v16  ;;  %v3617_v16 = vpop.f32.mrf.mxu2 }
 0x529   :  { %4339 = vmatpush.bf16.msrb.mxu3 %v6174_v61  ;;  %v6062_v61 = vor.u32 %v6689_v25, %v6059_v10  ;;  %v3618_v46 = vadd.f32 %v3617_v16, %v3412_v4  ;;  %v6014_v4 = vor.u32 %v6677_v7, %v6011_v54  ;;  %v6719_v25 = vld [vmem:[%s10421_s8 + $0x1f4] sm:$0xf]  ;;  %v6179_v10 = vld [vmem:[%s10421_s8 + $0x208] sm:$0xf0]  ;;  %v6153_v16 = vld [vmem:[%s10421_s8 + $0x1c0] sm:$0xf] }
 0x52a   :  { %4326 = vmatpush.bf16.msrb.mxu2 %v5934_v41  ;;  %v6274_v41 = vor.u32 %v6746_v23, %v6273_v59  ;;  %v6662_v59 = vld [vmem:[%s10421_s8 + $0x24] sm:$0xf0]  ;;  %v6659_v23 = vld [vmem:[%s10421_s8 + $0x14] sm:$0xf]  ;;  %v6182_v38 = vor.u32 %v6719_v25, %v6179_v10 }
 0x52c   :  { %4310 = vmatpush.bf16.msra.mxu1 %v6146_v15  ;;  %v6737_v15 = vld [vmem:[%s10421_s8 + $0x284] sm:$0xf] }
 0x52d   :  { %4340 = vmatpush.bf16.msrb.mxu3 %v6150_v30  ;;  %v6251_v30 = vld [vmem:[%s10421_s8 + $0x298] sm:$0xf0] }
 0x52e   :  { %v6254_v34 = vor.u32 %v6737_v15, %v6251_v30 }
 0x530   :  { %4311 = vmatpush.bf16.msra.mxu1 %v6122_v45  ;;  %v6038_v45 = vor.u32 %v6683_v58, %v6035_v63 }
 0x531   :  { %4341 = vmatpush.bf16.msrb.mxu3 %v6126_v31  ;;  %v6680_v31 = vld [vmem:[%s10421_s8 + $0xb4] sm:$0xf0] }
 0x578   :  { %v3599_v29 = vpop.f32.mrf.mxu1 }
 0x579   :  { %v3600_v52 = vadd.f32 %v3599_v29, %v3585_v3  ;;  %v6225_v3 = vld [vmem:[%s10421_s8 + $0x250] sm:$0xf]  ;;  %v6010_v29 = vor.u32 %v6680_v31, %v6009_v42 }
 0x57a   :  { %v6226_v43 = vor.u32 %v6734_v17, %v6225_v3 }
 0x57b   :  { %v10193_v56 = vmax.f32 %v3600_v52, 0.0  ;;  %v5985_v52 = vld [vmem:[%s10421_s8 + $0x70] sm:$0xf] }
 0x57d   :  { %4237 = vmatmul.f32.vlgmr.msra.gmra.mxu0 %v10193_v56  ;;  %4267 = vmatmul.f32.vlgmr.msra.gmra.mxu2 %v10193_v56 }
 0x57e   :  { %v3629_v14 = vpop.f32.mrf.mxu3  ;;  %4349 = vmatpush.bf16.msra.mxu0 %v6106_v50  ;;  %4379 = vmatpush.bf16.msra.mxu2 %v6110_v51  ;;  %v6674_v50 = vld [vmem:[%s10421_s8 + $0x84] sm:$0xf0]  ;;  %v6671_v51 = vld [vmem:[%s10421_s8 + $0x74] sm:$0xf] }
 0x57f   :  { %v3630_v53 = vadd.f32 %v3629_v14, %v3615_v39  ;;  %v6203_v39 = vld [vmem:[%s10421_s8 + $0x238] sm:$0xf0]  ;;  %v5986_v21 = vor.u32 %v6674_v50, %v5985_v52  ;;  %v5990_v60 = vor.u32 %v6671_v51, %v5987_v18  ;;  %v6668_v14 = vld [vmem:[%s10421_s8 + $0x54] sm:$0xf0] }
 0x580   :  { %v3602_v32 = vpop.f32.mrf.mxu1 }
 0x581   :  { %v10233_v36 = vmax.f32 %v3630_v53, 0.0  ;;  %v3603_v22 = vadd.f32 %v3602_v32, %v3588_v28  ;;  %v6206_v28 = vor.u32 %v6725_v1, %v6203_v39  ;;  %v6177_v53 = vld [vmem:[%s10421_s8 + $0x1f0] sm:$0xf]  ;;  %v5962_v32 = vor.u32 %v6668_v14, %v5961_v5 }
 0x582   :  { %4350 = vmatpush.bf16.msra.mxu0 %v6082_v55  ;;  %4380 = vmatpush.bf16.msra.mxu2 %v6086_v57  ;;  %v6665_v55 = vld [vmem:[%s10421_s8 + $0x44] sm:$0xf]  ;;  %v5963_v57 = vld [vmem:[%s10421_s8 + $0x58] sm:$0xf0]  ;;  %v6178_v19 = vor.u32 %v6722_v47, %v6177_v53 }
 0x583   :  { %v10247_v35 = vmax.f32 %v3603_v22, 0.0  ;;  %4252 = vmatmul.f32.vlgmr.msrb.gmra.mxu1 %v10233_v36  ;;  %4282 = vmatmul.f32.vlgmr.msra.gmra.mxu3 %v10233_v36  ;;  %v5939_v22 = vld [vmem:[%s10421_s8 + $0x28] sm:$0xf0] }
 0x584   :  { %4364 = vmatpush.bf16.msrb.mxu1 %v6298_v0  ;;  %4394 = vmatpush.bf16.msra.mxu3 %v6302_v11  ;;  %v5966_v0 = vor.u32 %v6665_v55, %v5963_v57  ;;  %v5937_v11 = vld [vmem:[%s10421_s8 + $0x10] sm:$0xf]  ;;  %v5942_v58 = vor.u32 %v6659_v23, %v5939_v22 }
 0x585   :  { %4240 = vmatmul.f32.gmra.mxu0 %v10247_v35  ;;  %4270 = vmatmul.f32.gmra.mxu2 %v10247_v35  ;;  %v5938_v12 = vor.u32 %v6662_v59, %v5937_v11 }
 0x586   :  { %v3632_v2 = vpop.f32.mrf.mxu3  ;;  %4351 = vmatpush.bf16.msra.mxu0 %v6058_v6  ;;  %4381 = vmatpush.bf16.msra.mxu2 %v6062_v61  ;;  %v6716_v6 = vld [vmem:[%s10421_s8 + $0x1d4] sm:$0xf0]  ;;  %v6713_v61 = vld [vmem:[%s10421_s8 + $0x1c4] sm:$0xf] }
 0x587   :  { %v3633_v49 = vadd.f32 %v3632_v2, %v3618_v46  ;;  %v6154_v63 = vor.u32 %v6716_v6, %v6153_v16  ;;  %v6707_v46 = vld [vmem:[%s10421_s8 + $0x194] sm:$0xf]  ;;  %v10402_v2 = vld [vmem:[%s10422_s9] sm:$0x3f]  ;;  %s6783_s9 = smov [#allocation2]  }
 0x588   :  { %4365 = vmatpush.bf16.msrb.mxu1 %v6274_v41  ;;  %4395 = vmatpush.bf16.msra.mxu3 %v6278_v8  ;;  %v6158_v41 = vor.u32 %v6713_v61, %v6155_v24  ;;  %v6129_v8 = vld [vmem:[%s10421_s8 + $0x190] sm:$0xf]  ;;  %v6134_v30 = vor.u32 %v6707_v46, %v6131_v62  ;;  %v3738_v31 = vperm.slane %v10402_v2, 1  ;;  %v3739_v44 = vperm.slane %v10402_v2, 2  ;;  %s4425_s4 = sshll.u32 %s6783_s9, 4  ;;  %s4426_s4 = int_to_ptr.vmem [resolvable:$true] %s4425_s4 }
 0x589   :  { %v10289_v26 = vmax.f32 %v3633_v49, 0.0  ;;  %v6130_v15 = vor.u32 %v6710_v48, %v6129_v8  ;;  %v3741_v57 = vperm.slane %v10402_v2, 4 }
 0x58a   :  { %4352 = vmatpush.bf16.msra.mxu0 %v6034_v20  ;;  %4382 = vmatpush.bf16.msra.mxu2 %v6038_v45  ;;  %v3737_v20 = vperm.slane %v10402_v2, 0 }
 0x58b   :  { %4255 = vmatmul.f32.gmra.mxu1 %v10289_v26  ;;  %4285 = vmatmul.f32.gmra.mxu3 %v10289_v26 }
 0x58c   :  { %4366 = vmatpush.bf16.msrb.mxu1 %v6250_v37  ;;  %4396 = vmatpush.bf16.msra.mxu3 %v6254_v34 }
 0x58d   :  { %4297 = vmatmul.f32.vlgmr.msrb.gmra.mxu0 %v10193_v56  ;;  %4327 = vmatmul.f32.vlgmr.msrb.gmra.mxu2 %v10193_v56 }
 0x58e   :  { %4353 = vmatpush.bf16.msra.mxu0 %v6010_v29  ;;  %4383 = vmatpush.bf16.msra.mxu2 %v6014_v4 }
 0x590   :  { %4367 = vmatpush.bf16.msrb.mxu1 %v6226_v43  ;;  %4397 = vmatpush.bf16.msra.mxu3 %v6230_v40  ;;  %v3740_v40 = vperm.slane %v10402_v2, 3 }
 0x592   :  { %4354 = vmatpush.bf16.msra.mxu0 %v5986_v21  ;;  %4384 = vmatpush.bf16.msra.mxu2 %v5990_v60 }
 0x593   :  { %4312 = vmatmul.f32.vlgmr.msra.gmra.mxu1 %v10233_v36  ;;  %4342 = vmatmul.f32.vlgmr.msrb.gmra.mxu3 %v10233_v36 }
 0x594   :  { %4368 = vmatpush.bf16.msrb.mxu1 %v6202_v33  ;;  %4398 = vmatpush.bf16.msra.mxu3 %v6206_v28 }
 0x595   :  { %4300 = vmatmul.f32.gmra.mxu0 %v10247_v35  ;;  %4330 = vmatmul.f32.gmra.mxu2 %v10247_v35 }
 0x596   :  { %4355 = vmatpush.bf16.msra.mxu0 %v5962_v32  ;;  %4385 = vmatpush.bf16.msra.mxu2 %v5966_v0  ;;  %v3742_v0 = vperm.slane %v10402_v2, 5 }
 0x598   :  { %4369 = vmatpush.bf16.msrb.mxu1 %v6178_v19  ;;  %4399 = vmatpush.bf16.msra.mxu3 %v6182_v38 }
 0x59a   :  { %4356 = vmatpush.bf16.msra.mxu0 %v5938_v12  ;;  %4386 = vmatpush.bf16.msra.mxu2 %v5942_v58 }
 0x59b   :  { %4315 = vmatmul.f32.gmra.mxu1 %v10289_v26  ;;  %4345 = vmatmul.f32.gmra.mxu3 %v10289_v26 }
 0x59c   :  { %4370 = vmatpush.bf16.msrb.mxu1 %v6154_v63  ;;  %4400 = vmatpush.bf16.msra.mxu3 %v6158_v41 }
 0x59d   :  { %4357 = vmatmul.f32.vlgmr.msra.gmra.mxu0 %v10193_v56  ;;  %4387 = vmatmul.f32.vlgmr.msra.gmra.mxu2 %v10193_v56 }
 0x5a0   :  { %4371 = vmatpush.bf16.msrb.mxu1 %v6130_v15  ;;  %4401 = vmatpush.bf16.msra.mxu3 %v6134_v30 }
 0x5a3   :  { %4372 = vmatmul.f32.vlgmr.msrb.gmra.mxu1 %v10233_v36  ;;  %4402 = vmatmul.f32.vlgmr.msra.gmra.mxu3 %v10233_v36 }
 0x5a5   :  { %4360 = vmatmul.f32.gmra.mxu0 %v10247_v35  ;;  %4390 = vmatmul.f32.gmra.mxu2 %v10247_v35 }
 0x5ab   :  { %4375 = vmatmul.f32.gmra.mxu1 %v10289_v26  ;;  %4405 = vmatmul.f32.gmra.mxu3 %v10289_v26 }
 0x5fa   :  { %v4238_v56 = vpop.f32.mrf.mxu0 }
 0x5fb   :  { %v4239_v45 = vadd.f32 %v4238_v56, %v3737_v20 }
 0x600   :  { %v4253_v42 = vpop.f32.mrf.mxu1  ;;  %v4268_v49 = vpop.f32.mrf.mxu2 }
 0x601   :  { %v4254_v36 = vadd.f32 %v4253_v42, %v4239_v45  ;;  %v4269_v35 = vadd.f32 %v4268_v49, %v3738_v31 }
 0x602   :  { %v4241_v7 = vpop.f32.mrf.mxu0 }
 0x603   :  { %4409 = vst [vmem:[#allocation2] sm:$0xff] %v4254_v36  ;;  %v4242_v37 = vadd.f32 %v4241_v7, %v3737_v20 }
 0x606   :  { %v4283_v54 = vpop.f32.mrf.mxu3 }
 0x607   :  { %v4284_v34 = vadd.f32 %v4283_v54, %v4269_v35 }
 0x608   :  { %v4256_v3 = vpop.f32.mrf.mxu1  ;;  %v4271_v17 = vpop.f32.mrf.mxu2 }
 0x609   :  { %4410 = vst [vmem:[#allocation2 + $0x8] sm:$0xff] %v4284_v34  ;;  %v4257_v26 = vadd.f32 %v4256_v3, %v4242_v37  ;;  %v4272_v29 = vadd.f32 %v4271_v17, %v3738_v31 }
 0x60a   :  { %v4298_v27 = vpop.f32.mrf.mxu0 }
 0x60b   :  { %4415 = vst [vmem:[#allocation2 + $0x30] sm:$0xff] %v4257_v26  ;;  %v4299_v52 = vadd.f32 %v4298_v27, %v3739_v44 }
 0x60e   :  { %v4286_v4 = vpop.f32.mrf.mxu3 }
 0x60f   :  { %v4287_v50 = vadd.f32 %v4286_v4, %v4272_v29 }
 0x610   :  { %v4313_v51 = vpop.f32.mrf.mxu1  ;;  %v4328_v18 = vpop.f32.mrf.mxu2 }
 0x611   :  { %4416 = vst [vmem:[#allocation2 + $0x38] sm:$0xff] %v4287_v50  ;;  %v4314_v43 = vadd.f32 %v4313_v51, %v4299_v52  ;;  %v4329_v13 = vadd.f32 %v4328_v18, %v3740_v40 }
 0x612   :  { %v4301_v9 = vpop.f32.mrf.mxu0 }
 0x613   :  { %4411 = vst [vmem:[#allocation2 + $0x10] sm:$0xff] %v4314_v43  ;;  %v4302_v39 = vadd.f32 %v4301_v9, %v3739_v44 }
 0x616   :  { %v4343_v1 = vpop.f32.mrf.mxu3 }
 0x617   :  { %v4344_v21 = vadd.f32 %v4343_v1, %v4329_v13 }
 0x618   :  { %v4316_v60 = vpop.f32.mrf.mxu1  ;;  %v4331_v5 = vpop.f32.mrf.mxu2 }
 0x619   :  { %4412 = vst [vmem:[#allocation2 + $0x18] sm:$0xff] %v4344_v21  ;;  %v4317_v14 = vadd.f32 %v4316_v60, %v4302_v39  ;;  %v4332_v33 = vadd.f32 %v4331_v5, %v3740_v40 }
 0x61a   :  { %v4358_v55 = vpop.f32.mrf.mxu0 }
 0x61b   :  { %4417 = vst [vmem:[#allocation2 + $0x40] sm:$0xff] %v4317_v14  ;;  %v4359_v53 = vadd.f32 %v4358_v55, %v3741_v57 }
 0x61e   :  { %v4346_v28 = vpop.f32.mrf.mxu3 }
 0x61f   :  { %v4347_v47 = vadd.f32 %v4346_v28, %v4332_v33 }
 0x620   :  { %v4373_v25 = vpop.f32.mrf.mxu1  ;;  %v4388_v10 = vpop.f32.mrf.mxu2 }
 0x621   :  { %4418 = vst [vmem:[#allocation2 + $0x48] sm:$0xff] %v4347_v47  ;;  %v4374_v32 = vadd.f32 %v4373_v25, %v4359_v53  ;;  %v4389_v59 = vadd.f32 %v4388_v10, %v3742_v0 }
 0x622   :  { %v4361_v11 = vpop.f32.mrf.mxu0 }
 0x623   :  { %4413 = vst [vmem:[#allocation2 + $0x20] sm:$0xff] %v4374_v32  ;;  %v4362_v22 = vadd.f32 %v4361_v11, %v3741_v57 }
 0x626   :  { %v4403_v23 = vpop.f32.mrf.mxu3 }
 0x627   :  { %v4404_v19 = vadd.f32 %v4403_v23, %v4389_v59 }
 0x628   :  { %v4376_v38 = vpop.f32.mrf.mxu1  ;;  %v4391_v6 = vpop.f32.mrf.mxu2 }
 0x629   :  { %4414 = vst [vmem:[#allocation2 + $0x28] sm:$0xff] %v4404_v19  ;;  %v4377_v16 = vadd.f32 %v4376_v38, %v4362_v22  ;;  %v4392_v61 = vadd.f32 %v4391_v6, %v3742_v0 }
 0x62b   :  { %4419 = vst [vmem:[#allocation2 + $0x50] sm:$0xff] %v4377_v16 }
 0x62e   :  { %v4406_v24 = vpop.f32.mrf.mxu3 }
 0x62f   :  { %v4407_v12 = vadd.f32 %v4406_v24, %v4392_v61 }
 0x631   :  { %4420 = vst [vmem:[#allocation2 + $0x58] sm:$0xff] %v4407_v12 }
 0x632   :  { %4433 = dma.vmem_to_hbm [thread:$0]  %s4426_s4, 1536, %s4428_s2, [#allocation3], %s6784_s20, %s6784_s20, %s6785_s21  }
 0x633   :  { %6781 = dma.done.wait [#allocation3], 1536  }
 0x634   :  { %6782 = vsyncadd [#allocation3], 4294965760 }
 0x635   :  { %4438 = vsyncpa [#allocation3], 1 }

</bundles_post_ra>
